<compile_context>
chip_gen: v6e
topology: v6e:2x2x1
jax: 0.10.0
libtpu: 0.0.40
codegen_flags: <defaults>
</compile_context>

<pallas_src>
import functools

import jax
import jax.numpy as jnp
from jax.experimental import pallas as pl
from jax.experimental.pallas import tpu as pltpu


def _round_up(x, m):
    return ((x + m - 1) // m) * m


# ----------------------------------------------------------------------------
# Matmul epilogue shared by both kernels: bias + PReLU + residual skip.
# ----------------------------------------------------------------------------
def _epilogue(acc, b_ref, a_ref, r_ref):
    out = acc
    if b_ref is not None:
        out = out + b_ref[...]                 # (1, tn) broadcasts over rows
    if a_ref is not None:
        slope = a_ref[0]                       # PReLU slope (SMEM scalar)
        out = jnp.where(out >= 0.0, out, slope * out)
    if r_ref is not None:
        out = out + r_ref[...].astype(jnp.float32)
    return out


def _mm_kernel_single(*refs, has_bias, has_prelu, has_residual):
    """o = epilogue(x @ w); whole contraction in one K tile (no scratch)."""
    it = iter(refs)
    x_ref, w_ref = next(it), next(it)
    b_ref = next(it) if has_bias else None
    a_ref = next(it) if has_prelu else None
    r_ref = next(it) if has_residual else None
    o_ref = next(it)
    acc = jnp.dot(x_ref[...], w_ref[...], preferred_element_type=jnp.float32)
    o_ref[...] = _epilogue(acc, b_ref, a_ref, r_ref).astype(o_ref.dtype)


def _mm_kernel_multi(*refs, has_bias, has_prelu, has_residual):
    """acc += x @ w over the k grid axis; epilogue fused on the last k step."""
    it = iter(refs)
    x_ref, w_ref = next(it), next(it)
    b_ref = next(it) if has_bias else None
    a_ref = next(it) if has_prelu else None
    r_ref = next(it) if has_residual else None
    o_ref = next(it)
    acc_ref = next(it)

    k = pl.program_id(2)

    @pl.when(k == 0)
    def _init():
        acc_ref[...] = jnp.zeros_like(acc_ref)

    acc_ref[...] += jnp.dot(x_ref[...], w_ref[...],
                            preferred_element_type=jnp.float32)

    @pl.when(k == pl.num_programs(2) - 1)
    def _finalize():
        o_ref[...] = _epilogue(acc_ref[...], b_ref, a_ref,
                               r_ref).astype(o_ref.dtype)


# ----------------------------------------------------------------------------
# Tiled matmul with fused bias / PReLU / residual epilogue
# ----------------------------------------------------------------------------
def matmul_bias_act(x, w, b=None, prelu_a=None, residual=None, *,
                    out_dtype=jnp.float32, compute_dtype=jnp.bfloat16,
                    tm_max=256, tn_max=256, tk_max=1024):
    """out = residual + prelu(x @ w + b); bf16 operands, f32 accumulation.

    x:(M,K)  w:(K,N)  b:(N,)|None  prelu_a:(1,)|None  residual:(M,N)|None.
    Operands are zero-padded to tile-aligned shapes (sublane 8 / lane 128) so
    every tile is unmasked and lane-dense; the result is sliced back to (M,N).
    """
    M, K = x.shape
    K2, N = w.shape
    assert K == K2, (K, K2)
    has_bias = b is not None
    has_prelu = prelu_a is not None
    has_residual = residual is not None

    tm = min(tm_max, _round_up(M, 8))
    tn = min(tn_max, _round_up(N, 128))
    tk = min(tk_max, _round_up(K, 128))
    Mp, Np, Kp = _round_up(M, tm), _round_up(N, tn), _round_up(K, tk)
    n_k = Kp // tk
    multi_k = n_k > 1

    xp = jnp.zeros((Mp, Kp), compute_dtype).at[:M, :K].set(
        x.astype(compute_dtype))
    wp = jnp.zeros((Kp, Np), compute_dtype).at[:K, :N].set(
        w.astype(compute_dtype))

    if multi_k:
        in_specs = [pl.BlockSpec((tm, tk), lambda i, j, k: (i, k)),
                    pl.BlockSpec((tk, tn), lambda i, j, k: (k, j))]
        bias_spec = pl.BlockSpec((1, tn), lambda i, j, k: (0, j))
        res_spec = pl.BlockSpec((tm, tn), lambda i, j, k: (i, j))
        out_spec = pl.BlockSpec((tm, tn), lambda i, j, k: (i, j))
        grid = (Mp // tm, Np // tn, n_k)
        dims = ("parallel", "parallel", "arbitrary")
        scratch = [pltpu.VMEM((tm, tn), jnp.float32)]
        kernel_fn = _mm_kernel_multi
    else:
        in_specs = [pl.BlockSpec((tm, Kp), lambda i, j: (i, 0)),
                    pl.BlockSpec((Kp, tn), lambda i, j: (0, j))]
        bias_spec = pl.BlockSpec((1, tn), lambda i, j: (0, j))
        res_spec = pl.BlockSpec((tm, tn), lambda i, j: (i, j))
        out_spec = pl.BlockSpec((tm, tn), lambda i, j: (i, j))
        grid = (Mp // tm, Np // tn)
        dims = ("parallel", "parallel")
        scratch = []
        kernel_fn = _mm_kernel_single

    operands = [xp, wp]
    if has_bias:
        operands.append(jnp.zeros((1, Np), jnp.float32).at[0, :N].set(
            b.astype(jnp.float32)))
        in_specs.append(bias_spec)
    if has_prelu:
        operands.append(prelu_a.astype(jnp.float32).reshape(1))
        in_specs.append(pl.BlockSpec(memory_space=pltpu.SMEM))
    if has_residual:
        operands.append(jnp.zeros((Mp, Np), jnp.float32).at[:M, :N].set(
            residual.astype(jnp.float32)))
        in_specs.append(res_spec)

    kernel = functools.partial(kernel_fn, has_bias=has_bias,
                               has_prelu=has_prelu, has_residual=has_residual)
    out = pl.pallas_call(
        kernel,
        grid_spec=pltpu.PrefetchScalarGridSpec(
            num_scalar_prefetch=0,
            grid=grid,
            in_specs=in_specs,
            out_specs=out_spec,
            scratch_shapes=scratch),
        out_shape=jax.ShapeDtypeStruct((Mp, Np), out_dtype),
        compiler_params=pltpu.CompilerParams(
            dimension_semantics=dims,
            vmem_limit_bytes=32 * 1024 * 1024),
    )(*operands)
    return out[:M, :N]


# ----------------------------------------------------------------------------
# Conv 5x5 'same', channels-last, via im2col + single lane-dense matmul
# ----------------------------------------------------------------------------
def conv5x5_same_nhwc(x_nhwc, w, b, prelu_a=None, residual=None,
                      out_dtype=jnp.float32):
    """x:(B,H,W,Ci)  w:(5,5,Ci,Co)  b:(Co,)  residual:(B,H,W,Co)|None.

    NOTE: real PyTorch Conv2d weights (Co,Ci,5,5) must be permuted to
    (5,5,Ci,Co) before being used here.
    """
    B, H, W, Ci = x_nhwc.shape
    Co = w.shape[-1]
    xp = jnp.pad(x_nhwc, ((0, 0), (2, 2), (2, 2), (0, 0)))   # zero 'same' pad
    # TODO(synk): for large images, build the im2col tile inside the kernel
    # from one padded VMEM block to avoid the 25x im2col HBM traffic; at the
    # small channel counts here the single (M, 25*Ci) contraction keeps the
    # MXU dense, so im2col-as-matmul is the better trade.
    cols = jnp.concatenate([xp[:, kh:kh + H, kw:kw + W, :]
                            for kh in range(5) for kw in range(5)], axis=-1)
    cols = cols.reshape(B * H * W, 25 * Ci)
    res2 = None if residual is None else residual.reshape(B * H * W, Co)
    out = matmul_bias_act(cols, w.reshape(25 * Ci, Co), b, prelu_a, res2,
                          out_dtype=out_dtype)
    return out.reshape(B, H, W, Co)


# ----------------------------------------------------------------------------
# Network blocks matching DualNet / PrimalNet (Conv, PReLU, Conv, PReLU, Conv)
# ----------------------------------------------------------------------------
def conv_block_nhwc(params, x_nhwc, residual):
    """Conv -> PReLU -> Conv -> PReLU -> Conv, residual fused into last conv."""
    h = x_nhwc
    n = len(params)
    for idx, (w, b, a) in enumerate(params):
        last = idx == n - 1
        h = conv5x5_same_nhwc(
            h, w, b,
            prelu_a=None if last else a,
            residual=residual if last else None,
            out_dtype=jnp.float32 if last else jnp.bfloat16)
    return h


def dual_net_forward(params, dual_cl, primal_projected_cl, projections_cl):
    # channels-last concat on the last axis == torch.cat(..., dim=1) in NCHW.
    x = jnp.concatenate([dual_cl, primal_projected_cl, projections_cl], axis=-1)
    return conv_block_nhwc(params, x, residual=dual_cl)


def primal_net_forward(params, primal_nchw, dual_back_nchw):
    primal_cl = jnp.transpose(primal_nchw, (0, 2, 3, 1))        # (B,H,W,S)
    dual_back_cl = jnp.transpose(dual_back_nchw, (0, 2, 3, 1))  # (B,H,W,S)
    x = jnp.concatenate([primal_cl, dual_back_cl], axis=-1)     # (B,H,W,2S)
    out_cl = conv_block_nhwc(params, x, residual=primal_cl)
    return jnp.transpose(out_cl, (0, 3, 1, 2))                  # (B,S,H,W)


# ----------------------------------------------------------------------------
# Projection ops as single lane-dense matmuls
# ----------------------------------------------------------------------------
def forward_project(sys_fwd_2d, primal_nchw, n_angles, det_len):
    """einsum('ikl,mnk->minl'), emitted directly channels-last as (B,S,L,I)."""
    B, S, H, W = primal_nchw.shape
    p2 = primal_nchw.reshape(B * S, H * W)
    out = matmul_bias_act(p2, sys_fwd_2d)                 # (B*S, L*I)
    return out.reshape(B, S, det_len, n_angles)


def back_project_sum(sys_bwd_2d, dual_cl, H, W):
    """sum_i einsum('ikl,minl->mink'); the angle sum IS the contraction dim."""
    B, S, L, I = dual_cl.shape
    d2 = dual_cl.reshape(B * S, L * I)
    out = matmul_bias_act(d2, sys_bwd_2d)                 # (B*S, H*W)
    return out.reshape(B, S, H, W)


# ----------------------------------------------------------------------------
# PrimalDualStraight forward
# ----------------------------------------------------------------------------
def primal_dual_straight(sys, refernce_ct, projection, dual_initial_guess,
                         primal_params, dual_params, n_iter):
    # TODO(synk): torch.utils.checkpoint / logger hooks are training/IO-only;
    # the forward math is reproduced exactly without them.
    n_angles, K, L = sys.shape
    B, n_slices, H, W = refernce_ct.shape
    # Hoisted one-time system-matrix layouts: each projection is one matmul
    # whose output lands directly in the consumer's layout.
    sys_fwd = jnp.transpose(sys, (1, 2, 0)).reshape(K, L * n_angles)  # [k, l*I+i]
    sys_bwd = jnp.transpose(sys, (2, 0, 1)).reshape(L * n_angles, K)  # [l*I+i, k]

    primal = refernce_ct                                       # (B, S, H, W)
    dual = jnp.transpose(dual_initial_guess, (0, 2, 3, 1))     # (B, S, L, I)
    proj_cl = jnp.transpose(projection, (0, 2, 3, 1))          # (B, S, L, I)

    for k in range(n_iter):
        primal_projected = forward_project(sys_fwd, primal, n_angles, L)
        dual = dual_net_forward(dual_params[k], dual, primal_projected, proj_cl)
        dual_back = back_project_sum(sys_bwd, dual, H, W)      # (B, S, H, W)
        primal = primal_net_forward(primal_params[k], primal, dual_back)
    return primal


# ----------------------------------------------------------------------------
# Deterministic parameter init (synthetic, not a checkpoint load)
# ----------------------------------------------------------------------------
def init_conv_params(key, layer_specs):
    params = []
    for (ci, co) in layer_specs:
        key, kw, kb = jax.random.split(key, 3)
        w = 0.05 * jax.random.normal(kw, (5, 5, ci, co), jnp.float32)
        b = 0.01 * jax.random.normal(kb, (co,), jnp.float32)
        a = jnp.array([0.25], jnp.float32)   # PyTorch nn.PReLU default init
        params.append((w, b, a))
    return key, params


if __name__ == "__main__":
    B, n_slices, n_angles = 2, 2, 3
    H = W = 8
    L = 8
    K = H * W
    n_iter = 2

    key = jax.random.PRNGKey(0)
    key, k1, k2, k3, k4 = jax.random.split(key, 5)
    refernce_ct = jax.random.normal(k1, (B, n_slices, H, W), jnp.float32)
    projection = jax.random.normal(k2, (B, n_angles, n_slices, L), jnp.float32)
    dual_initial = jax.random.normal(k3, (B, n_angles, n_slices, L), jnp.float32)
    sys = jax.random.uniform(k4, (n_angles, K, L), jnp.float32)
    sys = sys / jnp.sum(sys, axis=1, keepdims=True)   # normalized system matrix

    primal_params, dual_params = [], []
    for _ in range(n_iter):
        key, p = init_conv_params(key, [(2 * n_slices, 32), (32, 32),
                                        (32, n_slices)])
        primal_params.append(p)
        key, d = init_conv_params(key, [(3 * n_angles, 32), (32, 32),
                                        (32, n_angles)])
        dual_params.append(d)

    fwd = jax.jit(functools.partial(primal_dual_straight, n_iter=n_iter))
    out = fwd(sys, refernce_ct, projection, dual_initial,
              primal_params, dual_params)
    out = jax.block_until_ready(out)
    assert out.shape == (B, n_slices, H, W), out.shape
    assert bool(jnp.all(jnp.isfinite(out)))
    print("KERNEL_OK")
</pallas_src>

<mosaic_0001>
module attributes {stable_mosaic.version = 11 : i64} {
  func.func @_mm_kernel_single(%arg0: i32, %arg1: i32, %arg2: memref<8x128xbf16, #tpu.memory_space<vmem>>, %arg3: memref<128x128xbf16, #tpu.memory_space<vmem>>, %arg4: memref<8x128xf32, #tpu.memory_space<vmem>>) attributes {dimension_semantics = [#tpu.dimension_semantics<parallel>, #tpu.dimension_semantics<parallel>], iteration_bounds = array<i64: 1, 1>, scalar_prefetch = 0 : i64, scratch_operands = 0 : i64, tpu.core_type = #tpu.core_type<tc>, window_params = [{transform_indices = @transform_0, window_bounds = array<i64: 8, 128>}, {transform_indices = @transform_1, window_bounds = array<i64: 128, 128>}, {transform_indices = @transform_2, window_bounds = array<i64: 8, 128>}]} {
    %c0 = arith.constant 0 : index
    %c0_0 = arith.constant 0 : index
    %0 = vector.load %arg2[%c0, %c0_0] : memref<8x128xbf16, #tpu.memory_space<vmem>>, vector<8x128xbf16>
    %c0_1 = arith.constant 0 : index
    %c0_2 = arith.constant 0 : index
    %1 = vector.load %arg3[%c0_1, %c0_2] : memref<128x128xbf16, #tpu.memory_space<vmem>>, vector<128x128xbf16>
    %cst = arith.constant dense<0.000000e+00> : vector<8x128xf32>
    %2 = tpu.matmul %0, %1, %cst {dimension_numbers = #tpu.dot_dimension_numbers<[1], [0], [0], [1], [0, 0, 1, 1], [], []>} : vector<8x128xbf16>, vector<128x128xbf16>, vector<8x128xf32> -> vector<8x128xf32>
    %c0_3 = arith.constant 0 : index
    %c0_4 = arith.constant 0 : index
    %3 = vector.load %arg4[%c0_3, %c0_4] : memref<8x128xf32, #tpu.memory_space<vmem>>, vector<8x128xf32>
    tpu.vector_store %arg4[%c0_3, %c0_4], %2 {strides = array<i32>} : memref<8x128xf32, #tpu.memory_space<vmem>>, vector<8x128xf32>,
    return
  }
  func.func @transform_0(%arg0: i32, %arg1: i32) -> (i32, i32) {
    %c0_i32 = arith.constant 0 : i32
    %c0_i32_0 = arith.constant 0 : i32
    return %arg0, %c0_i32 : i32, i32
  }
  func.func @transform_1(%arg0: i32, %arg1: i32) -> (i32, i32) {
    %c0_i32 = arith.constant 0 : i32
    %c0_i32_0 = arith.constant 0 : i32
    return %c0_i32, %arg1 : i32, i32
  }
  func.func @transform_2(%arg0: i32, %arg1: i32) -> (i32, i32) {
    %c0_i32 = arith.constant 0 : i32
    return %arg0, %arg1 : i32, i32
  }
}

module attributes {stable_mosaic.version = 11 : i64} {
  func.func @_mm_kernel_single(%arg0: i32, %arg1: i32, %arg2: memref<32x256xbf16, #tpu.memory_space<vmem>>, %arg3: memref<256x128xbf16, #tpu.memory_space<vmem>>, %arg4: memref<1x128xf32, #tpu.memory_space<vmem>>, %arg5: memref<1xf32, #tpu.memory_space<smem>>, %arg6: memref<32x128xbf16, #tpu.memory_space<vmem>>) attributes {dimension_semantics = [#tpu.dimension_semantics<parallel>, #tpu.dimension_semantics<parallel>], iteration_bounds = array<i64: 1, 1>, scalar_prefetch = 0 : i64, scratch_operands = 0 : i64, tpu.core_type = #tpu.core_type<tc>, window_params = [{transform_indices = @transform_0, window_bounds = array<i64: 32, 256>}, {transform_indices = @transform_1, window_bounds = array<i64: 256, 128>}, {transform_indices = @transform_2, window_bounds = array<i64: 1, 128>}, {transform_indices = @transform_3, window_bounds = array<i64: 1>}, {transform_indices = @transform_4, window_bounds = array<i64: 32, 128>}]} {
    %c0 = arith.constant 0 : index
    %c0_0 = arith.constant 0 : index
    %0 = vector.load %arg2[%c0, %c0_0] : memref<32x256xbf16, #tpu.memory_space<vmem>>, vector<32x256xbf16>
    %c0_1 = arith.constant 0 : index
    %c0_2 = arith.constant 0 : index
    %1 = vector.load %arg3[%c0_1, %c0_2] : memref<256x128xbf16, #tpu.memory_space<vmem>>, vector<256x128xbf16>
    %cst = arith.constant dense<0.000000e+00> : vector<32x128xf32>
    %2 = tpu.matmul %0, %1, %cst {dimension_numbers = #tpu.dot_dimension_numbers<[1], [0], [0], [1], [0, 0, 1, 1], [], []>} : vector<32x256xbf16>, vector<256x128xbf16>, vector<32x128xf32> -> vector<32x128xf32>
    %c0_3 = arith.constant 0 : index
    %c0_4 = arith.constant 0 : index
    %3 = vector.load %arg4[%c0_3, %c0_4] : memref<1x128xf32, #tpu.memory_space<vmem>>, vector<1x128xf32>
    %4 = vector.broadcast %3 : vector<1x128xf32> to vector<32x128xf32>
    %5 = arith.addf %2, %4 : vector<32x128xf32>
    %c0_5 = arith.constant 0 : index
    %6 = memref.load %arg5[%c0_5] : memref<1xf32, #tpu.memory_space<smem>>
    %cst_6 = arith.constant 0.000000e+00 : f32
    %7 = vector.broadcast %cst_6 : f32 to vector<32x128xf32>
    %8 = arith.cmpf oge, %5, %7 : vector<32x128xf32>
    %9 = vector.broadcast %6 : f32 to vector<32x128xf32>
    %10 = arith.mulf %9, %5 : vector<32x128xf32>
    %11 = arith.select %8, %5, %10 : vector<32x128xi1>, vector<32x128xf32>
    %12 = arith.truncf %11 : vector<32x128xf32> to vector<32x128xbf16>
    %c0_7 = arith.constant 0 : index
    %c0_8 = arith.constant 0 : index
    %13 = vector.load %arg6[%c0_7, %c0_8] : memref<32x128xbf16, #tpu.memory_space<vmem>>, vector<32x128xbf16>
    tpu.vector_store %arg6[%c0_7, %c0_8], %12 {strides = array<i32>} : memref<32x128xbf16, #tpu.memory_space<vmem>>, vector<32x128xbf16>,
    return
  }
  func.func @transform_0(%arg0: i32, %arg1: i32) -> (i32, i32) {
    %c0_i32 = arith.constant 0 : i32
    %c0_i32_0 = arith.constant 0 : i32
    return %arg0, %c0_i32 : i32, i32
  }
  func.func @transform_1(%arg0: i32, %arg1: i32) -> (i32, i32) {
    %c0_i32 = arith.constant 0 : i32
    %c0_i32_0 = arith.constant 0 : i32
    return %c0_i32, %arg1 : i32, i32
  }
  func.func @transform_2(%arg0: i32, %arg1: i32) -> (i32, i32) {
    %c0_i32 = arith.constant 0 : i32
    %c0_i32_0 = arith.constant 0 : i32
    return %c0_i32, %arg1 : i32, i32
  }
  func.func @transform_3(%arg0: i32, %arg1: i32) -> i32 {
    %c0_i32 = arith.constant 0 : i32
    %c0_i32_0 = arith.constant 0 : i32
    return %c0_i32 : i32
  }
  func.func @transform_4(%arg0: i32, %arg1: i32) -> (i32, i32) {
    %c0_i32 = arith.constant 0 : i32
    return %arg0, %arg1 : i32, i32
  }
}

module attributes {stable_mosaic.version = 11 : i64} {
  func.func @_mm_kernel_single(%arg0: i32, %arg1: i32, %arg2: memref<32x896xbf16, #tpu.memory_space<vmem>>, %arg3: memref<896x128xbf16, #tpu.memory_space<vmem>>, %arg4: memref<1x128xf32, #tpu.memory_space<vmem>>, %arg5: memref<1xf32, #tpu.memory_space<smem>>, %arg6: memref<32x128xbf16, #tpu.memory_space<vmem>>) attributes {dimension_semantics = [#tpu.dimension_semantics<parallel>, #tpu.dimension_semantics<parallel>], iteration_bounds = array<i64: 1, 1>, scalar_prefetch = 0 : i64, scratch_operands = 0 : i64, tpu.core_type = #tpu.core_type<tc>, window_params = [{transform_indices = @transform_0, window_bounds = array<i64: 32, 896>}, {transform_indices = @transform_1, window_bounds = array<i64: 896, 128>}, {transform_indices = @transform_2, window_bounds = array<i64: 1, 128>}, {transform_indices = @transform_3, window_bounds = array<i64: 1>}, {transform_indices = @transform_4, window_bounds = array<i64: 32, 128>}]} {
    %c0 = arith.constant 0 : index
    %c0_0 = arith.constant 0 : index
    %0 = vector.load %arg2[%c0, %c0_0] : memref<32x896xbf16, #tpu.memory_space<vmem>>, vector<32x896xbf16>
    %c0_1 = arith.constant 0 : index
    %c0_2 = arith.constant 0 : index
    %1 = vector.load %arg3[%c0_1, %c0_2] : memref<896x128xbf16, #tpu.memory_space<vmem>>, vector<896x128xbf16>
    %cst = arith.constant dense<0.000000e+00> : vector<32x128xf32>
    %2 = tpu.matmul %0, %1, %cst {dimension_numbers = #tpu.dot_dimension_numbers<[1], [0], [0], [1], [0, 0, 1, 1], [], []>} : vector<32x896xbf16>, vector<896x128xbf16>, vector<32x128xf32> -> vector<32x128xf32>
    %c0_3 = arith.constant 0 : index
    %c0_4 = arith.constant 0 : index
    %3 = vector.load %arg4[%c0_3, %c0_4] : memref<1x128xf32, #tpu.memory_space<vmem>>, vector<1x128xf32>
    %4 = vector.broadcast %3 : vector<1x128xf32> to vector<32x128xf32>
    %5 = arith.addf %2, %4 : vector<32x128xf32>
    %c0_5 = arith.constant 0 : index
    %6 = memref.load %arg5[%c0_5] : memref<1xf32, #tpu.memory_space<smem>>
    %cst_6 = arith.constant 0.000000e+00 : f32
    %7 = vector.broadcast %cst_6 : f32 to vector<32x128xf32>
    %8 = arith.cmpf oge, %5, %7 : vector<32x128xf32>
    %9 = vector.broadcast %6 : f32 to vector<32x128xf32>
    %10 = arith.mulf %9, %5 : vector<32x128xf32>
    %11 = arith.select %8, %5, %10 : vector<32x128xi1>, vector<32x128xf32>
    %12 = arith.truncf %11 : vector<32x128xf32> to vector<32x128xbf16>
    %c0_7 = arith.constant 0 : index
    %c0_8 = arith.constant 0 : index
    %13 = vector.load %arg6[%c0_7, %c0_8] : memref<32x128xbf16, #tpu.memory_space<vmem>>, vector<32x128xbf16>
    tpu.vector_store %arg6[%c0_7, %c0_8], %12 {strides = array<i32>} : memref<32x128xbf16, #tpu.memory_space<vmem>>, vector<32x128xbf16>,
    return
  }
  func.func @transform_0(%arg0: i32, %arg1: i32) -> (i32, i32) {
    %c0_i32 = arith.constant 0 : i32
    %c0_i32_0 = arith.constant 0 : i32
    return %arg0, %c0_i32 : i32, i32
  }
  func.func @transform_1(%arg0: i32, %arg1: i32) -> (i32, i32) {
    %c0_i32 = arith.constant 0 : i32
    %c0_i32_0 = arith.constant 0 : i32
    return %c0_i32, %arg1 : i32, i32
  }
  func.func @transform_2(%arg0: i32, %arg1: i32) -> (i32, i32) {
    %c0_i32 = arith.constant 0 : i32
    %c0_i32_0 = arith.constant 0 : i32
    return %c0_i32, %arg1 : i32, i32
  }
  func.func @transform_3(%arg0: i32, %arg1: i32) -> i32 {
    %c0_i32 = arith.constant 0 : i32
    %c0_i32_0 = arith.constant 0 : i32
    return %c0_i32 : i32
  }
  func.func @transform_4(%arg0: i32, %arg1: i32) -> (i32, i32) {
    %c0_i32 = arith.constant 0 : i32
    return %arg0, %arg1 : i32, i32
  }
}

module attributes {stable_mosaic.version = 11 : i64} {
  func.func @_mm_kernel_single(%arg0: i32, %arg1: i32, %arg2: memref<32x896xbf16, #tpu.memory_space<vmem>>, %arg3: memref<896x128xbf16, #tpu.memory_space<vmem>>, %arg4: memref<1x128xf32, #tpu.memory_space<vmem>>, %arg5: memref<32x128xf32, #tpu.memory_space<vmem>>, %arg6: memref<32x128xf32, #tpu.memory_space<vmem>>) attributes {dimension_semantics = [#tpu.dimension_semantics<parallel>, #tpu.dimension_semantics<parallel>], iteration_bounds = array<i64: 1, 1>, scalar_prefetch = 0 : i64, scratch_operands = 0 : i64, tpu.core_type = #tpu.core_type<tc>, window_params = [{transform_indices = @transform_0, window_bounds = array<i64: 32, 896>}, {transform_indices = @transform_1, window_bounds = array<i64: 896, 128>}, {transform_indices = @transform_2, window_bounds = array<i64: 1, 128>}, {transform_indices = @transform_3, window_bounds = array<i64: 32, 128>}, {transform_indices = @transform_4, window_bounds = array<i64: 32, 128>}]} {
    %c0 = arith.constant 0 : index
    %c0_0 = arith.constant 0 : index
    %0 = vector.load %arg2[%c0, %c0_0] : memref<32x896xbf16, #tpu.memory_space<vmem>>, vector<32x896xbf16>
    %c0_1 = arith.constant 0 : index
    %c0_2 = arith.constant 0 : index
    %1 = vector.load %arg3[%c0_1, %c0_2] : memref<896x128xbf16, #tpu.memory_space<vmem>>, vector<896x128xbf16>
    %cst = arith.constant dense<0.000000e+00> : vector<32x128xf32>
    %2 = tpu.matmul %0, %1, %cst {dimension_numbers = #tpu.dot_dimension_numbers<[1], [0], [0], [1], [0, 0, 1, 1], [], []>} : vector<32x896xbf16>, vector<896x128xbf16>, vector<32x128xf32> -> vector<32x128xf32>
    %c0_3 = arith.constant 0 : index
    %c0_4 = arith.constant 0 : index
    %3 = vector.load %arg4[%c0_3, %c0_4] : memref<1x128xf32, #tpu.memory_space<vmem>>, vector<1x128xf32>
    %4 = vector.broadcast %3 : vector<1x128xf32> to vector<32x128xf32>
    %5 = arith.addf %2, %4 : vector<32x128xf32>
    %c0_5 = arith.constant 0 : index
    %c0_6 = arith.constant 0 : index
    %6 = vector.load %arg5[%c0_5, %c0_6] : memref<32x128xf32, #tpu.memory_space<vmem>>, vector<32x128xf32>
    %7 = arith.addf %5, %6 : vector<32x128xf32>
    %c0_7 = arith.constant 0 : index
    %c0_8 = arith.constant 0 : index
    %8 = vector.load %arg6[%c0_7, %c0_8] : memref<32x128xf32, #tpu.memory_space<vmem>>, vector<32x128xf32>
    tpu.vector_store %arg6[%c0_7, %c0_8], %7 {strides = array<i32>} : memref<32x128xf32, #tpu.memory_space<vmem>>, vector<32x128xf32>,
    return
  }
  func.func @transform_0(%arg0: i32, %arg1: i32) -> (i32, i32) {
    %c0_i32 = arith.constant 0 : i32
    %c0_i32_0 = arith.constant 0 : i32
    return %arg0, %c0_i32 : i32, i32
  }
  func.func @transform_1(%arg0: i32, %arg1: i32) -> (i32, i32) {
    %c0_i32 = arith.constant 0 : i32
    %c0_i32_0 = arith.constant 0 : i32
    return %c0_i32, %arg1 : i32, i32
  }
  func.func @transform_2(%arg0: i32, %arg1: i32) -> (i32, i32) {
    %c0_i32 = arith.constant 0 : i32
    %c0_i32_0 = arith.constant 0 : i32
    return %c0_i32, %arg1 : i32, i32
  }
  func.func @transform_3(%arg0: i32, %arg1: i32) -> (i32, i32) {
    %c0_i32 = arith.constant 0 : i32
    return %arg0, %arg1 : i32, i32
  }
  func.func @transform_4(%arg0: i32, %arg1: i32) -> (i32, i32) {
    %c0_i32 = arith.constant 0 : i32
    return %arg0, %arg1 : i32, i32
  }
}

module attributes {stable_mosaic.version = 11 : i64} {
  func.func @_mm_kernel_single(%arg0: i32, %arg1: i32, %arg2: memref<128x128xbf16, #tpu.memory_space<vmem>>, %arg3: memref<128x128xbf16, #tpu.memory_space<vmem>>, %arg4: memref<1x128xf32, #tpu.memory_space<vmem>>, %arg5: memref<1xf32, #tpu.memory_space<smem>>, %arg6: memref<128x128xbf16, #tpu.memory_space<vmem>>) attributes {dimension_semantics = [#tpu.dimension_semantics<parallel>, #tpu.dimension_semantics<parallel>], iteration_bounds = array<i64: 1, 1>, scalar_prefetch = 0 : i64, scratch_operands = 0 : i64, tpu.core_type = #tpu.core_type<tc>, window_params = [{transform_indices = @transform_0, window_bounds = array<i64: 128, 128>}, {transform_indices = @transform_1, window_bounds = array<i64: 128, 128>}, {transform_indices = @transform_2, window_bounds = array<i64: 1, 128>}, {transform_indices = @transform_3, window_bounds = array<i64: 1>}, {transform_indices = @transform_4, window_bounds = array<i64: 128, 128>}]} {
    %c0 = arith.constant 0 : index
    %c0_0 = arith.constant 0 : index
    %0 = vector.load %arg2[%c0, %c0_0] : memref<128x128xbf16, #tpu.memory_space<vmem>>, vector<128x128xbf16>
    %c0_1 = arith.constant 0 : index
    %c0_2 = arith.constant 0 : index
    %1 = vector.load %arg3[%c0_1, %c0_2] : memref<128x128xbf16, #tpu.memory_space<vmem>>, vector<128x128xbf16>
    %cst = arith.constant dense<0.000000e+00> : vector<128x128xf32>
    %2 = tpu.matmul %0, %1, %cst {dimension_numbers = #tpu.dot_dimension_numbers<[1], [0], [0], [1], [0, 0, 1, 1], [], []>} : vector<128x128xbf16>, vector<128x128xbf16>, vector<128x128xf32> -> vector<128x128xf32>
    %c0_3 = arith.constant 0 : index
    %c0_4 = arith.constant 0 : index
    %3 = vector.load %arg4[%c0_3, %c0_4] : memref<1x128xf32, #tpu.memory_space<vmem>>, vector<1x128xf32>
    %4 = vector.broadcast %3 : vector<1x128xf32> to vector<128x128xf32>
    %5 = arith.addf %2, %4 : vector<128x128xf32>
    %c0_5 = arith.constant 0 : index
    %6 = memref.load %arg5[%c0_5] : memref<1xf32, #tpu.memory_space<smem>>
    %cst_6 = arith.constant 0.000000e+00 : f32
    %7 = vector.broadcast %cst_6 : f32 to vector<128x128xf32>
    %8 = arith.cmpf oge, %5, %7 : vector<128x128xf32>
    %9 = vector.broadcast %6 : f32 to vector<128x128xf32>
    %10 = arith.mulf %9, %5 : vector<128x128xf32>
    %11 = arith.select %8, %5, %10 : vector<128x128xi1>, vector<128x128xf32>
    %12 = arith.truncf %11 : vector<128x128xf32> to vector<128x128xbf16>
    %c0_7 = arith.constant 0 : index
    %c0_8 = arith.constant 0 : index
    %13 = vector.load %arg6[%c0_7, %c0_8] : memref<128x128xbf16, #tpu.memory_space<vmem>>, vector<128x128xbf16>
    tpu.vector_store %arg6[%c0_7, %c0_8], %12 {strides = array<i32>} : memref<128x128xbf16, #tpu.memory_space<vmem>>, vector<128x128xbf16>,
    return
  }
  func.func @transform_0(%arg0: i32, %arg1: i32) -> (i32, i32) {
    %c0_i32 = arith.constant 0 : i32
    %c0_i32_0 = arith.constant 0 : i32
    return %arg0, %c0_i32 : i32, i32
  }
  func.func @transform_1(%arg0: i32, %arg1: i32) -> (i32, i32) {
    %c0_i32 = arith.constant 0 : i32
    %c0_i32_0 = arith.constant 0 : i32
    return %c0_i32, %arg1 : i32, i32
  }
  func.func @transform_2(%arg0: i32, %arg1: i32) -> (i32, i32) {
    %c0_i32 = arith.constant 0 : i32
    %c0_i32_0 = arith.constant 0 : i32
    return %c0_i32, %arg1 : i32, i32
  }
  func.func @transform_3(%arg0: i32, %arg1: i32) -> i32 {
    %c0_i32 = arith.constant 0 : i32
    %c0_i32_0 = arith.constant 0 : i32
    return %c0_i32 : i32
  }
  func.func @transform_4(%arg0: i32, %arg1: i32) -> (i32, i32) {
    %c0_i32 = arith.constant 0 : i32
    return %arg0, %arg1 : i32, i32
  }
}

module attributes {stable_mosaic.version = 11 : i64} {
  func.func @_mm_kernel_single(%arg0: i32, %arg1: i32, %arg2: memref<128x896xbf16, #tpu.memory_space<vmem>>, %arg3: memref<896x128xbf16, #tpu.memory_space<vmem>>, %arg4: memref<1x128xf32, #tpu.memory_space<vmem>>, %arg5: memref<1xf32, #tpu.memory_space<smem>>, %arg6: memref<128x128xbf16, #tpu.memory_space<vmem>>) attributes {dimension_semantics = [#tpu.dimension_semantics<parallel>, #tpu.dimension_semantics<parallel>], iteration_bounds = array<i64: 1, 1>, scalar_prefetch = 0 : i64, scratch_operands = 0 : i64, tpu.core_type = #tpu.core_type<tc>, window_params = [{transform_indices = @transform_0, window_bounds = array<i64: 128, 896>}, {transform_indices = @transform_1, window_bounds = array<i64: 896, 128>}, {transform_indices = @transform_2, window_bounds = array<i64: 1, 128>}, {transform_indices = @transform_3, window_bounds = array<i64: 1>}, {transform_indices = @transform_4, window_bounds = array<i64: 128, 128>}]} {
    %c0 = arith.constant 0 : index
    %c0_0 = arith.constant 0 : index
    %0 = vector.load %arg2[%c0, %c0_0] : memref<128x896xbf16, #tpu.memory_space<vmem>>, vector<128x896xbf16>
    %c0_1 = arith.constant 0 : index
    %c0_2 = arith.constant 0 : index
    %1 = vector.load %arg3[%c0_1, %c0_2] : memref<896x128xbf16, #tpu.memory_space<vmem>>, vector<896x128xbf16>
    %cst = arith.constant dense<0.000000e+00> : vector<128x128xf32>
    %2 = tpu.matmul %0, %1, %cst {dimension_numbers = #tpu.dot_dimension_numbers<[1], [0], [0], [1], [0, 0, 1, 1], [], []>} : vector<128x896xbf16>, vector<896x128xbf16>, vector<128x128xf32> -> vector<128x128xf32>
    %c0_3 = arith.constant 0 : index
    %c0_4 = arith.constant 0 : index
    %3 = vector.load %arg4[%c0_3, %c0_4] : memref<1x128xf32, #tpu.memory_space<vmem>>, vector<1x128xf32>
    %4 = vector.broadcast %3 : vector<1x128xf32> to vector<128x128xf32>
    %5 = arith.addf %2, %4 : vector<128x128xf32>
    %c0_5 = arith.constant 0 : index
    %6 = memref.load %arg5[%c0_5] : memref<1xf32, #tpu.memory_space<smem>>
    %cst_6 = arith.constant 0.000000e+00 : f32
    %7 = vector.broadcast %cst_6 : f32 to vector<128x128xf32>
    %8 = arith.cmpf oge, %5, %7 : vector<128x128xf32>
    %9 = vector.broadcast %6 : f32 to vector<128x128xf32>
    %10 = arith.mulf %9, %5 : vector<128x128xf32>
    %11 = arith.select %8, %5, %10 : vector<128x128xi1>, vector<128x128xf32>
    %12 = arith.truncf %11 : vector<128x128xf32> to vector<128x128xbf16>
    %c0_7 = arith.constant 0 : index
    %c0_8 = arith.constant 0 : index
    %13 = vector.load %arg6[%c0_7, %c0_8] : memref<128x128xbf16, #tpu.memory_space<vmem>>, vector<128x128xbf16>
    tpu.vector_store %arg6[%c0_7, %c0_8], %12 {strides = array<i32>} : memref<128x128xbf16, #tpu.memory_space<vmem>>, vector<128x128xbf16>,
    return
  }
  func.func @transform_0(%arg0: i32, %arg1: i32) -> (i32, i32) {
    %c0_i32 = arith.constant 0 : i32
    %c0_i32_0 = arith.constant 0 : i32
    return %arg0, %c0_i32 : i32, i32
  }
  func.func @transform_1(%arg0: i32, %arg1: i32) -> (i32, i32) {
    %c0_i32 = arith.constant 0 : i32
    %c0_i32_0 = arith.constant 0 : i32
    return %c0_i32, %arg1 : i32, i32
  }
  func.func @transform_2(%arg0: i32, %arg1: i32) -> (i32, i32) {
    %c0_i32 = arith.constant 0 : i32
    %c0_i32_0 = arith.constant 0 : i32
    return %c0_i32, %arg1 : i32, i32
  }
  func.func @transform_3(%arg0: i32, %arg1: i32) -> i32 {
    %c0_i32 = arith.constant 0 : i32
    %c0_i32_0 = arith.constant 0 : i32
    return %c0_i32 : i32
  }
  func.func @transform_4(%arg0: i32, %arg1: i32) -> (i32, i32) {
    %c0_i32 = arith.constant 0 : i32
    return %arg0, %arg1 : i32, i32
  }
}

module attributes {stable_mosaic.version = 11 : i64} {
  func.func @_mm_kernel_single(%arg0: i32, %arg1: i32, %arg2: memref<128x896xbf16, #tpu.memory_space<vmem>>, %arg3: memref<896x128xbf16, #tpu.memory_space<vmem>>, %arg4: memref<1x128xf32, #tpu.memory_space<vmem>>, %arg5: memref<128x128xf32, #tpu.memory_space<vmem>>, %arg6: memref<128x128xf32, #tpu.memory_space<vmem>>) attributes {dimension_semantics = [#tpu.dimension_semantics<parallel>, #tpu.dimension_semantics<parallel>], iteration_bounds = array<i64: 1, 1>, scalar_prefetch = 0 : i64, scratch_operands = 0 : i64, tpu.core_type = #tpu.core_type<tc>, window_params = [{transform_indices = @transform_0, window_bounds = array<i64: 128, 896>}, {transform_indices = @transform_1, window_bounds = array<i64: 896, 128>}, {transform_indices = @transform_2, window_bounds = array<i64: 1, 128>}, {transform_indices = @transform_3, window_bounds = array<i64: 128, 128>}, {transform_indices = @transform_4, window_bounds = array<i64: 128, 128>}]} {
    %c0 = arith.constant 0 : index
    %c0_0 = arith.constant 0 : index
    %0 = vector.load %arg2[%c0, %c0_0] : memref<128x896xbf16, #tpu.memory_space<vmem>>, vector<128x896xbf16>
    %c0_1 = arith.constant 0 : index
    %c0_2 = arith.constant 0 : index
    %1 = vector.load %arg3[%c0_1, %c0_2] : memref<896x128xbf16, #tpu.memory_space<vmem>>, vector<896x128xbf16>
    %cst = arith.constant dense<0.000000e+00> : vector<128x128xf32>
    %2 = tpu.matmul %0, %1, %cst {dimension_numbers = #tpu.dot_dimension_numbers<[1], [0], [0], [1], [0, 0, 1, 1], [], []>} : vector<128x896xbf16>, vector<896x128xbf16>, vector<128x128xf32> -> vector<128x128xf32>
    %c0_3 = arith.constant 0 : index
    %c0_4 = arith.constant 0 : index
    %3 = vector.load %arg4[%c0_3, %c0_4] : memref<1x128xf32, #tpu.memory_space<vmem>>, vector<1x128xf32>
    %4 = vector.broadcast %3 : vector<1x128xf32> to vector<128x128xf32>
    %5 = arith.addf %2, %4 : vector<128x128xf32>
    %c0_5 = arith.constant 0 : index
    %c0_6 = arith.constant 0 : index
    %6 = vector.load %arg5[%c0_5, %c0_6] : memref<128x128xf32, #tpu.memory_space<vmem>>, vector<128x128xf32>
    %7 = arith.addf %5, %6 : vector<128x128xf32>
    %c0_7 = arith.constant 0 : index
    %c0_8 = arith.constant 0 : index
    %8 = vector.load %arg6[%c0_7, %c0_8] : memref<128x128xf32, #tpu.memory_space<vmem>>, vector<128x128xf32>
    tpu.vector_store %arg6[%c0_7, %c0_8], %7 {strides = array<i32>} : memref<128x128xf32, #tpu.memory_space<vmem>>, vector<128x128xf32>,
    return
  }
  func.func @transform_0(%arg0: i32, %arg1: i32) -> (i32, i32) {
    %c0_i32 = arith.constant 0 : i32
    %c0_i32_0 = arith.constant 0 : i32
    return %arg0, %c0_i32 : i32, i32
  }
  func.func @transform_1(%arg0: i32, %arg1: i32) -> (i32, i32) {
    %c0_i32 = arith.constant 0 : i32
    %c0_i32_0 = arith.constant 0 : i32
    return %c0_i32, %arg1 : i32, i32
  }
  func.func @transform_2(%arg0: i32, %arg1: i32) -> (i32, i32) {
    %c0_i32 = arith.constant 0 : i32
    %c0_i32_0 = arith.constant 0 : i32
    return %c0_i32, %arg1 : i32, i32
  }
  func.func @transform_3(%arg0: i32, %arg1: i32) -> (i32, i32) {
    %c0_i32 = arith.constant 0 : i32
    return %arg0, %arg1 : i32, i32
  }
  func.func @transform_4(%arg0: i32, %arg1: i32) -> (i32, i32) {
    %c0_i32 = arith.constant 0 : i32
    return %arg0, %arg1 : i32, i32
  }
}

</mosaic_0001>

<bundles_post_ra>
// kernel: primal_dual_straight.16
= control target key start
LH: loop header
LB: loop body
LE: loop exit
PB: predicated region body
PF: predicated region fallthrough
CT: control target
= control target key end

     0   :  { %v169_v0 = vmov 0.0   ;;  %vm170_vm0 = vmmov 0   ;;  %s216_s1 = inlined_call_operand.vmem [shape: bf16[128,128], index: 1, kind: input, shape index: {}]   ;;  %s217_s0 = inlined_call_operand.vmem [shape: bf16[8,128], index: 0, kind: input, shape index: {}]   ;;  %s218_s2 = inlined_call_operand.vmem [shape: f32[8,128], index: 2, kind: output, shape index: {}]  }
   0x1   :  { %139 = vmatprep.subr.bf16.mxu0 %v169_v0  ;;  %v161_v1 = vld [vmem:[%s216_s1 + $0x38] sm:$0xff]   ;;  %155 = vmatprep.mubr.msk.bf16.mxu0 %vm170_vm0, %v169_v0  ;;  %v162_v2 = vld [vmem:[%s216_s1 + $0x30] sm:$0xff]   ;;  %v163_v3 = vld [vmem:[%s216_s1 + $0x28] sm:$0xff]  }
   0x2   :  { %140 = vmatpush3.bf16.msra.mxu0 %v161_v1  ;;  %v164_v4 = vld [vmem:[%s216_s1 + $0x20] sm:$0xff]   ;;  %v165_v5 = vld [vmem:[%s216_s1 + $0x18] sm:$0xff]   ;;  %v166_v6 = vld [vmem:[%s216_s1 + $0x10] sm:$0xff]  }
   0x3   :  { %141 = vmatprep.subr.bf16.mxu0 %v169_v0  ;;  %v167_v7 = vld [vmem:[%s216_s1 + $0x8] sm:$0xff]   ;;  %v168_v8 = vld [vmem:[%s216_s1] sm:$0xff]  }
   0x4   :  { %v12_v9 = vld [vmem:[%s217_s0] sm:$0xf] }
   0x6   :  { %142 = vmatpush3.bf16.msra.mxu0 %v162_v2 }
   0x7   :  { %143 = vmatprep.subr.bf16.mxu0 %v169_v0 }
   0xa   :  { %144 = vmatpush3.bf16.msra.mxu0 %v163_v3 }
   0xb   :  { %145 = vmatprep.subr.bf16.mxu0 %v169_v0 }
   0xe   :  { %146 = vmatpush3.bf16.msra.mxu0 %v164_v4 }
   0xf   :  { %147 = vmatprep.subr.bf16.mxu0 %v169_v0 }
  0x12   :  { %148 = vmatpush3.bf16.msra.mxu0 %v165_v5 }
  0x13   :  { %149 = vmatprep.subr.bf16.mxu0 %v169_v0 }
  0x16   :  { %150 = vmatpush3.bf16.msra.mxu0 %v166_v6 }
  0x17   :  { %151 = vmatprep.subr.bf16.mxu0 %v169_v0 }
  0x1a   :  { %152 = vmatpush3.bf16.msra.mxu0 %v167_v7 }
  0x1b   :  { %153 = vmatprep.subr.bf16.mxu0 %v169_v0 }
  0x1e   :  { %154 = vmatpush3.bf16.msra.mxu0 %v168_v8 }
  0x21   :  { %156 = vmatmul.mubr.bf16.vlgmr.msra.gmra.mxu0 %v12_v9 }
  0xe1   :  { %v111_v10 = vpop.f32.mrf.mxu0 }
  0xe2   :  { %117 = vst [vmem:[%s218_s2] sm:$0xff] %v111_v10 }
  0xe3   :  { %v157_v11 = vpop.f32.mrf.mxu0 }
  0xe5   :  { %v114_v12 = vpop.f32.mrf.mxu0 }
  0xe7   :  { %v158_v13 = vpop.f32.mrf.mxu0 }

// kernel: primal_dual_straight.17
= control target key start
LH: loop header
LB: loop body
LE: loop exit
PB: predicated region body
PF: predicated region fallthrough
CT: control target
= control target key end

     0   :  { %s468_s1 = inlined_call_operand.vmem [shape: bf16[256,128], index: 1, kind: input, shape index: {}]   ;;  %s469_s0 = inlined_call_operand.vmem [shape: bf16[32,256], index: 0, kind: input, shape index: {}]   ;;  %s470_s2 = inlined_call_operand.vmem [shape: f32[1,128], index: 2, kind: input, shape index: {}]   ;;  %s471_s3 = inlined_call_operand.<no memory space> [shape: f32[1], index: 3, kind: input, shape index: {}]   ;;  %s472_s4 = inlined_call_operand.vmem [shape: bf16[32,128], index: 4, kind: output, shape index: {}]  }
   0x1   :  { %v349_v0 = vld [vmem:[%s468_s1 + $0x78] sm:$0xff]   ;;  %v351_v2 = vld [vmem:[%s468_s1 + $0x70] sm:$0xff]   ;;  %v353_v4 = vld [vmem:[%s468_s1 + $0x68] sm:$0xff]   ;;  %v232_v33 = vstv %s471_s3 }
   0x2   :  { %v350_v1 = vld [vmem:[%s468_s1 + $0x38] sm:$0xff]   ;;  %305 = vmatprep.subr.bf16.mxu0 %v349_v0  ;;  %333 = vmatprep.subr.bf16.mxu1 %v349_v0  ;;  %v352_v3 = vld [vmem:[%s468_s1 + $0x30] sm:$0xff]   ;;  %v354_v5 = vld [vmem:[%s468_s1 + $0x28] sm:$0xff]  }
   0x3   :  { %306 = vmatpush3.bf16.msra.mxu0 %v350_v1  ;;  %341 = vmatpush3.bf16.msra.mxu1 %v350_v1  ;;  %v355_v6 = vld [vmem:[%s468_s1 + $0x60] sm:$0xff]   ;;  %v357_v8 = vld [vmem:[%s468_s1 + $0x58] sm:$0xff]   ;;  %v359_v10 = vld [vmem:[%s468_s1 + $0x50] sm:$0xff]  }
   0x4   :  { %307 = vmatprep.subr.bf16.mxu0 %v351_v2  ;;  %334 = vmatprep.subr.bf16.mxu1 %v351_v2  ;;  %v356_v7 = vld [vmem:[%s468_s1 + $0x20] sm:$0xff]   ;;  %v358_v9 = vld [vmem:[%s468_s1 + $0x18] sm:$0xff]   ;;  %v360_v13 = vld [vmem:[%s468_s1 + $0x10] sm:$0xff]  }
   0x5   :  { %v367_v11 = vld [vmem:[%s469_s0 + $0x4] ss:$8 sps:$4 sm:$0xff]   ;;  %v370_v12 = vld [vmem:[%s469_s0 + $0x14] ss:$8 sps:$4 sm:$0xff]   ;;  %v365_v18 = vld [vmem:[%s469_s0] ss:$8 sps:$4 sm:$0xff]  }
   0x6   :  { %v361_v14 = vld [vmem:[%s468_s1 + $0x48] sm:$0xff]   ;;  %210 = vmatprep.mubr.bf16.mxu0 %v367_v11  ;;  %218 = vmatprep.mubr.bf16.mxu1 %v370_v12  ;;  %v363_v16 = vld [vmem:[%s468_s1 + $0x40] sm:$0xff]   ;;  %v368_v19 = vld [vmem:[%s469_s0 + $0x10] ss:$8 sps:$4 sm:$0xff]  }
   0x7   :  { %308 = vmatpush3.bf16.msra.mxu0 %v352_v3  ;;  %342 = vmatpush3.bf16.msra.mxu1 %v352_v3  ;;  %v362_v15 = vld [vmem:[%s468_s1 + $0x8] sm:$0xff]   ;;  %v364_v17 = vld [vmem:[%s468_s1] sm:$0xff]  }
   0x8   :  { %309 = vmatprep.subr.bf16.mxu0 %v353_v4  ;;  %335 = vmatprep.subr.bf16.mxu1 %v353_v4  ;;  %v265_v24 = vld [vmem:[%s470_s2] ss:$0 sm:$0xff] }
   0xb   :  { %310 = vmatpush3.bf16.msra.mxu0 %v354_v5  ;;  %343 = vmatpush3.bf16.msra.mxu1 %v354_v5 }
   0xc   :  { %311 = vmatprep.subr.bf16.mxu0 %v355_v6  ;;  %336 = vmatprep.subr.bf16.mxu1 %v355_v6 }
   0xf   :  { %312 = vmatpush3.bf16.msra.mxu0 %v356_v7  ;;  %344 = vmatpush3.bf16.msra.mxu1 %v356_v7 }
  0x10   :  { %313 = vmatprep.subr.bf16.mxu0 %v357_v8  ;;  %337 = vmatprep.subr.bf16.mxu1 %v357_v8 }
  0x13   :  { %314 = vmatpush3.bf16.msra.mxu0 %v358_v9  ;;  %345 = vmatpush3.bf16.msra.mxu1 %v358_v9 }
  0x14   :  { %315 = vmatprep.subr.bf16.mxu0 %v359_v10  ;;  %338 = vmatprep.subr.bf16.mxu1 %v359_v10 }
  0x17   :  { %316 = vmatpush3.bf16.msra.mxu0 %v360_v13  ;;  %346 = vmatpush3.bf16.msra.mxu1 %v360_v13 }
  0x18   :  { %317 = vmatprep.subr.bf16.mxu0 %v361_v14  ;;  %339 = vmatprep.subr.bf16.mxu1 %v361_v14 }
  0x1b   :  { %318 = vmatpush3.bf16.msra.mxu0 %v362_v15  ;;  %347 = vmatpush3.bf16.msra.mxu1 %v362_v15 }
  0x1c   :  { %319 = vmatprep.subr.bf16.mxu0 %v363_v16  ;;  %340 = vmatprep.subr.bf16.mxu1 %v363_v16 }
  0x1f   :  { %320 = vmatpush3.bf16.msra.mxu0 %v364_v17  ;;  %348 = vmatpush3.bf16.msra.mxu1 %v364_v17 }
  0x22   :  { %211 = vmatmul.mubr.bf16.vlgmr.msra.gmra.mxu0 %v365_v18  ;;  %219 = vmatmul.mubr.bf16.vlgmr.msra.gmra.mxu1 %v368_v19 }
  0xe2   :  { %v321_v20 = vpop.f32.mrf.mxu0  ;;  %v327_v21 = vpop.f32.mrf.mxu1 }
  0xe4   :  { %v322_v22 = vpop.f32.mrf.mxu0  ;;  %v328_v23 = vpop.f32.mrf.mxu1 }
  0xe5   :  { %v323_v25 = vadd.f32 %v322_v22, %v321_v20  ;;  %v329_v26 = vadd.f32 %v328_v23, %v327_v21 }
  0xe6   :  { %v324_v27 = vpop.f32.mrf.mxu0  ;;  %v330_v28 = vpop.f32.mrf.mxu1 }
  0xe7   :  { %v213_v29 = vadd.f32 %v323_v25, %v265_v24  ;;  %v221_v30 = vadd.f32 %v329_v26, %v265_v24 }
  0xe8   :  { %v325_v31 = vpop.f32.mrf.mxu0  ;;  %v331_v32 = vpop.f32.mrf.mxu1 }
  0xe9   :  { %v326_v34 = vadd.f32 %v325_v31, %v324_v27  ;;  %v332_v35 = vadd.f32 %v331_v32, %v330_v28  ;;  %v233_v36 = vmul.f32 %v232_v33, %v213_v29  ;;  %v235_v37 = vmul.f32 %v232_v33, %v221_v30 }
  0xea   :  { %vm228_vm0 = vcmp.ge.f32.partialorder %v213_v29, 0.0  ;;  %vm230_vm1 = vcmp.ge.f32.partialorder %v221_v30, 0.0 }
  0xeb   :  { %v216_v38 = vadd.f32 %v326_v34, %v265_v24  ;;  %v224_v39 = vadd.f32 %v332_v35, %v265_v24  ;;  %v237_v42 = vsel %vm228_vm0, %v213_v29, %v233_v36  ;;  %v239_v43 = vsel %vm230_vm1, %v221_v30, %v235_v37 }
  0xed   :  { %vm229_vm2 = vcmp.ge.f32.partialorder %v216_v38, 0.0  ;;  %v234_v40 = vmul.f32 %v232_v33, %v216_v38  ;;  %vm231_vm3 = vcmp.ge.f32.partialorder %v224_v39, 0.0  ;;  %v236_v41 = vmul.f32 %v232_v33, %v224_v39 }
  0xef   :  { %v238_v44 = vsel %vm229_vm2, %v216_v38, %v234_v40  ;;  %v240_v45 = vsel %vm231_vm3, %v224_v39, %v236_v41 }
  0xf0   :  { %v297_v46 = vpack.c.bf16 %v238_v44, %v237_v42  ;;  %v302_v47 = vpack.c.bf16 %v240_v45, %v239_v43 }
  0xf2   :  { %298 = vst [vmem:[%s472_s4] sm:$0xff] %v297_v46   ;;  %304 = vst [vmem:[%s472_s4 + $0x8] sm:$0xff] %v302_v47  }

// kernel: primal_dual_straight.18
= control target key start
LH: loop header
LB: loop body
LE: loop exit
PB: predicated region body
PF: predicated region fallthrough
CT: control target
= control target key end

     0   :  { %s1323_s1 = inlined_call_operand.vmem [shape: bf16[896,128], index: 1, kind: input, shape index: {}]   ;;  %s1324_s0 = inlined_call_operand.vmem [shape: bf16[32,896], index: 0, kind: input, shape index: {}]   ;;  %s1325_s2 = inlined_call_operand.vmem [shape: f32[1,128], index: 2, kind: input, shape index: {}]   ;;  %s1326_s3 = inlined_call_operand.<no memory space> [shape: f32[1], index: 3, kind: input, shape index: {}]   ;;  %s1327_s4 = inlined_call_operand.vmem [shape: bf16[32,128], index: 4, kind: output, shape index: {}]  }
   0x1   :  { %v1000_v0 = vld [vmem:[%s1323_s1 + $0x78] sm:$0xff]   ;;  %v1004_v4 = vld [vmem:[%s1323_s1 + $0x70] sm:$0xff]   ;;  %v1008_v8 = vld [vmem:[%s1323_s1 + $0x68] sm:$0xff]  }
   0x2   :  { %v1001_v1 = vld [vmem:[%s1323_s1 + $0x38] sm:$0xff]   ;;  %886 = vmatprep.subr.bf16.mxu0 %v1000_v0  ;;  %v1005_v5 = vld [vmem:[%s1323_s1 + $0x30] sm:$0xff]   ;;  %v1009_v9 = vld [vmem:[%s1323_s1 + $0x28] sm:$0xff]  }
   0x3   :  { %v1002_v2 = vld [vmem:[%s1323_s1 + $0xf8] sm:$0xff]   ;;  %887 = vmatpush3.bf16.msra.mxu0 %v1001_v1  ;;  %v1006_v6 = vld [vmem:[%s1323_s1 + $0xf0] sm:$0xff]   ;;  %v1010_v10 = vld [vmem:[%s1323_s1 + $0xe8] sm:$0xff]  }
   0x4   :  { %v1003_v3 = vld [vmem:[%s1323_s1 + $0xb8] sm:$0xff]   ;;  %914 = vmatprep.subr.bf16.mxu1 %v1002_v2  ;;  %888 = vmatprep.subr.bf16.mxu0 %v1004_v4  ;;  %v1007_v7 = vld [vmem:[%s1323_s1 + $0xb0] sm:$0xff]   ;;  %v1011_v11 = vld [vmem:[%s1323_s1 + $0xa8] sm:$0xff]  }
   0x5   :  { %915 = vmatpush3.bf16.msra.mxu1 %v1003_v3  ;;  %v1012_v12 = vld [vmem:[%s1323_s1 + $0x60] sm:$0xff]   ;;  %v1016_v16 = vld [vmem:[%s1323_s1 + $0x58] sm:$0xff]   ;;  %v1020_v20 = vld [vmem:[%s1323_s1 + $0x50] sm:$0xff]  }
   0x6   :  { %916 = vmatprep.subr.bf16.mxu1 %v1006_v6  ;;  %v1013_v13 = vld [vmem:[%s1323_s1 + $0x20] sm:$0xff]   ;;  %v1017_v17 = vld [vmem:[%s1323_s1 + $0x18] sm:$0xff]   ;;  %v1021_v21 = vld [vmem:[%s1323_s1 + $0x10] sm:$0xff]  }
   0x7   :  { %889 = vmatpush3.bf16.msra.mxu0 %v1005_v5  ;;  %v1014_v14 = vld [vmem:[%s1323_s1 + $0xe0] sm:$0xff]   ;;  %v1018_v18 = vld [vmem:[%s1323_s1 + $0xd8] sm:$0xff]   ;;  %v1022_v22 = vld [vmem:[%s1323_s1 + $0xd0] sm:$0xff]  }
   0x8   :  { %890 = vmatprep.subr.bf16.mxu0 %v1008_v8  ;;  %v1015_v15 = vld [vmem:[%s1323_s1 + $0xa0] sm:$0xff]   ;;  %v1019_v19 = vld [vmem:[%s1323_s1 + $0x98] sm:$0xff]   ;;  %v1023_v23 = vld [vmem:[%s1323_s1 + $0x90] sm:$0xff]  }
   0x9   :  { %917 = vmatpush3.bf16.msra.mxu1 %v1007_v7  ;;  %v1024_v24 = vld [vmem:[%s1323_s1 + $0x48] sm:$0xff]   ;;  %v1028_v28 = vld [vmem:[%s1323_s1 + $0x40] sm:$0xff]   ;;  %v1035_v34 = vld [vmem:[%s1323_s1 + $0x178] sm:$0xff]  }
   0xa   :  { %918 = vmatprep.subr.bf16.mxu1 %v1010_v10  ;;  %v1025_v25 = vld [vmem:[%s1323_s1 + $0x8] sm:$0xff]   ;;  %v1029_v29 = vld [vmem:[%s1323_s1] sm:$0xff]   ;;  %v1039_v37 = vld [vmem:[%s1323_s1 + $0x138] sm:$0xff]  }
   0xb   :  { %891 = vmatpush3.bf16.msra.mxu0 %v1009_v9  ;;  %v1026_v26 = vld [vmem:[%s1323_s1 + $0xc8] sm:$0xff]   ;;  %v1030_v30 = vld [vmem:[%s1323_s1 + $0xc0] sm:$0xff]   ;;  %v1040_v38 = vld [vmem:[%s1323_s1 + $0x170] sm:$0xff]  }
   0xc   :  { %892 = vmatprep.subr.bf16.mxu0 %v1012_v12  ;;  %v1027_v27 = vld [vmem:[%s1323_s1 + $0x88] sm:$0xff]   ;;  %v1031_v31 = vld [vmem:[%s1324_s0] ss:$28 sps:$4 sm:$0xff]   ;;  %v1042_v40 = vld [vmem:[%s1323_s1 + $0x130] sm:$0xff]  }
   0xd   :  { %919 = vmatpush3.bf16.msra.mxu1 %v1011_v11  ;;  %v1033_v32 = vld [vmem:[%s1324_s0 + $0x4] ss:$28 sps:$4 sm:$0xff]   ;;  %v1038_v36 = vld [vmem:[%s1324_s0 + $0xc] ss:$28 sps:$4 sm:$0xff]   ;;  %v1041_v39 = vld [vmem:[%s1323_s1 + $0x1b8] sm:$0xff]  }
   0xe   :  { %920 = vmatprep.subr.bf16.mxu1 %v1014_v14  ;;  %v1034_v33 = vld [vmem:[%s1323_s1 + $0x80] sm:$0xff]   ;;  %594 = vmatprep.mubr.bf16.mxu0 %v1033_v32  ;;  %v1043_v41 = vld [vmem:[%s1323_s1 + $0x168] sm:$0xff]   ;;  %v1044_v42 = vld [vmem:[%s1323_s1 + $0x1b0] sm:$0xff]  }
   0xf   :  { %893 = vmatpush3.bf16.msra.mxu0 %v1013_v13  ;;  %v1036_v35 = vld [vmem:[%s1324_s0 + $0x8] ss:$28 sps:$4 sm:$0xff]   ;;  %643 = vmatprep.mubr.bf16.mxu1 %v1038_v36  ;;  %v1049_v47 = vld [vmem:[%s1323_s1 + $0x158] sm:$0xff]   ;;  %v1058_v54 = vld [vmem:[%s1323_s1 + $0x150] sm:$0xff]  }
  0x10   :  { %894 = vmatprep.subr.bf16.mxu0 %v1016_v16  ;;  %v1045_v43 = vld [vmem:[%s1323_s1 + $0x128] sm:$0xff]   ;;  %v1046_v44 = vld [vmem:[%s1323_s1 + $0x160] sm:$0xff]   ;;  %v1051_v49 = vld [vmem:[%s1324_s0 + $0x3c] ss:$28 sps:$4 sm:$0xff]  }
  0x11   :  { %921 = vmatpush3.bf16.msra.mxu1 %v1015_v15  ;;  %v1047_v45 = vld [vmem:[%s1323_s1 + $0x1a8] sm:$0xff]   ;;  %v1048_v46 = vld [vmem:[%s1323_s1 + $0x120] sm:$0xff]   ;;  %v1053_v50 = vld [vmem:[%s1323_s1 + $0x118] sm:$0xff]  }
  0x12   :  { %922 = vmatprep.subr.bf16.mxu1 %v1018_v18  ;;  %v1050_v48 = vld [vmem:[%s1323_s1 + $0x1a0] sm:$0xff]   ;;  %v1054_v51 = vld [vmem:[%s1324_s0 + $0x38] ss:$28 sps:$4 sm:$0xff]   ;;  %v1061_v57 = vld [vmem:[%s1323_s1 + $0x148] sm:$0xff]  }
  0x13   :  { %895 = vmatpush3.bf16.msra.mxu0 %v1017_v17  ;;  %v1055_v52 = vld [vmem:[%s1324_s0 + $0x44] ss:$28 sps:$4 sm:$0xff]   ;;  %v1059_v55 = vld [vmem:[%s1323_s1 + $0x198] sm:$0xff]   ;;  %v1060_v56 = vld [vmem:[%s1323_s1 + $0x110] sm:$0xff]  }
  0x14   :  { %896 = vmatprep.subr.bf16.mxu0 %v1020_v20  ;;  %v1057_v53 = vld [vmem:[%s1324_s0 + $0x40] ss:$28 sps:$4 sm:$0xff]   ;;  %v1062_v58 = vld [vmem:[%s1323_s1 + $0x190] sm:$0xff]   ;;  %v1063_v59 = vld [vmem:[%s1323_s1 + $0x108] sm:$0xff]  }
  0x15   :  { %923 = vmatpush3.bf16.msra.mxu1 %v1019_v19  ;;  %v1064_v60 = vld [vmem:[%s1323_s1 + $0x140] sm:$0xff]   ;;  %v1065_v61 = vld [vmem:[%s1323_s1 + $0x188] sm:$0xff]   ;;  %v1069_v63 = vld [vmem:[%s1324_s0 + $0x14] ss:$28 sps:$4 sm:$0xff]  }
  0x16   :  { %924 = vmatprep.subr.bf16.mxu1 %v1022_v22  ;;  %v1066_v62 = vld [vmem:[%s1323_s1 + $0x100] sm:$0xff]   ;;  %v1071_v1 = vld [vmem:[%s1324_s0 + $0x18] ss:$28 sps:$4 sm:$0xff]   ;;  %v1067_v2 = vld [vmem:[%s1324_s0 + $0x10] ss:$28 sps:$4 sm:$0xff]  }
  0x17   :  { %897 = vmatpush3.bf16.msra.mxu0 %v1021_v21  ;;  %v1070_v0 = vld [vmem:[%s1323_s1 + $0x180] sm:$0xff]   ;;  %v1073_v3 = vld [vmem:[%s1324_s0 + $0x4c] ss:$28 sps:$4 sm:$0xff]  }
  0x18   :  { %898 = vmatprep.subr.bf16.mxu0 %v1024_v24  ;;  %v1072_v4 = vld [vmem:[%s1324_s0 + $0x50] ss:$28 sps:$4 sm:$0xff]   ;;  %v1075_v5 = vld [vmem:[%s1324_s0 + $0x48] ss:$28 sps:$4 sm:$0xff]   ;;  %v796_v20 = vld [vmem:[%s1325_s2] ss:$0 sm:$0xff] }
  0x19   :  { %925 = vmatpush3.bf16.msra.mxu1 %v1023_v23 }
  0x1a   :  { %926 = vmatprep.subr.bf16.mxu1 %v1026_v26 }
  0x1b   :  { %899 = vmatpush3.bf16.msra.mxu0 %v1025_v25 }
  0x1c   :  { %900 = vmatprep.subr.bf16.mxu0 %v1028_v28 }
  0x1d   :  { %927 = vmatpush3.bf16.msra.mxu1 %v1027_v27 }
  0x1e   :  { %928 = vmatprep.subr.bf16.mxu1 %v1030_v30 }
  0x1f   :  { %901 = vmatpush3.bf16.msra.mxu0 %v1029_v29 }
  0x20   :  { %942 = vmatprep.subr.bf16.mxu0 %v1035_v34 }
  0x21   :  { %929 = vmatpush3.bf16.msra.mxu1 %v1034_v33 }
  0x22   :  { %595 = vmatmul.mubr.bf16.vlgmr.msra.gmra.mxu0 %v1031_v31  ;;  %980 = vmatprep.subr.bf16.mxu1 %v1041_v39 }
  0x23   :  { %943 = vmatpush3.bf16.msra.mxu0 %v1039_v37  ;;  %602 = vmatprep.mubr.bf16.mxu0 %v1051_v49 }
  0x24   :  { %644 = vmatmul.mubr.bf16.vlgmr.msra.gmra.mxu1 %v1036_v35  ;;  %944 = vmatprep.subr.bf16.mxu0 %v1040_v38 }
  0x25   :  { %981 = vmatpush3.bf16.msra.mxu1 %v1041_v39  ;;  %651 = vmatprep.mubr.bf16.mxu1 %v1055_v52 }
  0x26   :  { %982 = vmatprep.subr.bf16.mxu1 %v1044_v42 }
  0x27   :  { %945 = vmatpush3.bf16.msra.mxu0 %v1042_v40 }
  0x28   :  { %946 = vmatprep.subr.bf16.mxu0 %v1043_v41 }
  0x29   :  { %983 = vmatpush3.bf16.msra.mxu1 %v1044_v42 }
  0x2a   :  { %984 = vmatprep.subr.bf16.mxu1 %v1047_v45  ;;  %603 = vmatmul.mubr.bf16.gmra.mxu0 %v1054_v51 }
  0x2b   :  { %947 = vmatpush3.bf16.msra.mxu0 %v1045_v43  ;;  %692 = vmatprep.mubr.bf16.mxu0 %v1069_v63 }
  0x2c   :  { %948 = vmatprep.subr.bf16.mxu0 %v1046_v44  ;;  %652 = vmatmul.mubr.bf16.gmra.mxu1 %v1057_v53 }
  0x2d   :  { %985 = vmatpush3.bf16.msra.mxu1 %v1047_v45  ;;  %996 = vmatprep.mubr.bf16.mxu1 %v1071_v1 }
  0x2e   :  { %986 = vmatprep.subr.bf16.mxu1 %v1050_v48 }
  0x2f   :  { %949 = vmatpush3.bf16.msra.mxu0 %v1048_v46  ;;  %v763_v46 = vstv %s1326_s3 }
  0x30   :  { %950 = vmatprep.subr.bf16.mxu0 %v1049_v47 }
  0x31   :  { %987 = vmatpush3.bf16.msra.mxu1 %v1050_v48 }
  0x32   :  { %988 = vmatprep.subr.bf16.mxu1 %v1059_v55 }
  0x33   :  { %951 = vmatpush3.bf16.msra.mxu0 %v1053_v50 }
  0x34   :  { %952 = vmatprep.subr.bf16.mxu0 %v1058_v54 }
  0x35   :  { %989 = vmatpush3.bf16.msra.mxu1 %v1059_v55 }
  0x36   :  { %990 = vmatprep.subr.bf16.mxu1 %v1062_v58 }
  0x37   :  { %953 = vmatpush3.bf16.msra.mxu0 %v1060_v56 }
  0x38   :  { %954 = vmatprep.subr.bf16.mxu0 %v1061_v57 }
  0x39   :  { %991 = vmatpush3.bf16.msra.mxu1 %v1062_v58 }
  0x3a   :  { %992 = vmatprep.subr.bf16.mxu1 %v1065_v61 }
  0x3b   :  { %955 = vmatpush3.bf16.msra.mxu0 %v1063_v59 }
  0x3c   :  { %956 = vmatprep.subr.bf16.mxu0 %v1064_v60 }
  0x3d   :  { %993 = vmatpush3.bf16.msra.mxu1 %v1065_v61 }
  0x3e   :  { %994 = vmatprep.subr.bf16.mxu1 %v1070_v0 }
  0x3f   :  { %957 = vmatpush3.bf16.msra.mxu0 %v1066_v62 }
  0x41   :  { %995 = vmatpush3.bf16.msra.mxu1 %v1070_v0 }
  0x42   :  { %693 = vmatmul.mubr.bf16.vlgmr.msra.gmra.mxu0 %v1067_v2 }
  0x43   :  { %700 = vmatprep.mubr.bf16.mxu0 %v1073_v3 }
  0x44   :  { %997 = vmatmul.mubr.bf16.vlgmr.msra.gmra.mxu1 %v1072_v4 }
  0x4a   :  { %701 = vmatmul.mubr.bf16.gmra.mxu0 %v1075_v5 }
  0xe2   :  { %v902_v6 = vpop.f32.mrf.mxu0 }
  0xe4   :  { %v930_v7 = vpop.f32.mrf.mxu1  ;;  %v903_v8 = vpop.f32.mrf.mxu0 }
  0xe5   :  { %v904_v19 = vadd.f32 %v903_v8, %v902_v6 }
  0xe6   :  { %v931_v9 = vpop.f32.mrf.mxu1  ;;  %v905_v10 = vpop.f32.mrf.mxu0 }
  0xe7   :  { %v597_v24 = vadd.f32 %v904_v19, %v796_v20  ;;  %v932_v25 = vadd.f32 %v931_v9, %v930_v7 }
  0xe8   :  { %v933_v11 = vpop.f32.mrf.mxu1  ;;  %v906_v12 = vpop.f32.mrf.mxu0 }
  0xe9   :  { %v907_v22 = vadd.f32 %v906_v12, %v905_v10  ;;  %v646_v31 = vadd.f32 %v932_v25, %v597_v24 }
  0xea   :  { %v908_v13 = vpop.f32.mrf.mxu0  ;;  %v934_v14 = vpop.f32.mrf.mxu1 }
  0xeb   :  { %v600_v28 = vadd.f32 %v907_v22, %v796_v20  ;;  %v935_v29 = vadd.f32 %v934_v14, %v933_v11 }
  0xec   :  { %v936_v15 = vpop.f32.mrf.mxu1  ;;  %v909_v16 = vpop.f32.mrf.mxu0 }
  0xed   :  { %v910_v32 = vadd.f32 %v909_v16, %v908_v13  ;;  %v649_v38 = vadd.f32 %v935_v29, %v600_v28 }
  0xee   :  { %v937_v17 = vpop.f32.mrf.mxu1  ;;  %v911_v18 = vpop.f32.mrf.mxu0 }
  0xef   :  { %v605_v41 = vadd.f32 %v910_v32, %v796_v20  ;;  %v938_v42 = vadd.f32 %v937_v17, %v936_v15 }
  0xf0   :  { %v939_v21 = vpop.f32.mrf.mxu1  ;;  %v912_v23 = vpop.f32.mrf.mxu0 }
  0xf1   :  { %v913_v39 = vadd.f32 %v912_v23, %v911_v18  ;;  %v654_v53 = vadd.f32 %v938_v42, %v605_v41 }
  0xf2   :  { %v940_v27 = vpop.f32.mrf.mxu1 }
  0xf3   :  { %v608_v50 = vadd.f32 %v913_v39, %v796_v20  ;;  %v941_v51 = vadd.f32 %v940_v27, %v939_v21 }
  0xf5   :  { %v657_v60 = vadd.f32 %v941_v51, %v608_v50 }
 0x102   :  { %v958_v26 = vpop.f32.mrf.mxu0 }
 0x104   :  { %v959_v30 = vpop.f32.mrf.mxu0  ;;  %v998_v34 = vpop.f32.mrf.mxu1 }
 0x105   :  { %v960_v33 = vadd.f32 %v959_v30, %v958_v26 }
 0x106   :  { %v961_v35 = vpop.f32.mrf.mxu0  ;;  %v743_v37 = vpop.f32.mrf.mxu1 }
 0x107   :  { %v695_v36 = vadd.f32 %v960_v33, %v646_v31 }
 0x108   :  { %v962_v40 = vpop.f32.mrf.mxu0  ;;  %v999_v45 = vpop.f32.mrf.mxu1 }
 0x109   :  { %v963_v43 = vadd.f32 %v962_v40, %v961_v35  ;;  %v744_v44 = vadd.f32 %v743_v37, %v695_v36 }
 0x10a   :  { %v964_v47 = vpop.f32.mrf.mxu0  ;;  %v746_v49 = vpop.f32.mrf.mxu1 }
 0x10b   :  { %v698_v48 = vadd.f32 %v963_v43, %v649_v38  ;;  %v764_v54 = vmul.f32 %v763_v46, %v744_v44  ;;  %vm759_vm0 = vcmp.ge.f32.partialorder %v744_v44, 0.0 }
 0x10c   :  { %v965_v52 = vpop.f32.mrf.mxu0 }
 0x10d   :  { %v966_v55 = vadd.f32 %v965_v52, %v964_v47  ;;  %v747_v56 = vadd.f32 %v746_v49, %v698_v48  ;;  %v768_v62 = vsel %vm759_vm0, %v744_v44, %v764_v54 }
 0x10e   :  { %v967_v57 = vpop.f32.mrf.mxu0 }
 0x10f   :  { %v703_v58 = vadd.f32 %v966_v55, %v654_v53  ;;  %vm760_vm1 = vcmp.ge.f32.partialorder %v747_v56, 0.0  ;;  %v765_v59 = vmul.f32 %v763_v46, %v747_v56 }
 0x110   :  { %v968_v61 = vpop.f32.mrf.mxu0 }
 0x111   :  { %v752_v63 = vadd.f32 %v998_v34, %v703_v58  ;;  %v769_v0 = vsel %vm760_vm1, %v747_v56, %v765_v59  ;;  %v969_v1 = vadd.f32 %v968_v61, %v967_v57 }
 0x112   :  { %v878_v2 = vpack.c.bf16 %v769_v0, %v768_v62 }
 0x113   :  { %v706_v3 = vadd.f32 %v969_v1, %v657_v60  ;;  %v766_v4 = vmul.f32 %v763_v46, %v752_v63  ;;  %vm761_vm2 = vcmp.ge.f32.partialorder %v752_v63, 0.0 }
 0x114   :  { %879 = vst [vmem:[%s1327_s4] sm:$0xff] %v878_v2  }
 0x115   :  { %v755_v5 = vadd.f32 %v999_v45, %v706_v3  ;;  %v770_v7 = vsel %vm761_vm2, %v752_v63, %v766_v4 }
 0x117   :  { %vm762_vm3 = vcmp.ge.f32.partialorder %v755_v5, 0.0  ;;  %v767_v6 = vmul.f32 %v763_v46, %v755_v5 }
 0x119   :  { %v771_v8 = vsel %vm762_vm3, %v755_v5, %v767_v6 }
 0x11a   :  { %v883_v9 = vpack.c.bf16 %v771_v8, %v770_v7 }
 0x11c   :  { %885 = vst [vmem:[%s1327_s4 + $0x8] sm:$0xff] %v883_v9  }

// kernel: primal_dual_straight.19
= control target key start
LH: loop header
LB: loop body
LE: loop exit
PB: predicated region body
PF: predicated region fallthrough
CT: control target
= control target key end

     0   :  { %s1296_s1 = inlined_call_operand.vmem [shape: bf16[896,128], index: 1, kind: input, shape index: {}]   ;;  %s1297_s0 = inlined_call_operand.vmem [shape: bf16[32,896], index: 0, kind: input, shape index: {}]   ;;  %s1298_s2 = inlined_call_operand.vmem [shape: f32[1,128], index: 2, kind: input, shape index: {}]   ;;  %s1299_s3 = inlined_call_operand.vmem [shape: f32[32,128], index: 3, kind: input, shape index: {}]   ;;  %s1300_s4 = inlined_call_operand.vmem [shape: f32[32,128], index: 4, kind: output, shape index: {}]  }
   0x1   :  { %v958_v0 = vld [vmem:[%s1296_s1 + $0x78] sm:$0xff]   ;;  %v962_v4 = vld [vmem:[%s1296_s1 + $0x70] sm:$0xff]   ;;  %v966_v8 = vld [vmem:[%s1296_s1 + $0x68] sm:$0xff]  }
   0x2   :  { %v959_v1 = vld [vmem:[%s1296_s1 + $0x38] sm:$0xff]   ;;  %844 = vmatprep.subr.bf16.mxu0 %v958_v0  ;;  %v963_v5 = vld [vmem:[%s1296_s1 + $0x30] sm:$0xff]   ;;  %v967_v9 = vld [vmem:[%s1296_s1 + $0x28] sm:$0xff]  }
   0x3   :  { %v960_v2 = vld [vmem:[%s1296_s1 + $0xf8] sm:$0xff]   ;;  %845 = vmatpush3.bf16.msra.mxu0 %v959_v1  ;;  %v964_v6 = vld [vmem:[%s1296_s1 + $0xf0] sm:$0xff]   ;;  %v968_v10 = vld [vmem:[%s1296_s1 + $0xe8] sm:$0xff]  }
   0x4   :  { %v961_v3 = vld [vmem:[%s1296_s1 + $0xb8] sm:$0xff]   ;;  %872 = vmatprep.subr.bf16.mxu1 %v960_v2  ;;  %846 = vmatprep.subr.bf16.mxu0 %v962_v4  ;;  %v965_v7 = vld [vmem:[%s1296_s1 + $0xb0] sm:$0xff]   ;;  %v969_v11 = vld [vmem:[%s1296_s1 + $0xa8] sm:$0xff]  }
   0x5   :  { %873 = vmatpush3.bf16.msra.mxu1 %v961_v3  ;;  %v970_v12 = vld [vmem:[%s1296_s1 + $0x60] sm:$0xff]   ;;  %v974_v16 = vld [vmem:[%s1296_s1 + $0x58] sm:$0xff]   ;;  %v978_v20 = vld [vmem:[%s1296_s1 + $0x50] sm:$0xff]  }
   0x6   :  { %874 = vmatprep.subr.bf16.mxu1 %v964_v6  ;;  %v971_v13 = vld [vmem:[%s1296_s1 + $0x20] sm:$0xff]   ;;  %v975_v17 = vld [vmem:[%s1296_s1 + $0x18] sm:$0xff]   ;;  %v979_v21 = vld [vmem:[%s1296_s1 + $0x10] sm:$0xff]  }
   0x7   :  { %847 = vmatpush3.bf16.msra.mxu0 %v963_v5  ;;  %v972_v14 = vld [vmem:[%s1296_s1 + $0xe0] sm:$0xff]   ;;  %v976_v18 = vld [vmem:[%s1296_s1 + $0xd8] sm:$0xff]   ;;  %v980_v22 = vld [vmem:[%s1296_s1 + $0xd0] sm:$0xff]  }
   0x8   :  { %848 = vmatprep.subr.bf16.mxu0 %v966_v8  ;;  %v973_v15 = vld [vmem:[%s1296_s1 + $0xa0] sm:$0xff]   ;;  %v977_v19 = vld [vmem:[%s1296_s1 + $0x98] sm:$0xff]   ;;  %v981_v23 = vld [vmem:[%s1296_s1 + $0x90] sm:$0xff]  }
   0x9   :  { %875 = vmatpush3.bf16.msra.mxu1 %v965_v7  ;;  %v982_v24 = vld [vmem:[%s1296_s1 + $0x48] sm:$0xff]   ;;  %v986_v28 = vld [vmem:[%s1296_s1 + $0x40] sm:$0xff]   ;;  %v993_v34 = vld [vmem:[%s1296_s1 + $0x178] sm:$0xff]  }
   0xa   :  { %876 = vmatprep.subr.bf16.mxu1 %v968_v10  ;;  %v983_v25 = vld [vmem:[%s1296_s1 + $0x8] sm:$0xff]   ;;  %v987_v29 = vld [vmem:[%s1296_s1] sm:$0xff]   ;;  %v997_v37 = vld [vmem:[%s1296_s1 + $0x138] sm:$0xff]  }
   0xb   :  { %849 = vmatpush3.bf16.msra.mxu0 %v967_v9  ;;  %v984_v26 = vld [vmem:[%s1296_s1 + $0xc8] sm:$0xff]   ;;  %v988_v30 = vld [vmem:[%s1296_s1 + $0xc0] sm:$0xff]   ;;  %v998_v38 = vld [vmem:[%s1296_s1 + $0x170] sm:$0xff]  }
   0xc   :  { %850 = vmatprep.subr.bf16.mxu0 %v970_v12  ;;  %v985_v27 = vld [vmem:[%s1296_s1 + $0x88] sm:$0xff]   ;;  %v989_v31 = vld [vmem:[%s1297_s0] ss:$28 sps:$4 sm:$0xff]   ;;  %v1000_v40 = vld [vmem:[%s1296_s1 + $0x130] sm:$0xff]  }
   0xd   :  { %877 = vmatpush3.bf16.msra.mxu1 %v969_v11  ;;  %v991_v32 = vld [vmem:[%s1297_s0 + $0x4] ss:$28 sps:$4 sm:$0xff]   ;;  %v996_v36 = vld [vmem:[%s1297_s0 + $0xc] ss:$28 sps:$4 sm:$0xff]   ;;  %v999_v39 = vld [vmem:[%s1296_s1 + $0x1b8] sm:$0xff]  }
   0xe   :  { %878 = vmatprep.subr.bf16.mxu1 %v972_v14  ;;  %v992_v33 = vld [vmem:[%s1296_s1 + $0x80] sm:$0xff]   ;;  %593 = vmatprep.mubr.bf16.mxu0 %v991_v32  ;;  %v1001_v41 = vld [vmem:[%s1296_s1 + $0x168] sm:$0xff]   ;;  %v1002_v42 = vld [vmem:[%s1296_s1 + $0x1b0] sm:$0xff]  }
   0xf   :  { %851 = vmatpush3.bf16.msra.mxu0 %v971_v13  ;;  %v994_v35 = vld [vmem:[%s1297_s0 + $0x8] ss:$28 sps:$4 sm:$0xff]   ;;  %642 = vmatprep.mubr.bf16.mxu1 %v996_v36  ;;  %v1007_v47 = vld [vmem:[%s1296_s1 + $0x158] sm:$0xff]   ;;  %v1016_v54 = vld [vmem:[%s1296_s1 + $0x150] sm:$0xff]  }
  0x10   :  { %852 = vmatprep.subr.bf16.mxu0 %v974_v16  ;;  %v1003_v43 = vld [vmem:[%s1296_s1 + $0x128] sm:$0xff]   ;;  %v1004_v44 = vld [vmem:[%s1296_s1 + $0x160] sm:$0xff]   ;;  %v1009_v49 = vld [vmem:[%s1297_s0 + $0x3c] ss:$28 sps:$4 sm:$0xff]  }
  0x11   :  { %879 = vmatpush3.bf16.msra.mxu1 %v973_v15  ;;  %v1005_v45 = vld [vmem:[%s1296_s1 + $0x1a8] sm:$0xff]   ;;  %v1006_v46 = vld [vmem:[%s1296_s1 + $0x120] sm:$0xff]   ;;  %v1011_v50 = vld [vmem:[%s1296_s1 + $0x118] sm:$0xff]  }
  0x12   :  { %880 = vmatprep.subr.bf16.mxu1 %v976_v18  ;;  %v1008_v48 = vld [vmem:[%s1296_s1 + $0x1a0] sm:$0xff]   ;;  %v1012_v51 = vld [vmem:[%s1297_s0 + $0x38] ss:$28 sps:$4 sm:$0xff]   ;;  %v1019_v57 = vld [vmem:[%s1296_s1 + $0x148] sm:$0xff]  }
  0x13   :  { %853 = vmatpush3.bf16.msra.mxu0 %v975_v17  ;;  %v1013_v52 = vld [vmem:[%s1297_s0 + $0x44] ss:$28 sps:$4 sm:$0xff]   ;;  %v1017_v55 = vld [vmem:[%s1296_s1 + $0x198] sm:$0xff]   ;;  %v1018_v56 = vld [vmem:[%s1296_s1 + $0x110] sm:$0xff]  }
  0x14   :  { %854 = vmatprep.subr.bf16.mxu0 %v978_v20  ;;  %v1015_v53 = vld [vmem:[%s1297_s0 + $0x40] ss:$28 sps:$4 sm:$0xff]   ;;  %v1020_v58 = vld [vmem:[%s1296_s1 + $0x190] sm:$0xff]   ;;  %v1021_v59 = vld [vmem:[%s1296_s1 + $0x108] sm:$0xff]  }
  0x15   :  { %881 = vmatpush3.bf16.msra.mxu1 %v977_v19  ;;  %v1022_v60 = vld [vmem:[%s1296_s1 + $0x140] sm:$0xff]   ;;  %v1023_v61 = vld [vmem:[%s1296_s1 + $0x188] sm:$0xff]   ;;  %v1027_v63 = vld [vmem:[%s1297_s0 + $0x14] ss:$28 sps:$4 sm:$0xff]  }
  0x16   :  { %882 = vmatprep.subr.bf16.mxu1 %v980_v22  ;;  %v1024_v62 = vld [vmem:[%s1296_s1 + $0x100] sm:$0xff]   ;;  %v1029_v1 = vld [vmem:[%s1297_s0 + $0x18] ss:$28 sps:$4 sm:$0xff]   ;;  %v1025_v2 = vld [vmem:[%s1297_s0 + $0x10] ss:$28 sps:$4 sm:$0xff]  }
  0x17   :  { %855 = vmatpush3.bf16.msra.mxu0 %v979_v21  ;;  %v1028_v0 = vld [vmem:[%s1296_s1 + $0x180] sm:$0xff]   ;;  %v1031_v3 = vld [vmem:[%s1297_s0 + $0x4c] ss:$28 sps:$4 sm:$0xff]  }
  0x18   :  { %856 = vmatprep.subr.bf16.mxu0 %v982_v24  ;;  %v1030_v4 = vld [vmem:[%s1297_s0 + $0x50] ss:$28 sps:$4 sm:$0xff]   ;;  %v1033_v5 = vld [vmem:[%s1297_s0 + $0x48] ss:$28 sps:$4 sm:$0xff]   ;;  %v773_v20 = vld [vmem:[%s1298_s2] ss:$0 sm:$0xff] }
  0x19   :  { %883 = vmatpush3.bf16.msra.mxu1 %v981_v23 }
  0x1a   :  { %884 = vmatprep.subr.bf16.mxu1 %v984_v26 }
  0x1b   :  { %857 = vmatpush3.bf16.msra.mxu0 %v983_v25 }
  0x1c   :  { %858 = vmatprep.subr.bf16.mxu0 %v986_v28 }
  0x1d   :  { %885 = vmatpush3.bf16.msra.mxu1 %v985_v27 }
  0x1e   :  { %886 = vmatprep.subr.bf16.mxu1 %v988_v30 }
  0x1f   :  { %859 = vmatpush3.bf16.msra.mxu0 %v987_v29 }
  0x20   :  { %900 = vmatprep.subr.bf16.mxu0 %v993_v34 }
  0x21   :  { %887 = vmatpush3.bf16.msra.mxu1 %v992_v33 }
  0x22   :  { %594 = vmatmul.mubr.bf16.vlgmr.msra.gmra.mxu0 %v989_v31  ;;  %938 = vmatprep.subr.bf16.mxu1 %v999_v39 }
  0x23   :  { %901 = vmatpush3.bf16.msra.mxu0 %v997_v37  ;;  %601 = vmatprep.mubr.bf16.mxu0 %v1009_v49 }
  0x24   :  { %643 = vmatmul.mubr.bf16.vlgmr.msra.gmra.mxu1 %v994_v35  ;;  %902 = vmatprep.subr.bf16.mxu0 %v998_v38 }
  0x25   :  { %939 = vmatpush3.bf16.msra.mxu1 %v999_v39  ;;  %650 = vmatprep.mubr.bf16.mxu1 %v1013_v52 }
  0x26   :  { %940 = vmatprep.subr.bf16.mxu1 %v1002_v42 }
  0x27   :  { %903 = vmatpush3.bf16.msra.mxu0 %v1000_v40 }
  0x28   :  { %904 = vmatprep.subr.bf16.mxu0 %v1001_v41  ;;  %v757_v41 = vld [vmem:[%s1299_s3] sm:$0xff] }
  0x29   :  { %941 = vmatpush3.bf16.msra.mxu1 %v1002_v42 }
  0x2a   :  { %942 = vmatprep.subr.bf16.mxu1 %v1005_v45  ;;  %602 = vmatmul.mubr.bf16.gmra.mxu0 %v1012_v51 }
  0x2b   :  { %905 = vmatpush3.bf16.msra.mxu0 %v1003_v43  ;;  %691 = vmatprep.mubr.bf16.mxu0 %v1027_v63 }
  0x2c   :  { %906 = vmatprep.subr.bf16.mxu0 %v1004_v44  ;;  %651 = vmatmul.mubr.bf16.gmra.mxu1 %v1015_v53  ;;  %v758_v53 = vld [vmem:[%s1299_s3 + $0x8] sm:$0xff] }
  0x2d   :  { %943 = vmatpush3.bf16.msra.mxu1 %v1005_v45  ;;  %954 = vmatprep.mubr.bf16.mxu1 %v1029_v1 }
  0x2e   :  { %944 = vmatprep.subr.bf16.mxu1 %v1008_v48 }
  0x2f   :  { %907 = vmatpush3.bf16.msra.mxu0 %v1006_v46 }
  0x30   :  { %908 = vmatprep.subr.bf16.mxu0 %v1007_v47 }
  0x31   :  { %945 = vmatpush3.bf16.msra.mxu1 %v1008_v48 }
  0x32   :  { %946 = vmatprep.subr.bf16.mxu1 %v1017_v55 }
  0x33   :  { %909 = vmatpush3.bf16.msra.mxu0 %v1011_v50 }
  0x34   :  { %910 = vmatprep.subr.bf16.mxu0 %v1016_v54 }
  0x35   :  { %947 = vmatpush3.bf16.msra.mxu1 %v1017_v55 }
  0x36   :  { %948 = vmatprep.subr.bf16.mxu1 %v1020_v58 }
  0x37   :  { %911 = vmatpush3.bf16.msra.mxu0 %v1018_v56 }
  0x38   :  { %912 = vmatprep.subr.bf16.mxu0 %v1019_v57 }
  0x39   :  { %949 = vmatpush3.bf16.msra.mxu1 %v1020_v58 }
  0x3a   :  { %950 = vmatprep.subr.bf16.mxu1 %v1023_v61 }
  0x3b   :  { %913 = vmatpush3.bf16.msra.mxu0 %v1021_v59 }
  0x3c   :  { %914 = vmatprep.subr.bf16.mxu0 %v1022_v60 }
  0x3d   :  { %951 = vmatpush3.bf16.msra.mxu1 %v1023_v61  ;;  %v759_v61 = vld [vmem:[%s1299_s3 + $0x10] sm:$0xff] }
  0x3e   :  { %952 = vmatprep.subr.bf16.mxu1 %v1028_v0 }
  0x3f   :  { %915 = vmatpush3.bf16.msra.mxu0 %v1024_v62 }
  0x41   :  { %953 = vmatpush3.bf16.msra.mxu1 %v1028_v0 }
  0x42   :  { %692 = vmatmul.mubr.bf16.vlgmr.msra.gmra.mxu0 %v1025_v2 }
  0x43   :  { %699 = vmatprep.mubr.bf16.mxu0 %v1031_v3 }
  0x44   :  { %955 = vmatmul.mubr.bf16.vlgmr.msra.gmra.mxu1 %v1030_v4  ;;  %v760_v4 = vld [vmem:[%s1299_s3 + $0x18] sm:$0xff] }
  0x4a   :  { %700 = vmatmul.mubr.bf16.gmra.mxu0 %v1033_v5 }
  0xe2   :  { %v860_v6 = vpop.f32.mrf.mxu0 }
  0xe4   :  { %v888_v7 = vpop.f32.mrf.mxu1  ;;  %v861_v8 = vpop.f32.mrf.mxu0 }
  0xe5   :  { %v862_v19 = vadd.f32 %v861_v8, %v860_v6 }
  0xe6   :  { %v889_v9 = vpop.f32.mrf.mxu1  ;;  %v863_v10 = vpop.f32.mrf.mxu0 }
  0xe7   :  { %v596_v23 = vadd.f32 %v862_v19, %v773_v20  ;;  %v890_v24 = vadd.f32 %v889_v9, %v888_v7 }
  0xe8   :  { %v891_v11 = vpop.f32.mrf.mxu1  ;;  %v864_v12 = vpop.f32.mrf.mxu0 }
  0xe9   :  { %v865_v25 = vadd.f32 %v864_v12, %v863_v10  ;;  %v645_v30 = vadd.f32 %v890_v24, %v596_v23 }
  0xea   :  { %v866_v13 = vpop.f32.mrf.mxu0  ;;  %v892_v14 = vpop.f32.mrf.mxu1 }
  0xeb   :  { %v599_v31 = vadd.f32 %v865_v25, %v773_v20  ;;  %v893_v32 = vadd.f32 %v892_v14, %v891_v11 }
  0xec   :  { %v894_v15 = vpop.f32.mrf.mxu1  ;;  %v867_v16 = vpop.f32.mrf.mxu0 }
  0xed   :  { %v868_v28 = vadd.f32 %v867_v16, %v866_v13  ;;  %v648_v42 = vadd.f32 %v893_v32, %v599_v31 }
  0xee   :  { %v895_v17 = vpop.f32.mrf.mxu1  ;;  %v869_v18 = vpop.f32.mrf.mxu0 }
  0xef   :  { %v604_v38 = vadd.f32 %v868_v28, %v773_v20  ;;  %v896_v39 = vadd.f32 %v895_v17, %v894_v15 }
  0xf0   :  { %v897_v21 = vpop.f32.mrf.mxu1  ;;  %v870_v22 = vpop.f32.mrf.mxu0 }
  0xf1   :  { %v871_v43 = vadd.f32 %v870_v22, %v869_v18  ;;  %v653_v51 = vadd.f32 %v896_v39, %v604_v38 }
  0xf2   :  { %v898_v27 = vpop.f32.mrf.mxu1 }
  0xf3   :  { %v607_v54 = vadd.f32 %v871_v43, %v773_v20  ;;  %v899_v55 = vadd.f32 %v898_v27, %v897_v21 }
  0xf5   :  { %v656_v63 = vadd.f32 %v899_v55, %v607_v54 }
 0x102   :  { %v916_v26 = vpop.f32.mrf.mxu0 }
 0x104   :  { %v917_v29 = vpop.f32.mrf.mxu0  ;;  %v956_v34 = vpop.f32.mrf.mxu1 }
 0x105   :  { %v918_v33 = vadd.f32 %v917_v29, %v916_v26 }
 0x106   :  { %v919_v35 = vpop.f32.mrf.mxu0  ;;  %v742_v37 = vpop.f32.mrf.mxu1 }
 0x107   :  { %v694_v36 = vadd.f32 %v918_v33, %v645_v30 }
 0x108   :  { %v920_v40 = vpop.f32.mrf.mxu0  ;;  %v957_v46 = vpop.f32.mrf.mxu1 }
 0x109   :  { %v921_v44 = vadd.f32 %v920_v40, %v919_v35  ;;  %v743_v45 = vadd.f32 %v742_v37, %v694_v36 }
 0x10a   :  { %v922_v47 = vpop.f32.mrf.mxu0  ;;  %v745_v50 = vpop.f32.mrf.mxu1 }
 0x10b   :  { %v761_v48 = vadd.f32 %v757_v41, %v743_v45  ;;  %v697_v49 = vadd.f32 %v921_v44, %v648_v42 }
 0x10c   :  { %v923_v52 = vpop.f32.mrf.mxu0 }
 0x10d   :  { %765 = vst [vmem:[%s1300_s4] sm:$0xff] %v761_v48  ;;  %v924_v56 = vadd.f32 %v923_v52, %v922_v47  ;;  %v746_v57 = vadd.f32 %v745_v50, %v697_v49 }
 0x10e   :  { %v925_v58 = vpop.f32.mrf.mxu0 }
 0x10f   :  { %v702_v59 = vadd.f32 %v924_v56, %v653_v51  ;;  %v762_v60 = vadd.f32 %v758_v53, %v746_v57 }
 0x110   :  { %v926_v62 = vpop.f32.mrf.mxu0 }
 0x111   :  { %v751_v0 = vadd.f32 %v956_v34, %v702_v59  ;;  %766 = vst [vmem:[%s1300_s4 + $0x8] sm:$0xff] %v762_v60  ;;  %v927_v1 = vadd.f32 %v926_v62, %v925_v58 }
 0x113   :  { %v763_v2 = vadd.f32 %v759_v61, %v751_v0  ;;  %v705_v3 = vadd.f32 %v927_v1, %v656_v63 }
 0x115   :  { %767 = vst [vmem:[%s1300_s4 + $0x10] sm:$0xff] %v763_v2  ;;  %v754_v5 = vadd.f32 %v957_v46, %v705_v3 }
 0x117   :  { %v764_v6 = vadd.f32 %v760_v4, %v754_v5 }
 0x119   :  { %768 = vst [vmem:[%s1300_s4 + $0x18] sm:$0xff] %v764_v6 }

// kernel: primal_dual_straight.21
= control target key start
LH: loop header
LB: loop body
LE: loop exit
PB: predicated region body
PF: predicated region fallthrough
CT: control target
= control target key end

     0   :  { %s706_s1 = inlined_call_operand.vmem [shape: bf16[128,128], index: 1, kind: input, shape index: {}]   ;;  %s707_s0 = inlined_call_operand.vmem [shape: bf16[128,128], index: 0, kind: input, shape index: {}]   ;;  %s708_s2 = inlined_call_operand.vmem [shape: f32[1,128], index: 2, kind: input, shape index: {}]   ;;  %s709_s3 = inlined_call_operand.<no memory space> [shape: f32[1], index: 3, kind: input, shape index: {}]   ;;  %s710_s4 = inlined_call_operand.vmem [shape: bf16[128,128], index: 4, kind: output, shape index: {}]  }
   0x1   :  { %v545_v0 = vld [vmem:[%s706_s1 + $0x38] sm:$0xff]   ;;  %v546_v1 = vld [vmem:[%s706_s1 + $0x30] sm:$0xff]   ;;  %v547_v2 = vld [vmem:[%s706_s1 + $0x28] sm:$0xff]   ;;  %v642_v18 = vstv %s709_s3 }
   0x2   :  { %497 = vmatprep.subr.bf16.mxu0 %v545_v0  ;;  %529 = vmatprep.subr.bf16.mxu1 %v545_v0  ;;  %v548_v3 = vld [vmem:[%s706_s1 + $0x20] sm:$0xff]   ;;  %v549_v6 = vld [vmem:[%s706_s1 + $0x18] sm:$0xff]   ;;  %v550_v7 = vld [vmem:[%s706_s1 + $0x10] sm:$0xff]  }
   0x3   :  { %498 = vmatpush3.bf16.msra.mxu0 %v545_v0  ;;  %537 = vmatpush3.bf16.msra.mxu1 %v545_v0  ;;  %v553_v4 = vld [vmem:[%s707_s0] sm:$0xff]   ;;  %v551_v8 = vld [vmem:[%s706_s1 + $0x8] sm:$0xff]   ;;  %v557_v12 = vld [vmem:[%s707_s0 + $0x10] sm:$0xff]  }
   0x4   :  { %499 = vmatprep.subr.bf16.mxu0 %v546_v1  ;;  %530 = vmatprep.subr.bf16.mxu1 %v546_v1  ;;  %v554_v5 = vld [vmem:[%s707_s0 + $0x20] sm:$0xff]   ;;  %v555_v10 = vld [vmem:[%s707_s0 + $0x8] sm:$0xff]   ;;  %v558_v13 = vld [vmem:[%s707_s0 + $0x30] sm:$0xff]  }
   0x5   :  { %513 = vmatprep.mubr.bf16.mxu0 %v553_v4  ;;  %521 = vmatprep.mubr.bf16.mxu1 %v554_v5  ;;  %v552_v9 = vld [vmem:[%s706_s1] sm:$0xff]   ;;  %v556_v11 = vld [vmem:[%s707_s0 + $0x28] sm:$0xff]   ;;  %v559_v14 = vld [vmem:[%s707_s0 + $0x18] sm:$0xff]  }
   0x6   :  { %v560_v15 = vld [vmem:[%s707_s0 + $0x38] sm:$0xff]   ;;  %v637_v16 = vld [vmem:[%s708_s2] ss:$0 sm:$0xff] }
   0x7   :  { %500 = vmatpush3.bf16.msra.mxu0 %v546_v1  ;;  %538 = vmatpush3.bf16.msra.mxu1 %v546_v1 }
   0x8   :  { %501 = vmatprep.subr.bf16.mxu0 %v547_v2  ;;  %531 = vmatprep.subr.bf16.mxu1 %v547_v2 }
   0xb   :  { %502 = vmatpush3.bf16.msra.mxu0 %v547_v2  ;;  %539 = vmatpush3.bf16.msra.mxu1 %v547_v2 }
   0xc   :  { %503 = vmatprep.subr.bf16.mxu0 %v548_v3  ;;  %532 = vmatprep.subr.bf16.mxu1 %v548_v3 }
   0xf   :  { %504 = vmatpush3.bf16.msra.mxu0 %v548_v3  ;;  %540 = vmatpush3.bf16.msra.mxu1 %v548_v3 }
  0x10   :  { %505 = vmatprep.subr.bf16.mxu0 %v549_v6  ;;  %533 = vmatprep.subr.bf16.mxu1 %v549_v6 }
  0x13   :  { %506 = vmatpush3.bf16.msra.mxu0 %v549_v6  ;;  %541 = vmatpush3.bf16.msra.mxu1 %v549_v6 }
  0x14   :  { %507 = vmatprep.subr.bf16.mxu0 %v550_v7  ;;  %534 = vmatprep.subr.bf16.mxu1 %v550_v7 }
  0x17   :  { %508 = vmatpush3.bf16.msra.mxu0 %v550_v7  ;;  %542 = vmatpush3.bf16.msra.mxu1 %v550_v7 }
  0x18   :  { %509 = vmatprep.subr.bf16.mxu0 %v551_v8  ;;  %535 = vmatprep.subr.bf16.mxu1 %v551_v8 }
  0x1b   :  { %510 = vmatpush3.bf16.msra.mxu0 %v551_v8  ;;  %543 = vmatpush3.bf16.msra.mxu1 %v551_v8 }
  0x1c   :  { %511 = vmatprep.subr.bf16.mxu0 %v552_v9  ;;  %536 = vmatprep.subr.bf16.mxu1 %v552_v9 }
  0x1f   :  { %512 = vmatpush3.bf16.msra.mxu0 %v552_v9  ;;  %544 = vmatpush3.bf16.msra.mxu1 %v552_v9 }
  0x22   :  { %514 = vmatmul.mubr.bf16.vlgmr.msra.gmra.mxu0 %v555_v10  ;;  %522 = vmatmul.mubr.bf16.vlgmr.msra.gmra.mxu1 %v556_v11 }
  0x23   :  { %517 = vmatprep.mubr.bf16.mxu0 %v557_v12  ;;  %525 = vmatprep.mubr.bf16.mxu1 %v558_v13 }
  0x2a   :  { %518 = vmatmul.mubr.bf16.gmra.mxu0 %v559_v14  ;;  %526 = vmatmul.mubr.bf16.gmra.mxu1 %v560_v15 }
  0xe2   :  { %v515_v17 = vpop.f32.mrf.mxu0  ;;  %v523_v19 = vpop.f32.mrf.mxu1 }
  0xe3   :  { %v197_v20 = vadd.f32 %v515_v17, %v637_v16  ;;  %v229_v21 = vadd.f32 %v523_v19, %v637_v16 }
  0xe4   :  { %v188_v22 = vpop.f32.mrf.mxu0  ;;  %v220_v23 = vpop.f32.mrf.mxu1 }
  0xe5   :  { %vm254_vm0 = vcmp.ge.f32.partialorder %v197_v20, 0.0  ;;  %v271_v24 = vmul.f32 %v642_v18, %v197_v20  ;;  %vm262_vm1 = vcmp.ge.f32.partialorder %v229_v21, 0.0  ;;  %v279_v25 = vmul.f32 %v642_v18, %v229_v21 }
  0xe6   :  { %v189_v26 = vadd.f32 %v637_v16, %v188_v22  ;;  %v221_v27 = vadd.f32 %v637_v16, %v220_v23  ;;  %v516_v28 = vpop.f32.mrf.mxu0  ;;  %v524_v29 = vpop.f32.mrf.mxu1 }
  0xe7   :  { %v200_v30 = vadd.f32 %v516_v28, %v637_v16  ;;  %v232_v31 = vadd.f32 %v524_v29, %v637_v16  ;;  %v287_v32 = vsel %vm254_vm0, %v197_v20, %v271_v24  ;;  %v295_v33 = vsel %vm262_vm1, %v229_v21, %v279_v25 }
  0xe8   :  { %vm252_vm2 = vcmp.ge.f32.partialorder %v189_v26, 0.0  ;;  %v269_v34 = vmul.f32 %v642_v18, %v189_v26  ;;  %v191_v35 = vpop.f32.mrf.mxu0  ;;  %v223_v36 = vpop.f32.mrf.mxu1  ;;  %vm260_vm5 = vcmp.ge.f32.partialorder %v221_v27, 0.0  ;;  %v277_v39 = vmul.f32 %v642_v18, %v221_v27 }
  0xe9   :  { %vm255_vm3 = vcmp.ge.f32.partialorder %v200_v30, 0.0  ;;  %v272_v37 = vmul.f32 %v642_v18, %v200_v30  ;;  %vm263_vm4 = vcmp.ge.f32.partialorder %v232_v31, 0.0  ;;  %v280_v38 = vmul.f32 %v642_v18, %v232_v31 }
  0xea   :  { %v192_v40 = vadd.f32 %v637_v16, %v191_v35  ;;  %v224_v41 = vadd.f32 %v637_v16, %v223_v36  ;;  %v519_v42 = vpop.f32.mrf.mxu0  ;;  %v527_v43 = vpop.f32.mrf.mxu1  ;;  %v285_v54 = vsel %vm252_vm2, %v189_v26, %v269_v34  ;;  %v293_v59 = vsel %vm260_vm5, %v221_v27, %v277_v39 }
  0xeb   :  { %v288_v44 = vsel %vm255_vm3, %v200_v30, %v272_v37  ;;  %v296_v45 = vsel %vm263_vm4, %v232_v31, %v280_v38  ;;  %v213_v46 = vadd.f32 %v519_v42, %v637_v16  ;;  %v245_v47 = vadd.f32 %v527_v43, %v637_v16 }
  0xec   :  { %v442_v48 = vpack.c.bf16 %v288_v44, %v287_v32  ;;  %v462_v49 = vpack.c.bf16 %v296_v45, %v295_v33  ;;  %vm253_vm6 = vcmp.ge.f32.partialorder %v192_v40, 0.0  ;;  %v270_v50 = vmul.f32 %v642_v18, %v192_v40  ;;  %v204_v51 = vpop.f32.mrf.mxu0  ;;  %v236_v52 = vpop.f32.mrf.mxu1 }
  0xed   :  { %vm261_vm7 = vcmp.ge.f32.partialorder %v224_v41, 0.0  ;;  %v278_v53 = vmul.f32 %v642_v18, %v224_v41  ;;  %v205_v56 = vadd.f32 %v637_v16, %v204_v51  ;;  %v237_v62 = vadd.f32 %v637_v16, %v236_v52 }
  0xee   :  { %474 = vst [vmem:[%s710_s4 + $0x8] sm:$0xff] %v442_v48   ;;  %478 = vst [vmem:[%s710_s4 + $0x28] sm:$0xff] %v462_v49   ;;  %v286_v55 = vsel %vm253_vm6, %v192_v40, %v270_v50  ;;  %v520_v57 = vpop.f32.mrf.mxu0  ;;  %v528_v58 = vpop.f32.mrf.mxu1  ;;  %vm258_vm8 = vcmp.ge.f32.partialorder %v213_v46, 0.0  ;;  %v275_v0 = vmul.f32 %v642_v18, %v213_v46  ;;  %vm266_vm9 = vcmp.ge.f32.partialorder %v245_v47, 0.0 }
  0xef   :  { %v437_v60 = vpack.c.bf16 %v286_v55, %v285_v54  ;;  %v294_v61 = vsel %vm261_vm7, %v224_v41, %v278_v53  ;;  %v283_v3 = vmul.f32 %v642_v18, %v245_v47  ;;  %vm256_vm10 = vcmp.ge.f32.partialorder %v205_v56, 0.0 }
  0xf0   :  { %v457_v63 = vpack.c.bf16 %v294_v61, %v293_v59  ;;  %v207_v1 = vpop.f32.mrf.mxu0  ;;  %v239_v2 = vpop.f32.mrf.mxu1  ;;  %v216_v4 = vadd.f32 %v520_v57, %v637_v16  ;;  %v248_v5 = vadd.f32 %v528_v58, %v637_v16  ;;  %v273_v6 = vmul.f32 %v642_v18, %v205_v56 }
  0xf1   :  { %438 = vst [vmem:[%s710_s4] sm:$0xff] %v437_v60   ;;  %vm264_vm11 = vcmp.ge.f32.partialorder %v237_v62, 0.0  ;;  %v208_v7 = vadd.f32 %v637_v16, %v207_v1  ;;  %v240_v8 = vadd.f32 %v637_v16, %v239_v2  ;;  %v281_v9 = vmul.f32 %v642_v18, %v237_v62 }
  0xf2   :  { %477 = vst [vmem:[%s710_s4 + $0x20] sm:$0xff] %v457_v63   ;;  %vm259_vm12 = vcmp.ge.f32.partialorder %v216_v4, 0.0  ;;  %v276_v10 = vmul.f32 %v642_v18, %v216_v4  ;;  %vm267_vm13 = vcmp.ge.f32.partialorder %v248_v5, 0.0  ;;  %v284_v11 = vmul.f32 %v642_v18, %v248_v5 }
  0xf3   :  { %vm257_vm14 = vcmp.ge.f32.partialorder %v208_v7, 0.0  ;;  %v274_v12 = vmul.f32 %v642_v18, %v208_v7  ;;  %vm265_vm15 = vcmp.ge.f32.partialorder %v240_v8, 0.0  ;;  %v291_v13 = vsel %vm258_vm8, %v213_v46, %v275_v0 }
  0xf4   :  { %v299_v14 = vsel %vm266_vm9, %v245_v47, %v283_v3  ;;  %v292_v15 = vsel %vm259_vm12, %v216_v4, %v276_v10  ;;  %v282_v17 = vmul.f32 %v642_v18, %v240_v8  ;;  %v289_v16 = vsel %vm256_vm10, %v205_v56, %v273_v6 }
  0xf5   :  { %v452_v19 = vpack.c.bf16 %v292_v15, %v291_v13  ;;  %v300_v20 = vsel %vm267_vm13, %v248_v5, %v284_v11  ;;  %v290_v21 = vsel %vm257_vm14, %v208_v7, %v274_v12  ;;  %v297_v22 = vsel %vm264_vm11, %v237_v62, %v281_v9 }
  0xf6   :  { %v472_v23 = vpack.c.bf16 %v300_v20, %v299_v14  ;;  %v447_v24 = vpack.c.bf16 %v290_v21, %v289_v16  ;;  %v298_v25 = vsel %vm265_vm15, %v240_v8, %v282_v17 }
  0xf7   :  { %476 = vst [vmem:[%s710_s4 + $0x18] sm:$0xff] %v452_v19   ;;  %v467_v26 = vpack.c.bf16 %v298_v25, %v297_v22 }
  0xf8   :  { %480 = vst [vmem:[%s710_s4 + $0x38] sm:$0xff] %v472_v23   ;;  %475 = vst [vmem:[%s710_s4 + $0x10] sm:$0xff] %v447_v24  }
  0xf9   :  { %479 = vst [vmem:[%s710_s4 + $0x30] sm:$0xff] %v467_v26  }

// kernel: primal_dual_straight.22
= control target key start
LH: loop header
LB: loop body
LE: loop exit
PB: predicated region body
PF: predicated region fallthrough
CT: control target
= control target key end

     0   :  { %s2463_s1 = inlined_call_operand.vmem [shape: bf16[896,128], index: 1, kind: input, shape index: {}]   ;;  %s2464_s0 = inlined_call_operand.vmem [shape: bf16[128,896], index: 0, kind: input, shape index: {}]   ;;  %s2465_s2 = inlined_call_operand.vmem [shape: f32[1,128], index: 2, kind: input, shape index: {}]   ;;  %s2466_s3 = inlined_call_operand.<no memory space> [shape: f32[1], index: 3, kind: input, shape index: {}]   ;;  %s2467_s4 = inlined_call_operand.vmem [shape: bf16[128,128], index: 4, kind: output, shape index: {}]  }
   0x1   :  { %v1780_v0 = vld [vmem:[%s2463_s1 + $0x78] sm:$0xff]   ;;  %v1784_v4 = vld [vmem:[%s2463_s1 + $0x70] sm:$0xff]   ;;  %v1788_v8 = vld [vmem:[%s2463_s1 + $0x68] sm:$0xff]  }
   0x2   :  { %v1781_v1 = vld [vmem:[%s2463_s1 + $0x38] sm:$0xff]   ;;  %1540 = vmatprep.subr.bf16.mxu0 %v1780_v0  ;;  %v1785_v5 = vld [vmem:[%s2463_s1 + $0x30] sm:$0xff]   ;;  %v1789_v9 = vld [vmem:[%s2463_s1 + $0x28] sm:$0xff]  }
   0x3   :  { %v1782_v2 = vld [vmem:[%s2463_s1 + $0xf8] sm:$0xff]   ;;  %1541 = vmatpush3.bf16.msra.mxu0 %v1781_v1  ;;  %v1786_v6 = vld [vmem:[%s2463_s1 + $0xf0] sm:$0xff]   ;;  %v1790_v10 = vld [vmem:[%s2463_s1 + $0xe8] sm:$0xff]  }
   0x4   :  { %v1783_v3 = vld [vmem:[%s2463_s1 + $0xb8] sm:$0xff]   ;;  %1604 = vmatprep.subr.bf16.mxu1 %v1782_v2  ;;  %1542 = vmatprep.subr.bf16.mxu0 %v1784_v4  ;;  %v1787_v7 = vld [vmem:[%s2463_s1 + $0xb0] sm:$0xff]   ;;  %v1791_v11 = vld [vmem:[%s2463_s1 + $0xa8] sm:$0xff]  }
   0x5   :  { %1605 = vmatpush3.bf16.msra.mxu1 %v1783_v3  ;;  %v1792_v12 = vld [vmem:[%s2463_s1 + $0x60] sm:$0xff]   ;;  %v1796_v16 = vld [vmem:[%s2463_s1 + $0x58] sm:$0xff]   ;;  %v1800_v20 = vld [vmem:[%s2463_s1 + $0x50] sm:$0xff]  }
   0x6   :  { %1606 = vmatprep.subr.bf16.mxu1 %v1786_v6  ;;  %v1793_v13 = vld [vmem:[%s2463_s1 + $0x20] sm:$0xff]   ;;  %v1797_v17 = vld [vmem:[%s2463_s1 + $0x18] sm:$0xff]   ;;  %v1801_v21 = vld [vmem:[%s2463_s1 + $0x10] sm:$0xff]  }
   0x7   :  { %1543 = vmatpush3.bf16.msra.mxu0 %v1785_v5  ;;  %v1794_v14 = vld [vmem:[%s2463_s1 + $0xe0] sm:$0xff]   ;;  %v1798_v18 = vld [vmem:[%s2463_s1 + $0xd8] sm:$0xff]   ;;  %v1802_v22 = vld [vmem:[%s2463_s1 + $0xd0] sm:$0xff]  }
   0x8   :  { %1544 = vmatprep.subr.bf16.mxu0 %v1788_v8  ;;  %v1795_v15 = vld [vmem:[%s2463_s1 + $0xa0] sm:$0xff]   ;;  %v1799_v19 = vld [vmem:[%s2463_s1 + $0x98] sm:$0xff]   ;;  %v1803_v23 = vld [vmem:[%s2463_s1 + $0x90] sm:$0xff]  }
   0x9   :  { %1607 = vmatpush3.bf16.msra.mxu1 %v1787_v7  ;;  %v1804_v24 = vld [vmem:[%s2463_s1 + $0x48] sm:$0xff]   ;;  %v1808_v28 = vld [vmem:[%s2463_s1 + $0x40] sm:$0xff]   ;;  %v1815_v34 = vld [vmem:[%s2463_s1 + $0x178] sm:$0xff]  }
   0xa   :  { %1608 = vmatprep.subr.bf16.mxu1 %v1790_v10  ;;  %v1805_v25 = vld [vmem:[%s2463_s1 + $0x8] sm:$0xff]   ;;  %v1809_v29 = vld [vmem:[%s2463_s1] sm:$0xff]   ;;  %v1819_v37 = vld [vmem:[%s2463_s1 + $0x138] sm:$0xff]  }
   0xb   :  { %1545 = vmatpush3.bf16.msra.mxu0 %v1789_v9  ;;  %v1806_v26 = vld [vmem:[%s2463_s1 + $0xc8] sm:$0xff]   ;;  %v1810_v30 = vld [vmem:[%s2463_s1 + $0xc0] sm:$0xff]   ;;  %v1820_v38 = vld [vmem:[%s2464_s0 + $0x3c] ss:$28 sps:$4 sm:$0xff]  }
   0xc   :  { %1546 = vmatprep.subr.bf16.mxu0 %v1792_v12  ;;  %v1807_v27 = vld [vmem:[%s2463_s1 + $0x88] sm:$0xff]   ;;  %v1811_v31 = vld [vmem:[%s2464_s0] ss:$28 sps:$4 sm:$0xff]   ;;  %v1822_v39 = vld [vmem:[%s2464_s0 + $0x38] ss:$28 sps:$4 sm:$0xff]  }
   0xd   :  { %1609 = vmatpush3.bf16.msra.mxu1 %v1791_v11  ;;  %v1813_v32 = vld [vmem:[%s2464_s0 + $0x4] ss:$28 sps:$4 sm:$0xff]   ;;  %v1818_v36 = vld [vmem:[%s2464_s0 + $0xc] ss:$28 sps:$4 sm:$0xff]   ;;  %v1823_v40 = vld [vmem:[%s2463_s1 + $0x170] sm:$0xff]  }
   0xe   :  { %1610 = vmatprep.subr.bf16.mxu1 %v1794_v14  ;;  %v1814_v33 = vld [vmem:[%s2463_s1 + $0x80] sm:$0xff]   ;;  %858 = vmatprep.mubr.bf16.mxu0 %v1813_v32  ;;  %v1826_v42 = vld [vmem:[%s2463_s1 + $0x130] sm:$0xff]   ;;  %v1831_v45 = vld [vmem:[%s2463_s1 + $0x168] sm:$0xff]  }
   0xf   :  { %1547 = vmatpush3.bf16.msra.mxu0 %v1793_v13  ;;  %v1816_v35 = vld [vmem:[%s2464_s0 + $0x8] ss:$28 sps:$4 sm:$0xff]   ;;  %955 = vmatprep.mubr.bf16.mxu1 %v1818_v36  ;;  %v1827_v43 = vld [vmem:[%s2464_s0 + $0x40] ss:$28 sps:$4 sm:$0xff]   ;;  %v1828_v44 = vld [vmem:[%s2464_s0 + $0x74] ss:$28 sps:$4 sm:$0xff]  }
  0x10   :  { %1548 = vmatprep.subr.bf16.mxu0 %v1796_v16  ;;  %v1824_v41 = vld [vmem:[%s2464_s0 + $0x44] ss:$28 sps:$4 sm:$0xff]   ;;  %v1832_v46 = vld [vmem:[%s2464_s0 + $0x7c] ss:$28 sps:$4 sm:$0xff]   ;;  %v1834_v47 = vld [vmem:[%s2463_s1 + $0x128] sm:$0xff]  }
  0x11   :  { %1611 = vmatpush3.bf16.msra.mxu1 %v1795_v15  ;;  %v1830_v48 = vld [vmem:[%s2464_s0 + $0x70] ss:$28 sps:$4 sm:$0xff]   ;;  %v1839_v50 = vld [vmem:[%s2463_s1 + $0x160] sm:$0xff]   ;;  %v1835_v51 = vld [vmem:[%s2464_s0 + $0x78] ss:$28 sps:$4 sm:$0xff]  }
  0x12   :  { %1612 = vmatprep.subr.bf16.mxu1 %v1798_v18  ;;  %v1836_v49 = vld [vmem:[%s2464_s0 + $0xac] ss:$28 sps:$4 sm:$0xff]   ;;  %v1842_v52 = vld [vmem:[%s2463_s1 + $0x120] sm:$0xff]   ;;  %v1840_v53 = vld [vmem:[%s2464_s0 + $0xb4] ss:$28 sps:$4 sm:$0xff]  }
  0x13   :  { %1549 = vmatpush3.bf16.msra.mxu0 %v1797_v17  ;;  %v1847_v54 = vld [vmem:[%s2463_s1 + $0x158] sm:$0xff]   ;;  %v1838_v55 = vld [vmem:[%s2464_s0 + $0xa8] ss:$28 sps:$4 sm:$0xff]   ;;  %v1843_v59 = vld [vmem:[%s2464_s0 + $0xb0] ss:$28 sps:$4 sm:$0xff]  }
  0x14   :  { %1550 = vmatprep.subr.bf16.mxu0 %v1800_v20  ;;  %v1850_v56 = vld [vmem:[%s2463_s1 + $0x118] sm:$0xff]   ;;  %v1844_v57 = vld [vmem:[%s2464_s0 + $0xe4] ss:$28 sps:$4 sm:$0xff]   ;;  %v1848_v60 = vld [vmem:[%s2464_s0 + $0xec] ss:$28 sps:$4 sm:$0xff]  }
  0x15   :  { %1613 = vmatpush3.bf16.msra.mxu1 %v1799_v19  ;;  %v1852_v58 = vld [vmem:[%s2463_s1 + $0x1b8] sm:$0xff]   ;;  %v1856_v61 = vld [vmem:[%s2463_s1 + $0x150] sm:$0xff]   ;;  %v1862_v0 = vld [vmem:[%s2463_s1 + $0x1a8] sm:$0xff]  }
  0x16   :  { %1614 = vmatprep.subr.bf16.mxu1 %v1802_v22  ;;  %v1857_v62 = vld [vmem:[%s2463_s1 + $0x1b0] sm:$0xff]   ;;  %v1846_v1 = vld [vmem:[%s2464_s0 + $0xe0] ss:$28 sps:$4 sm:$0xff]   ;;  %v1851_v2 = vld [vmem:[%s2464_s0 + $0xe8] ss:$28 sps:$4 sm:$0xff]  }
  0x17   :  { %1551 = vmatpush3.bf16.msra.mxu0 %v1801_v21  ;;  %v1860_v63 = vld [vmem:[%s2463_s1 + $0x110] sm:$0xff]   ;;  %v1853_v3 = vld [vmem:[%s2464_s0 + $0x11c] ss:$28 sps:$4 sm:$0xff]   ;;  %v1866_v4 = vld [vmem:[%s2463_s1 + $0x148] sm:$0xff]  }
  0x18   :  { %1552 = vmatprep.subr.bf16.mxu0 %v1804_v24  ;;  %v1867_v5 = vld [vmem:[%s2463_s1 + $0x1a0] sm:$0xff]   ;;  %v1870_v7 = vld [vmem:[%s2463_s1 + $0x108] sm:$0xff]   ;;  %v1872_v8 = vld [vmem:[%s2463_s1 + $0x198] sm:$0xff]  }
  0x19   :  { %1615 = vmatpush3.bf16.msra.mxu1 %v1803_v23  ;;  %v1858_v6 = vld [vmem:[%s2464_s0 + $0x124] ss:$28 sps:$4 sm:$0xff]   ;;  %v1855_v9 = vld [vmem:[%s2464_s0 + $0x118] ss:$28 sps:$4 sm:$0xff]   ;;  %v1882_v16 = vld [vmem:[%s2463_s1 + $0x188] sm:$0xff]  }
  0x1a   :  { %1616 = vmatprep.subr.bf16.mxu1 %v1806_v26  ;;  %v1876_v10 = vld [vmem:[%s2463_s1 + $0x140] sm:$0xff]   ;;  %v1863_v12 = vld [vmem:[%s2464_s0 + $0x154] ss:$28 sps:$4 sm:$0xff]   ;;  %v1868_v15 = vld [vmem:[%s2464_s0 + $0x15c] ss:$28 sps:$4 sm:$0xff]  }
  0x1b   :  { %1553 = vmatpush3.bf16.msra.mxu0 %v1805_v25  ;;  %v1861_v11 = vld [vmem:[%s2464_s0 + $0x120] ss:$28 sps:$4 sm:$0xff]   ;;  %v1877_v13 = vld [vmem:[%s2463_s1 + $0x190] sm:$0xff]   ;;  %v1873_v18 = vld [vmem:[%s2464_s0 + $0x18c] ss:$28 sps:$4 sm:$0xff]  }
  0x1c   :  { %1554 = vmatprep.subr.bf16.mxu0 %v1808_v28  ;;  %v1880_v14 = vld [vmem:[%s2463_s1 + $0x100] sm:$0xff]   ;;  %v1865_v17 = vld [vmem:[%s2464_s0 + $0x150] ss:$28 sps:$4 sm:$0xff]   ;;  %v1871_v20 = vld [vmem:[%s2464_s0 + $0x158] ss:$28 sps:$4 sm:$0xff]  }
  0x1d   :  { %1617 = vmatpush3.bf16.msra.mxu1 %v1807_v27  ;;  %v1886_v19 = vld [vmem:[%s2463_s1 + $0x180] sm:$0xff]   ;;  %v1878_v21 = vld [vmem:[%s2464_s0 + $0x194] ss:$28 sps:$4 sm:$0xff]   ;;  %v1889_v27 = vld [vmem:[%s2464_s0 + $0x4c] ss:$28 sps:$4 sm:$0xff]  }
  0x1e   :  { %1618 = vmatprep.subr.bf16.mxu1 %v1810_v30  ;;  %v1875_v22 = vld [vmem:[%s2464_s0 + $0x188] ss:$28 sps:$4 sm:$0xff]   ;;  %v1885_v23 = vld [vmem:[%s2464_s0 + $0x14] ss:$28 sps:$4 sm:$0xff]   ;;  %v1896_v32 = vld [vmem:[%s2464_s0 + $0xc0] ss:$28 sps:$4 sm:$0xff]  }
  0x1f   :  { %1555 = vmatpush3.bf16.msra.mxu0 %v1809_v29  ;;  %v1881_v24 = vld [vmem:[%s2464_s0 + $0x190] ss:$28 sps:$4 sm:$0xff]   ;;  %v1887_v25 = vld [vmem:[%s2464_s0 + $0x18] ss:$28 sps:$4 sm:$0xff]   ;;  %v1895_v29 = vld [vmem:[%s2464_s0 + $0x88] ss:$28 sps:$4 sm:$0xff]  }
  0x20   :  { %1668 = vmatprep.subr.bf16.mxu0 %v1815_v34  ;;  %v1883_v26 = vld [vmem:[%s2464_s0 + $0x10] ss:$28 sps:$4 sm:$0xff]   ;;  %v1891_v30 = vld [vmem:[%s2464_s0 + $0x48] ss:$28 sps:$4 sm:$0xff]   ;;  %v1894_v34 = vld [vmem:[%s2464_s0 + $0x80] ss:$28 sps:$4 sm:$0xff]  }
  0x21   :  { %1619 = vmatpush3.bf16.msra.mxu1 %v1814_v33  ;;  %v1888_v28 = vld [vmem:[%s2464_s0 + $0x50] ss:$28 sps:$4 sm:$0xff]   ;;  %v1903_v33 = vld [vmem:[%s2464_s0 + $0xf8] ss:$28 sps:$4 sm:$0xff]  }
  0x22   :  { %859 = vmatmul.mubr.bf16.vlgmr.msra.gmra.mxu0 %v1811_v31  ;;  %1748 = vmatprep.subr.bf16.mxu1 %v1852_v58  ;;  %v1892_v31 = vld [vmem:[%s2464_s0 + $0x84] ss:$28 sps:$4 sm:$0xff]   ;;  %v1904_v36 = vld [vmem:[%s2464_s0 + $0x130] ss:$28 sps:$4 sm:$0xff]  }
  0x23   :  { %1669 = vmatpush3.bf16.msra.mxu0 %v1819_v37  ;;  %866 = vmatprep.mubr.bf16.mxu0 %v1820_v38  ;;  %v1911_v37 = vld [vmem:[%s2464_s0 + $0x168] ss:$28 sps:$4 sm:$0xff]   ;;  %v1899_v38 = vld [vmem:[%s2464_s0 + $0xb8] ss:$28 sps:$4 sm:$0xff]  }
  0x24   :  { %956 = vmatmul.mubr.bf16.vlgmr.msra.gmra.mxu1 %v1816_v35  ;;  %1670 = vmatprep.subr.bf16.mxu0 %v1823_v40  ;;  %v1897_v35 = vld [vmem:[%s2464_s0 + $0xbc] ss:$28 sps:$4 sm:$0xff]  }
  0x25   :  { %963 = vmatprep.mubr.bf16.mxu1 %v1824_v41  ;;  %1749 = vmatpush3.bf16.msra.mxu1 %v1852_v58  ;;  %v1912_v40 = vld [vmem:[%s2464_s0 + $0x1a0] ss:$28 sps:$4 sm:$0xff]   ;;  %v1902_v41 = vld [vmem:[%s2464_s0 + $0xf0] ss:$28 sps:$4 sm:$0xff]  }
  0x26   :  { %1750 = vmatprep.subr.bf16.mxu1 %v1857_v62 }
  0x27   :  { %1671 = vmatpush3.bf16.msra.mxu0 %v1826_v42  ;;  %v1905_v42 = vld [vmem:[%s2464_s0 + $0x12c] ss:$28 sps:$4 sm:$0xff]  }
  0x28   :  { %1672 = vmatprep.subr.bf16.mxu0 %v1831_v45  ;;  %v1910_v45 = vld [vmem:[%s2464_s0 + $0x160] ss:$28 sps:$4 sm:$0xff]  }
  0x29   :  { %1751 = vmatpush3.bf16.msra.mxu1 %v1857_v62 }
  0x2a   :  { %867 = vmatmul.mubr.bf16.gmra.mxu0 %v1822_v39  ;;  %1752 = vmatprep.subr.bf16.mxu1 %v1862_v0  ;;  %v1900_v39 = vld [vmem:[%s2464_s0 + $0xf4] ss:$28 sps:$4 sm:$0xff]  }
  0x2b   :  { %874 = vmatprep.mubr.bf16.mxu0 %v1828_v44  ;;  %1673 = vmatpush3.bf16.msra.mxu0 %v1834_v47  ;;  %v1908_v44 = vld [vmem:[%s2464_s0 + $0x164] ss:$28 sps:$4 sm:$0xff]   ;;  %v1915_v47 = vld [vmem:[%s2464_s0 + $0x198] ss:$28 sps:$4 sm:$0xff]  }
  0x2c   :  { %964 = vmatmul.mubr.bf16.gmra.mxu1 %v1827_v43  ;;  %1674 = vmatprep.subr.bf16.mxu0 %v1839_v50  ;;  %v1907_v43 = vld [vmem:[%s2464_s0 + $0x128] ss:$28 sps:$4 sm:$0xff]  }
  0x2d   :  { %971 = vmatprep.mubr.bf16.mxu1 %v1832_v46  ;;  %1753 = vmatpush3.bf16.msra.mxu1 %v1862_v0  ;;  %v1913_v46 = vld [vmem:[%s2464_s0 + $0x19c] ss:$28 sps:$4 sm:$0xff]  }
  0x2e   :  { %1754 = vmatprep.subr.bf16.mxu1 %v1867_v5 }
  0x2f   :  { %1675 = vmatpush3.bf16.msra.mxu0 %v1842_v52 }
  0x30   :  { %1676 = vmatprep.subr.bf16.mxu0 %v1847_v54 }
  0x31   :  { %1755 = vmatpush3.bf16.msra.mxu1 %v1867_v5 }
  0x32   :  { %875 = vmatmul.mubr.bf16.gmra.mxu0 %v1830_v48  ;;  %1756 = vmatprep.subr.bf16.mxu1 %v1872_v8 }
  0x33   :  { %882 = vmatprep.mubr.bf16.mxu0 %v1836_v49  ;;  %1677 = vmatpush3.bf16.msra.mxu0 %v1850_v56  ;;  %v2280_v49 = vld [vmem:[%s2465_s2] ss:$0 sm:$0xff] }
  0x34   :  { %972 = vmatmul.mubr.bf16.gmra.mxu1 %v1835_v51  ;;  %1678 = vmatprep.subr.bf16.mxu0 %v1856_v61 }
  0x35   :  { %979 = vmatprep.mubr.bf16.mxu1 %v1840_v53  ;;  %1757 = vmatpush3.bf16.msra.mxu1 %v1872_v8 }
  0x36   :  { %1758 = vmatprep.subr.bf16.mxu1 %v1877_v13 }
  0x37   :  { %1679 = vmatpush3.bf16.msra.mxu0 %v1860_v63 }
  0x38   :  { %1680 = vmatprep.subr.bf16.mxu0 %v1866_v4 }
  0x39   :  { %1759 = vmatpush3.bf16.msra.mxu1 %v1877_v13 }
  0x3a   :  { %883 = vmatmul.mubr.bf16.gmra.mxu0 %v1838_v55  ;;  %1760 = vmatprep.subr.bf16.mxu1 %v1882_v16 }
  0x3b   :  { %890 = vmatprep.mubr.bf16.mxu0 %v1844_v57  ;;  %1681 = vmatpush3.bf16.msra.mxu0 %v1870_v7 }
  0x3c   :  { %980 = vmatmul.mubr.bf16.gmra.mxu1 %v1843_v59  ;;  %1682 = vmatprep.subr.bf16.mxu0 %v1876_v10 }
  0x3d   :  { %987 = vmatprep.mubr.bf16.mxu1 %v1848_v60  ;;  %1761 = vmatpush3.bf16.msra.mxu1 %v1882_v16 }
  0x3e   :  { %1762 = vmatprep.subr.bf16.mxu1 %v1886_v19 }
  0x3f   :  { %1683 = vmatpush3.bf16.msra.mxu0 %v1880_v14 }
  0x41   :  { %1763 = vmatpush3.bf16.msra.mxu1 %v1886_v19 }
  0x42   :  { %891 = vmatmul.mubr.bf16.gmra.mxu0 %v1846_v1 }
  0x43   :  { %898 = vmatprep.mubr.bf16.mxu0 %v1853_v3 }
  0x44   :  { %988 = vmatmul.mubr.bf16.gmra.mxu1 %v1851_v2 }
  0x45   :  { %995 = vmatprep.mubr.bf16.mxu1 %v1858_v6 }
  0x4a   :  { %899 = vmatmul.mubr.bf16.gmra.mxu0 %v1855_v9 }
  0x4b   :  { %906 = vmatprep.mubr.bf16.mxu0 %v1863_v12 }
  0x4c   :  { %996 = vmatmul.mubr.bf16.gmra.mxu1 %v1861_v11 }
  0x4d   :  { %1003 = vmatprep.mubr.bf16.mxu1 %v1868_v15 }
  0x52   :  { %907 = vmatmul.mubr.bf16.gmra.mxu0 %v1865_v17 }
  0x53   :  { %914 = vmatprep.mubr.bf16.mxu0 %v1873_v18 }
  0x54   :  { %1004 = vmatmul.mubr.bf16.gmra.mxu1 %v1871_v20 }
  0x55   :  { %1011 = vmatprep.mubr.bf16.mxu1 %v1878_v21 }
  0x5a   :  { %915 = vmatmul.mubr.bf16.gmra.mxu0 %v1875_v22 }
  0x5b   :  { %1052 = vmatprep.mubr.bf16.mxu0 %v1885_v23 }
  0x5c   :  { %1012 = vmatmul.mubr.bf16.gmra.mxu1 %v1881_v24 }
  0x5d   :  { %1764 = vmatprep.mubr.bf16.mxu1 %v1887_v25 }
  0x62   :  { %1053 = vmatmul.mubr.bf16.vlgmr.msra.gmra.mxu0 %v1883_v26 }
  0x63   :  { %1060 = vmatprep.mubr.bf16.mxu0 %v1889_v27 }
  0x64   :  { %1765 = vmatmul.mubr.bf16.vlgmr.msra.gmra.mxu1 %v1888_v28 }
  0x65   :  { %1768 = vmatprep.mubr.bf16.mxu1 %v1895_v29 }
  0x6a   :  { %1061 = vmatmul.mubr.bf16.gmra.mxu0 %v1891_v30 }
  0x6b   :  { %1068 = vmatprep.mubr.bf16.mxu0 %v1892_v31 }
  0x6c   :  { %1769 = vmatmul.mubr.bf16.gmra.mxu1 %v1896_v32 }
  0x6d   :  { %1772 = vmatprep.mubr.bf16.mxu1 %v1903_v33 }
  0x72   :  { %1069 = vmatmul.mubr.bf16.gmra.mxu0 %v1894_v34 }
  0x73   :  { %1076 = vmatprep.mubr.bf16.mxu0 %v1897_v35 }
  0x74   :  { %1773 = vmatmul.mubr.bf16.gmra.mxu1 %v1904_v36 }
  0x75   :  { %1776 = vmatprep.mubr.bf16.mxu1 %v1911_v37 }
  0x7a   :  { %1077 = vmatmul.mubr.bf16.gmra.mxu0 %v1899_v38 }
  0x7b   :  { %1084 = vmatprep.mubr.bf16.mxu0 %v1900_v39 }
  0x7c   :  { %1777 = vmatmul.mubr.bf16.gmra.mxu1 %v1912_v40 }
  0x82   :  { %1085 = vmatmul.mubr.bf16.gmra.mxu0 %v1902_v41 }
  0x83   :  { %1092 = vmatprep.mubr.bf16.mxu0 %v1905_v42 }
  0x8a   :  { %1093 = vmatmul.mubr.bf16.gmra.mxu0 %v1907_v43 }
  0x8b   :  { %1100 = vmatprep.mubr.bf16.mxu0 %v1908_v44 }
  0x92   :  { %1101 = vmatmul.mubr.bf16.gmra.mxu0 %v1910_v45 }
  0x93   :  { %1108 = vmatprep.mubr.bf16.mxu0 %v1913_v46 }
  0x9a   :  { %1109 = vmatmul.mubr.bf16.gmra.mxu0 %v1915_v47 }
  0xe2   :  { %v1556_v48 = vpop.f32.mrf.mxu0 }
  0xe4   :  { %v1557_v50 = vpop.f32.mrf.mxu0  ;;  %v1620_v52 = vpop.f32.mrf.mxu1 }
  0xe5   :  { %v1558_v51 = vadd.f32 %v1557_v50, %v1556_v48 }
  0xe6   :  { %v2282_v53 = vpop.f32.mrf.mxu0  ;;  %v1621_v55 = vpop.f32.mrf.mxu1 }
  0xe7   :  { %v861_v54 = vadd.f32 %v1558_v51, %v2280_v49  ;;  %v1622_v56 = vadd.f32 %v1621_v55, %v1620_v52 }
  0xe8   :  { %v2285_v57 = vpop.f32.mrf.mxu0  ;;  %v2287_v58 = vpop.f32.mrf.mxu1 }
  0xe9   :  { %v2289_v59 = vadd.f32 %v1622_v56, %v861_v54 }
  0xea   :  { %v1562_v60 = vpop.f32.mrf.mxu0  ;;  %v2291_v61 = vpop.f32.mrf.mxu1 }
  0xec   :  { %v1563_v62 = vpop.f32.mrf.mxu0  ;;  %v1626_v0 = vpop.f32.mrf.mxu1 }
  0xed   :  { %v1564_v63 = vadd.f32 %v1563_v62, %v1562_v60 }
  0xee   :  { %v2293_v1 = vpop.f32.mrf.mxu0  ;;  %v1627_v3 = vpop.f32.mrf.mxu1 }
  0xef   :  { %v869_v2 = vadd.f32 %v1564_v63, %v2280_v49  ;;  %v1628_v4 = vadd.f32 %v1627_v3, %v1626_v0 }
  0xf0   :  { %v2296_v5 = vpop.f32.mrf.mxu0  ;;  %v2298_v6 = vpop.f32.mrf.mxu1 }
  0xf1   :  { %v2300_v7 = vadd.f32 %v1628_v4, %v869_v2 }
  0xf2   :  { %v1568_v8 = vpop.f32.mrf.mxu0  ;;  %v2302_v9 = vpop.f32.mrf.mxu1 }
  0xf4   :  { %v1569_v10 = vpop.f32.mrf.mxu0  ;;  %v1632_v12 = vpop.f32.mrf.mxu1 }
  0xf5   :  { %v1570_v11 = vadd.f32 %v1569_v10, %v1568_v8 }
  0xf6   :  { %v2304_v13 = vpop.f32.mrf.mxu0  ;;  %v1633_v15 = vpop.f32.mrf.mxu1 }
  0xf7   :  { %v877_v14 = vadd.f32 %v1570_v11, %v2280_v49  ;;  %v1634_v16 = vadd.f32 %v1633_v15, %v1632_v12 }
  0xf8   :  { %v2307_v17 = vpop.f32.mrf.mxu0  ;;  %v2309_v18 = vpop.f32.mrf.mxu1 }
  0xf9   :  { %v2311_v19 = vadd.f32 %v1634_v16, %v877_v14 }
  0xfa   :  { %v1574_v20 = vpop.f32.mrf.mxu0  ;;  %v2313_v21 = vpop.f32.mrf.mxu1 }
  0xfc   :  { %v1575_v22 = vpop.f32.mrf.mxu0  ;;  %v1638_v24 = vpop.f32.mrf.mxu1 }
  0xfd   :  { %v1576_v23 = vadd.f32 %v1575_v22, %v1574_v20 }
  0xfe   :  { %v2315_v25 = vpop.f32.mrf.mxu0  ;;  %v1639_v27 = vpop.f32.mrf.mxu1 }
  0xff   :  { %v885_v26 = vadd.f32 %v1576_v23, %v2280_v49  ;;  %v1640_v28 = vadd.f32 %v1639_v27, %v1638_v24 }
 0x100   :  { %v2318_v29 = vpop.f32.mrf.mxu0  ;;  %v2320_v30 = vpop.f32.mrf.mxu1 }
 0x101   :  { %v2322_v31 = vadd.f32 %v1640_v28, %v885_v26 }
 0x102   :  { %v1580_v32 = vpop.f32.mrf.mxu0  ;;  %v2324_v33 = vpop.f32.mrf.mxu1 }
 0x104   :  { %v1581_v34 = vpop.f32.mrf.mxu0  ;;  %v1644_v36 = vpop.f32.mrf.mxu1 }
 0x105   :  { %v1582_v35 = vadd.f32 %v1581_v34, %v1580_v32 }
 0x106   :  { %v2326_v37 = vpop.f32.mrf.mxu0  ;;  %v1645_v39 = vpop.f32.mrf.mxu1 }
 0x107   :  { %v893_v38 = vadd.f32 %v1582_v35, %v2280_v49  ;;  %v1646_v40 = vadd.f32 %v1645_v39, %v1644_v36  ;;  %v1561_v35 = vadd.f32 %v2285_v57, %v2282_v53  ;;  %v1567_v53 = vadd.f32 %v2296_v5, %v2293_v1 }
 0x108   :  { %v2329_v41 = vpop.f32.mrf.mxu0  ;;  %v2331_v42 = vpop.f32.mrf.mxu1 }
 0x109   :  { %v2333_v43 = vadd.f32 %v1646_v40, %v893_v38 }
 0x10a   :  { %v1586_v44 = vpop.f32.mrf.mxu0  ;;  %v2335_v45 = vpop.f32.mrf.mxu1 }
 0x10c   :  { %v1587_v46 = vpop.f32.mrf.mxu0  ;;  %v1650_v48 = vpop.f32.mrf.mxu1 }
 0x10d   :  { %v1588_v47 = vadd.f32 %v1587_v46, %v1586_v44  ;;  %v864_v46 = vadd.f32 %v1561_v35, %v2280_v49 }
 0x10e   :  { %v2337_v50 = vpop.f32.mrf.mxu0  ;;  %v1651_v52 = vpop.f32.mrf.mxu1 }
 0x10f   :  { %v901_v51 = vadd.f32 %v1588_v47, %v2280_v49  ;;  %v1652_v54 = vadd.f32 %v1651_v52, %v1650_v48  ;;  %v1625_v47 = vadd.f32 %v2291_v61, %v2287_v58 }
 0x110   :  { %v2340_v55 = vpop.f32.mrf.mxu0  ;;  %v2342_v56 = vpop.f32.mrf.mxu1 }
 0x111   :  { %v2344_v60 = vadd.f32 %v1652_v54, %v901_v51 }
 0x112   :  { %v1592_v62 = vpop.f32.mrf.mxu0  ;;  %v2346_v63 = vpop.f32.mrf.mxu1 }
 0x114   :  { %v1593_v0 = vpop.f32.mrf.mxu0  ;;  %v1656_v3 = vpop.f32.mrf.mxu1 }
 0x115   :  { %v1594_v2 = vadd.f32 %v1593_v0, %v1592_v62  ;;  %v961_v0 = vadd.f32 %v1625_v47, %v864_v46 }
 0x116   :  { %v2348_v4 = vpop.f32.mrf.mxu0  ;;  %v1657_v10 = vpop.f32.mrf.mxu1 }
 0x117   :  { %v909_v8 = vadd.f32 %v1594_v2, %v2280_v49  ;;  %v1658_v11 = vadd.f32 %v1657_v10, %v1656_v3  ;;  %v2381_v10 = vstv %s2466_s3 }
 0x118   :  { %v2351_v12 = vpop.f32.mrf.mxu0  ;;  %v2353_v14 = vpop.f32.mrf.mxu1 }
 0x119   :  { %v2355_v15 = vadd.f32 %v1658_v11, %v909_v8 }
 0x11a   :  { %v1598_v16 = vpop.f32.mrf.mxu0  ;;  %v2357_v20 = vpop.f32.mrf.mxu1 }
 0x11c   :  { %v1599_v22 = vpop.f32.mrf.mxu0  ;;  %v1662_v24 = vpop.f32.mrf.mxu1 }
 0x11d   :  { %v1600_v23 = vadd.f32 %v1599_v22, %v1598_v16  ;;  %v872_v16 = vadd.f32 %v1567_v53, %v2280_v49 }
 0x11e   :  { %v2359_v26 = vpop.f32.mrf.mxu0  ;;  %v1663_v28 = vpop.f32.mrf.mxu1 }
 0x11f   :  { %v917_v27 = vadd.f32 %v1600_v23, %v2280_v49  ;;  %v1664_v32 = vadd.f32 %v1663_v28, %v1662_v24 }
 0x120   :  { %v2362_v34 = vpop.f32.mrf.mxu0  ;;  %v2366_v36 = vpop.f32.mrf.mxu1 }
 0x121   :  { %v2368_v38 = vadd.f32 %v1664_v32, %v917_v27 }
 0x122   :  { %v1684_v39 = vpop.f32.mrf.mxu0  ;;  %v2370_v40 = vpop.f32.mrf.mxu1 }
 0x124   :  { %v1685_v44 = vpop.f32.mrf.mxu0  ;;  %v1766_v51 = vpop.f32.mrf.mxu1 }
 0x125   :  { %v1686_v48 = vadd.f32 %v1685_v44, %v1684_v39  ;;  %v1573_v39 = vadd.f32 %v2307_v17, %v2304_v13 }
 0x126   :  { %v1687_v52 = vpop.f32.mrf.mxu0  ;;  %v1151_v62 = vpop.f32.mrf.mxu1 }
 0x127   :  { %v1055_v54 = vadd.f32 %v1686_v48, %v2289_v59  ;;  %v1631_v59 = vadd.f32 %v2302_v9, %v2298_v6  ;;  %v880_v53 = vadd.f32 %v1573_v39, %v2280_v49 }
 0x128   :  { %v1688_v57 = vpop.f32.mrf.mxu0  ;;  %v1767_v8 = vpop.f32.mrf.mxu1 }
 0x129   :  { %v1689_v2 = vadd.f32 %v1688_v57, %v1687_v52  ;;  %v1152_v3 = vadd.f32 %v1151_v62, %v1055_v54  ;;  %v969_v35 = vadd.f32 %v1631_v59, %v872_v16 }
 0x12a   :  { %v1690_v58 = vpop.f32.mrf.mxu0  ;;  %v1154_v11 = vpop.f32.mrf.mxu1 }
 0x12b   :  { %v1058_v61 = vadd.f32 %v1689_v2, %v961_v0  ;;  %v1232_v1 = vmul.f32 %v2381_v10, %v1152_v3  ;;  %vm1215_vm0 = vcmp.ge.f32.partialorder %v1152_v3, 0.0 }
 0x12c   :  { %v1691_v22 = vpop.f32.mrf.mxu0  ;;  %v1770_v27 = vpop.f32.mrf.mxu1 }
 0x12d   :  { %v1692_v5 = vadd.f32 %v1691_v22, %v1690_v58  ;;  %v1155_v23 = vadd.f32 %v1154_v11, %v1058_v61  ;;  %v1248_v46 = vsel %vm1215_vm0, %v1152_v3, %v1232_v1 }
 0x12e   :  { %v1693_v24 = vpop.f32.mrf.mxu0  ;;  %v1167_v54 = vpop.f32.mrf.mxu1 }
 0x12f   :  { %v1063_v28 = vadd.f32 %v1692_v5, %v2300_v7  ;;  %vm1216_vm1 = vcmp.ge.f32.partialorder %v1155_v23, 0.0  ;;  %v1233_v32 = vmul.f32 %v2381_v10, %v1155_v23  ;;  %v1637_v7 = vadd.f32 %v2313_v21, %v2309_v18 }
 0x130   :  { %v1694_v44 = vpop.f32.mrf.mxu0  ;;  %v1771_v2 = vpop.f32.mrf.mxu1  ;;  %v1579_v18 = vadd.f32 %v2318_v29, %v2315_v25 }
 0x131   :  { %v1160_v6 = vadd.f32 %v1766_v51, %v1063_v28  ;;  %v1249_v9 = vsel %vm1216_vm1, %v1155_v23, %v1233_v32  ;;  %v1695_v47 = vadd.f32 %v1694_v44, %v1693_v24  ;;  %v977_v61 = vadd.f32 %v1637_v7, %v880_v53 }
 0x132   :  { %v1496_v48 = vpack.c.bf16 %v1249_v9, %v1248_v46  ;;  %v1696_v52 = vpop.f32.mrf.mxu0  ;;  %v1170_v5 = vpop.f32.mrf.mxu1  ;;  %v888_v24 = vadd.f32 %v1579_v18, %v2280_v49  ;;  %v1643_v28 = vadd.f32 %v2324_v33, %v2320_v30  ;;  %v1585_v30 = vadd.f32 %v2329_v41, %v2326_v37 }
 0x133   :  { %v1066_v62 = vadd.f32 %v1695_v47, %v969_v35  ;;  %v1234_v13 = vmul.f32 %v2381_v10, %v1160_v6  ;;  %vm1217_vm2 = vcmp.ge.f32.partialorder %v1160_v6, 0.0 }
 0x134   :  { %1497 = vst [vmem:[%s2467_s4] sm:$0xff] %v1496_v48   ;;  %v1697_v57 = vpop.f32.mrf.mxu0  ;;  %v1774_v39 = vpop.f32.mrf.mxu1 }
 0x135   :  { %v1163_v17 = vadd.f32 %v1767_v8, %v1066_v62  ;;  %v1698_v51 = vadd.f32 %v1697_v57, %v1696_v52  ;;  %v1250_v11 = vsel %vm1217_vm2, %v1160_v6, %v1234_v13  ;;  %v985_v6 = vadd.f32 %v1643_v28, %v888_v24 }
 0x136   :  { %v1699_v0 = vpop.f32.mrf.mxu0  ;;  %v1183_v53 = vpop.f32.mrf.mxu1  ;;  %v896_v57 = vadd.f32 %v1585_v30, %v2280_v49 }
 0x137   :  { %vm1218_vm3 = vcmp.ge.f32.partialorder %v1163_v17, 0.0  ;;  %v1235_v3 = vmul.f32 %v2381_v10, %v1163_v17  ;;  %v1071_v58 = vadd.f32 %v1698_v51, %v2311_v19 }
 0x138   :  { %v1700_v21 = vpop.f32.mrf.mxu0  ;;  %v1775_v51 = vpop.f32.mrf.mxu1 }
 0x139   :  { %v1251_v16 = vsel %vm1218_vm3, %v1163_v17, %v1235_v3  ;;  %v1701_v59 = vadd.f32 %v1700_v21, %v1699_v0  ;;  %v1168_v22 = vadd.f32 %v1167_v54, %v1071_v58 }
 0x13a   :  { %v1501_v1 = vpack.c.bf16 %v1251_v16, %v1250_v11  ;;  %v1702_v8 = vpop.f32.mrf.mxu0 }
 0x13b   :  { %v1074_v23 = vadd.f32 %v1701_v59, %v977_v61  ;;  %v1236_v25 = vmul.f32 %v2381_v10, %v1168_v22  ;;  %vm1219_vm4 = vcmp.ge.f32.partialorder %v1168_v22, 0.0  ;;  %v1186_v59 = vpop.f32.mrf.mxu1 }
 0x13c   :  { %1533 = vst [vmem:[%s2467_s4 + $0x8] sm:$0xff] %v1501_v1   ;;  %v1703_v19 = vpop.f32.mrf.mxu0 }
 0x13d   :  { %v1704_v29 = vadd.f32 %v1703_v19, %v1702_v8  ;;  %v1171_v32 = vadd.f32 %v1170_v5, %v1074_v23  ;;  %v1252_v9 = vsel %vm1219_vm4, %v1168_v22, %v1236_v25  ;;  %v1655_v8 = vadd.f32 %v2346_v63, %v2342_v56  ;;  %v1778_v24 = vpop.f32.mrf.mxu1 }
 0x13e   :  { %v1705_v35 = vpop.f32.mrf.mxu0  ;;  %v1597_v56 = vadd.f32 %v2351_v12, %v2348_v4 }
 0x13f   :  { %v1079_v44 = vadd.f32 %v1704_v29, %v2322_v31  ;;  %vm1220_vm5 = vcmp.ge.f32.partialorder %v1171_v32, 0.0  ;;  %v1237_v46 = vmul.f32 %v2381_v10, %v1171_v32  ;;  %v1649_v31 = vadd.f32 %v2335_v45, %v2331_v42  ;;  %v1199_v30 = vpop.f32.mrf.mxu1 }
 0x140   :  { %v1706_v33 = vpop.f32.mrf.mxu0  ;;  %v1591_v42 = vadd.f32 %v2340_v55, %v2337_v50 }
 0x141   :  { %v1176_v47 = vadd.f32 %v1770_v27, %v1079_v44  ;;  %v1253_v48 = vsel %vm1220_vm5, %v1171_v32, %v1237_v46  ;;  %v1707_v52 = vadd.f32 %v1706_v33, %v1705_v35  ;;  %v993_v58 = vadd.f32 %v1649_v31, %v896_v57 }
 0x142   :  { %v1506_v54 = vpack.c.bf16 %v1253_v48, %v1252_v9  ;;  %v1708_v62 = vpop.f32.mrf.mxu0  ;;  %v904_v1 = vadd.f32 %v1591_v42, %v2280_v49  ;;  %v912_v9 = vadd.f32 %v1597_v56, %v2280_v49 }
 0x143   :  { %v1082_v7 = vadd.f32 %v1707_v52, %v985_v6  ;;  %v1238_v37 = vmul.f32 %v2381_v10, %v1176_v47  ;;  %vm1221_vm6 = vcmp.ge.f32.partialorder %v1176_v47, 0.0  ;;  %v1779_v52 = vpop.f32.mrf.mxu1 }
 0x144   :  { %1534 = vst [vmem:[%s2467_s4 + $0x10] sm:$0xff] %v1506_v54   ;;  %v1709_v13 = vpop.f32.mrf.mxu0  ;;  %v1001_v25 = vadd.f32 %v1655_v8, %v904_v1 }
 0x145   :  { %v1179_v41 = vadd.f32 %v1771_v2, %v1082_v7  ;;  %v1710_v27 = vadd.f32 %v1709_v13, %v1708_v62  ;;  %v1254_v61 = vsel %vm1221_vm6, %v1176_v47, %v1238_v37 }
 0x146   :  { %v1711_v17 = vpop.f32.mrf.mxu0 }
 0x147   :  { %vm1222_vm7 = vcmp.ge.f32.partialorder %v1179_v41, 0.0  ;;  %v1239_v0 = vmul.f32 %v2381_v10, %v1179_v41  ;;  %v1087_v3 = vadd.f32 %v1710_v27, %v2333_v43  ;;  %v1202_v27 = vpop.f32.mrf.mxu1 }
 0x148   :  { %v1712_v45 = vpop.f32.mrf.mxu0 }
 0x149   :  { %v1255_v18 = vsel %vm1222_vm7, %v1179_v41, %v1239_v0  ;;  %v1713_v21 = vadd.f32 %v1712_v45, %v1711_v17  ;;  %v1184_v11 = vadd.f32 %v1183_v53, %v1087_v3  ;;  %v1667_v0 = vadd.f32 %v2370_v40, %v2366_v36 }
 0x14a   :  { %v1511_v16 = vpack.c.bf16 %v1255_v18, %v1254_v61  ;;  %v1714_v2 = vpop.f32.mrf.mxu0 }
 0x14b   :  { %v1090_v22 = vadd.f32 %v1713_v21, %v993_v58  ;;  %v1240_v50 = vmul.f32 %v2381_v10, %v1184_v11  ;;  %vm1223_vm8 = vcmp.ge.f32.partialorder %v1184_v11, 0.0 }
 0x14c   :  { %1535 = vst [vmem:[%s2467_s4 + $0x18] sm:$0xff] %v1511_v16   ;;  %v1715_v43 = vpop.f32.mrf.mxu0 }
 0x14d   :  { %v1716_v55 = vadd.f32 %v1715_v43, %v1714_v2  ;;  %v1187_v5 = vadd.f32 %v1186_v59, %v1090_v22  ;;  %v1256_v29 = vsel %vm1223_vm8, %v1184_v11, %v1240_v50 }
 0x14e   :  { %v1717_v23 = vpop.f32.mrf.mxu0 }
 0x14f   :  { %v1095_v28 = vadd.f32 %v1716_v55, %v2344_v60  ;;  %vm1224_vm9 = vcmp.ge.f32.partialorder %v1187_v5, 0.0  ;;  %v1241_v19 = vmul.f32 %v2381_v10, %v1187_v5  ;;  %v1661_v60 = vadd.f32 %v2357_v20, %v2353_v14 }
 0x150   :  { %v1718_v63 = vpop.f32.mrf.mxu0  ;;  %v1603_v14 = vadd.f32 %v2362_v34, %v2359_v26 }
 0x151   :  { %v1192_v32 = vadd.f32 %v1774_v39, %v1095_v28  ;;  %v1257_v35 = vsel %vm1224_vm9, %v1187_v5, %v1241_v19  ;;  %v1719_v44 = vadd.f32 %v1718_v63, %v1717_v23  ;;  %v1009_v53 = vadd.f32 %v1661_v60, %v912_v9 }
 0x152   :  { %v1516_v46 = vpack.c.bf16 %v1257_v35, %v1256_v29  ;;  %v1720_v6 = vpop.f32.mrf.mxu0 }
 0x153   :  { %v1098_v33 = vadd.f32 %v1719_v44, %v1001_v25  ;;  %v1242_v4 = vmul.f32 %v2381_v10, %v1192_v32  ;;  %vm1225_vm10 = vcmp.ge.f32.partialorder %v1192_v32, 0.0 }
 0x154   :  { %1536 = vst [vmem:[%s2467_s4 + $0x20] sm:$0xff] %v1516_v46   ;;  %v1721_v47 = vpop.f32.mrf.mxu0 }
 0x155   :  { %v1195_v12 = vadd.f32 %v1775_v51, %v1098_v33  ;;  %v1722_v39 = vadd.f32 %v1721_v47, %v1720_v6  ;;  %v1258_v7 = vsel %vm1225_vm10, %v1192_v32, %v1242_v4  ;;  %v920_v51 = vadd.f32 %v1603_v14, %v2280_v49 }
 0x156   :  { %v1723_v48 = vpop.f32.mrf.mxu0 }
 0x157   :  { %vm1226_vm11 = vcmp.ge.f32.partialorder %v1195_v12, 0.0  ;;  %v1243_v54 = vmul.f32 %v2381_v10, %v1195_v12  ;;  %v1103_v62 = vadd.f32 %v1722_v39, %v2355_v15  ;;  %v1017_v49 = vadd.f32 %v1667_v0, %v920_v51 }
 0x158   :  { %v1724_v20 = vpop.f32.mrf.mxu0 }
 0x159   :  { %v1259_v57 = vsel %vm1226_vm11, %v1195_v12, %v1243_v54  ;;  %v1725_v31 = vadd.f32 %v1724_v20, %v1723_v48  ;;  %v1200_v13 = vadd.f32 %v1199_v30, %v1103_v62 }
 0x15a   :  { %v1521_v37 = vpack.c.bf16 %v1259_v57, %v1258_v7  ;;  %v1726_v41 = vpop.f32.mrf.mxu0 }
 0x15b   :  { %v1106_v17 = vadd.f32 %v1725_v31, %v1009_v53  ;;  %v1244_v26 = vmul.f32 %v2381_v10, %v1200_v13  ;;  %vm1227_vm12 = vcmp.ge.f32.partialorder %v1200_v13, 0.0 }
 0x15c   :  { %1537 = vst [vmem:[%s2467_s4 + $0x28] sm:$0xff] %v1521_v37   ;;  %v1727_v15 = vpop.f32.mrf.mxu0 }
 0x15d   :  { %v1728_v34 = vadd.f32 %v1727_v15, %v1726_v41  ;;  %v1203_v3 = vadd.f32 %v1202_v27, %v1106_v17  ;;  %v1260_v18 = vsel %vm1227_vm12, %v1200_v13, %v1244_v26 }
 0x15e   :  { %v1729_v58 = vpop.f32.mrf.mxu0 }
 0x15f   :  { %v1111_v42 = vadd.f32 %v1728_v34, %v2368_v38  ;;  %vm1228_vm13 = vcmp.ge.f32.partialorder %v1203_v3, 0.0  ;;  %v1245_v45 = vmul.f32 %v2381_v10, %v1203_v3 }
 0x160   :  { %v1730_v61 = vpop.f32.mrf.mxu0 }
 0x161   :  { %v1208_v36 = vadd.f32 %v1778_v24, %v1111_v42  ;;  %v1261_v40 = vsel %vm1228_vm13, %v1203_v3, %v1245_v45  ;;  %v1731_v21 = vadd.f32 %v1730_v61, %v1729_v58 }
 0x162   :  { %v1526_v11 = vpack.c.bf16 %v1261_v40, %v1260_v18 }
 0x163   :  { %v1114_v16 = vadd.f32 %v1731_v21, %v1017_v49  ;;  %v1246_v2 = vmul.f32 %v2381_v10, %v1208_v36  ;;  %vm1229_vm14 = vcmp.ge.f32.partialorder %v1208_v36, 0.0 }
 0x164   :  { %1538 = vst [vmem:[%s2467_s4 + $0x30] sm:$0xff] %v1526_v11  }
 0x165   :  { %v1211_v59 = vadd.f32 %v1779_v52, %v1114_v16  ;;  %v1262_v22 = vsel %vm1229_vm14, %v1208_v36, %v1246_v2 }
 0x167   :  { %vm1230_vm15 = vcmp.ge.f32.partialorder %v1211_v59, 0.0  ;;  %v1247_v38 = vmul.f32 %v2381_v10, %v1211_v59 }
 0x169   :  { %v1263_v1 = vsel %vm1230_vm15, %v1211_v59, %v1247_v38 }
 0x16a   :  { %v1531_v8 = vpack.c.bf16 %v1263_v1, %v1262_v22 }
 0x16c   :  { %1539 = vst [vmem:[%s2467_s4 + $0x38] sm:$0xff] %v1531_v8  }

// kernel: primal_dual_straight.23
= control target key start
LH: loop header
LB: loop body
LE: loop exit
PB: predicated region body
PF: predicated region fallthrough
CT: control target
= control target key end

     0   :  { %s2409_s1 = inlined_call_operand.vmem [shape: bf16[896,128], index: 1, kind: input, shape index: {}]   ;;  %s2410_s0 = inlined_call_operand.vmem [shape: bf16[128,896], index: 0, kind: input, shape index: {}]   ;;  %s2411_s2 = inlined_call_operand.vmem [shape: f32[1,128], index: 2, kind: input, shape index: {}]   ;;  %s2412_s3 = inlined_call_operand.vmem [shape: f32[128,128], index: 3, kind: input, shape index: {}]   ;;  %s2413_s4 = inlined_call_operand.vmem [shape: f32[128,128], index: 4, kind: output, shape index: {}]  }
   0x1   :  { %v1618_v0 = vld [vmem:[%s2409_s1 + $0x78] sm:$0xff]   ;;  %v1622_v4 = vld [vmem:[%s2409_s1 + $0x70] sm:$0xff]   ;;  %v1626_v8 = vld [vmem:[%s2409_s1 + $0x68] sm:$0xff]  }
   0x2   :  { %v1619_v1 = vld [vmem:[%s2409_s1 + $0x38] sm:$0xff]   ;;  %1378 = vmatprep.subr.bf16.mxu0 %v1618_v0  ;;  %v1623_v5 = vld [vmem:[%s2409_s1 + $0x30] sm:$0xff]   ;;  %v1627_v9 = vld [vmem:[%s2409_s1 + $0x28] sm:$0xff]  }
   0x3   :  { %v1620_v2 = vld [vmem:[%s2409_s1 + $0xf8] sm:$0xff]   ;;  %1379 = vmatpush3.bf16.msra.mxu0 %v1619_v1  ;;  %v1624_v6 = vld [vmem:[%s2409_s1 + $0xf0] sm:$0xff]   ;;  %v1628_v10 = vld [vmem:[%s2409_s1 + $0xe8] sm:$0xff]  }
   0x4   :  { %v1621_v3 = vld [vmem:[%s2409_s1 + $0xb8] sm:$0xff]   ;;  %1442 = vmatprep.subr.bf16.mxu1 %v1620_v2  ;;  %1380 = vmatprep.subr.bf16.mxu0 %v1622_v4  ;;  %v1625_v7 = vld [vmem:[%s2409_s1 + $0xb0] sm:$0xff]   ;;  %v1629_v11 = vld [vmem:[%s2409_s1 + $0xa8] sm:$0xff]  }
   0x5   :  { %1443 = vmatpush3.bf16.msra.mxu1 %v1621_v3  ;;  %v1630_v12 = vld [vmem:[%s2409_s1 + $0x60] sm:$0xff]   ;;  %v1634_v16 = vld [vmem:[%s2409_s1 + $0x58] sm:$0xff]   ;;  %v1638_v20 = vld [vmem:[%s2409_s1 + $0x50] sm:$0xff]  }
   0x6   :  { %1444 = vmatprep.subr.bf16.mxu1 %v1624_v6  ;;  %v1631_v13 = vld [vmem:[%s2409_s1 + $0x20] sm:$0xff]   ;;  %v1635_v17 = vld [vmem:[%s2409_s1 + $0x18] sm:$0xff]   ;;  %v1639_v21 = vld [vmem:[%s2409_s1 + $0x10] sm:$0xff]  }
   0x7   :  { %1381 = vmatpush3.bf16.msra.mxu0 %v1623_v5  ;;  %v1632_v14 = vld [vmem:[%s2409_s1 + $0xe0] sm:$0xff]   ;;  %v1636_v18 = vld [vmem:[%s2409_s1 + $0xd8] sm:$0xff]   ;;  %v1640_v22 = vld [vmem:[%s2409_s1 + $0xd0] sm:$0xff]  }
   0x8   :  { %1382 = vmatprep.subr.bf16.mxu0 %v1626_v8  ;;  %v1633_v15 = vld [vmem:[%s2409_s1 + $0xa0] sm:$0xff]   ;;  %v1637_v19 = vld [vmem:[%s2409_s1 + $0x98] sm:$0xff]   ;;  %v1641_v23 = vld [vmem:[%s2409_s1 + $0x90] sm:$0xff]  }
   0x9   :  { %1445 = vmatpush3.bf16.msra.mxu1 %v1625_v7  ;;  %v1642_v24 = vld [vmem:[%s2409_s1 + $0x48] sm:$0xff]   ;;  %v1646_v28 = vld [vmem:[%s2409_s1 + $0x40] sm:$0xff]   ;;  %v1653_v34 = vld [vmem:[%s2409_s1 + $0x178] sm:$0xff]  }
   0xa   :  { %1446 = vmatprep.subr.bf16.mxu1 %v1628_v10  ;;  %v1643_v25 = vld [vmem:[%s2409_s1 + $0x8] sm:$0xff]   ;;  %v1647_v29 = vld [vmem:[%s2409_s1] sm:$0xff]   ;;  %v1657_v37 = vld [vmem:[%s2409_s1 + $0x138] sm:$0xff]  }
   0xb   :  { %1383 = vmatpush3.bf16.msra.mxu0 %v1627_v9  ;;  %v1644_v26 = vld [vmem:[%s2409_s1 + $0xc8] sm:$0xff]   ;;  %v1648_v30 = vld [vmem:[%s2409_s1 + $0xc0] sm:$0xff]   ;;  %v1658_v38 = vld [vmem:[%s2410_s0 + $0x3c] ss:$28 sps:$4 sm:$0xff]  }
   0xc   :  { %1384 = vmatprep.subr.bf16.mxu0 %v1630_v12  ;;  %v1645_v27 = vld [vmem:[%s2409_s1 + $0x88] sm:$0xff]   ;;  %v1649_v31 = vld [vmem:[%s2410_s0] ss:$28 sps:$4 sm:$0xff]   ;;  %v1660_v39 = vld [vmem:[%s2410_s0 + $0x38] ss:$28 sps:$4 sm:$0xff]  }
   0xd   :  { %1447 = vmatpush3.bf16.msra.mxu1 %v1629_v11  ;;  %v1651_v32 = vld [vmem:[%s2410_s0 + $0x4] ss:$28 sps:$4 sm:$0xff]   ;;  %v1656_v36 = vld [vmem:[%s2410_s0 + $0xc] ss:$28 sps:$4 sm:$0xff]   ;;  %v1661_v40 = vld [vmem:[%s2409_s1 + $0x170] sm:$0xff]  }
   0xe   :  { %1448 = vmatprep.subr.bf16.mxu1 %v1632_v14  ;;  %v1652_v33 = vld [vmem:[%s2409_s1 + $0x80] sm:$0xff]   ;;  %857 = vmatprep.mubr.bf16.mxu0 %v1651_v32  ;;  %v1664_v42 = vld [vmem:[%s2409_s1 + $0x130] sm:$0xff]   ;;  %v1669_v45 = vld [vmem:[%s2409_s1 + $0x168] sm:$0xff]  }
   0xf   :  { %1385 = vmatpush3.bf16.msra.mxu0 %v1631_v13  ;;  %v1654_v35 = vld [vmem:[%s2410_s0 + $0x8] ss:$28 sps:$4 sm:$0xff]   ;;  %954 = vmatprep.mubr.bf16.mxu1 %v1656_v36  ;;  %v1665_v43 = vld [vmem:[%s2410_s0 + $0x40] ss:$28 sps:$4 sm:$0xff]   ;;  %v1666_v44 = vld [vmem:[%s2410_s0 + $0x74] ss:$28 sps:$4 sm:$0xff]  }
  0x10   :  { %1386 = vmatprep.subr.bf16.mxu0 %v1634_v16  ;;  %v1662_v41 = vld [vmem:[%s2410_s0 + $0x44] ss:$28 sps:$4 sm:$0xff]   ;;  %v1670_v46 = vld [vmem:[%s2410_s0 + $0x7c] ss:$28 sps:$4 sm:$0xff]   ;;  %v1672_v47 = vld [vmem:[%s2409_s1 + $0x128] sm:$0xff]  }
  0x11   :  { %1449 = vmatpush3.bf16.msra.mxu1 %v1633_v15  ;;  %v1668_v48 = vld [vmem:[%s2410_s0 + $0x70] ss:$28 sps:$4 sm:$0xff]   ;;  %v1677_v50 = vld [vmem:[%s2409_s1 + $0x160] sm:$0xff]   ;;  %v1673_v51 = vld [vmem:[%s2410_s0 + $0x78] ss:$28 sps:$4 sm:$0xff]  }
  0x12   :  { %1450 = vmatprep.subr.bf16.mxu1 %v1636_v18  ;;  %v1674_v49 = vld [vmem:[%s2410_s0 + $0xac] ss:$28 sps:$4 sm:$0xff]   ;;  %v1680_v52 = vld [vmem:[%s2409_s1 + $0x120] sm:$0xff]   ;;  %v1678_v53 = vld [vmem:[%s2410_s0 + $0xb4] ss:$28 sps:$4 sm:$0xff]  }
  0x13   :  { %1387 = vmatpush3.bf16.msra.mxu0 %v1635_v17  ;;  %v1685_v54 = vld [vmem:[%s2409_s1 + $0x158] sm:$0xff]   ;;  %v1676_v55 = vld [vmem:[%s2410_s0 + $0xa8] ss:$28 sps:$4 sm:$0xff]   ;;  %v1681_v59 = vld [vmem:[%s2410_s0 + $0xb0] ss:$28 sps:$4 sm:$0xff]  }
  0x14   :  { %1388 = vmatprep.subr.bf16.mxu0 %v1638_v20  ;;  %v1688_v56 = vld [vmem:[%s2409_s1 + $0x118] sm:$0xff]   ;;  %v1682_v57 = vld [vmem:[%s2410_s0 + $0xe4] ss:$28 sps:$4 sm:$0xff]   ;;  %v1686_v60 = vld [vmem:[%s2410_s0 + $0xec] ss:$28 sps:$4 sm:$0xff]  }
  0x15   :  { %1451 = vmatpush3.bf16.msra.mxu1 %v1637_v19  ;;  %v1690_v58 = vld [vmem:[%s2409_s1 + $0x1b8] sm:$0xff]   ;;  %v1694_v61 = vld [vmem:[%s2409_s1 + $0x150] sm:$0xff]   ;;  %v1700_v0 = vld [vmem:[%s2409_s1 + $0x1a8] sm:$0xff]  }
  0x16   :  { %1452 = vmatprep.subr.bf16.mxu1 %v1640_v22  ;;  %v1695_v62 = vld [vmem:[%s2409_s1 + $0x1b0] sm:$0xff]   ;;  %v1684_v1 = vld [vmem:[%s2410_s0 + $0xe0] ss:$28 sps:$4 sm:$0xff]   ;;  %v1689_v2 = vld [vmem:[%s2410_s0 + $0xe8] ss:$28 sps:$4 sm:$0xff]  }
  0x17   :  { %1389 = vmatpush3.bf16.msra.mxu0 %v1639_v21  ;;  %v1698_v63 = vld [vmem:[%s2409_s1 + $0x110] sm:$0xff]   ;;  %v1691_v3 = vld [vmem:[%s2410_s0 + $0x11c] ss:$28 sps:$4 sm:$0xff]   ;;  %v1704_v4 = vld [vmem:[%s2409_s1 + $0x148] sm:$0xff]  }
  0x18   :  { %1390 = vmatprep.subr.bf16.mxu0 %v1642_v24  ;;  %v1705_v5 = vld [vmem:[%s2409_s1 + $0x1a0] sm:$0xff]   ;;  %v1708_v7 = vld [vmem:[%s2409_s1 + $0x108] sm:$0xff]   ;;  %v1710_v8 = vld [vmem:[%s2409_s1 + $0x198] sm:$0xff]  }
  0x19   :  { %1453 = vmatpush3.bf16.msra.mxu1 %v1641_v23  ;;  %v1696_v6 = vld [vmem:[%s2410_s0 + $0x124] ss:$28 sps:$4 sm:$0xff]   ;;  %v1693_v9 = vld [vmem:[%s2410_s0 + $0x118] ss:$28 sps:$4 sm:$0xff]   ;;  %v1720_v16 = vld [vmem:[%s2409_s1 + $0x188] sm:$0xff]  }
  0x1a   :  { %1454 = vmatprep.subr.bf16.mxu1 %v1644_v26  ;;  %v1714_v10 = vld [vmem:[%s2409_s1 + $0x140] sm:$0xff]   ;;  %v1701_v12 = vld [vmem:[%s2410_s0 + $0x154] ss:$28 sps:$4 sm:$0xff]   ;;  %v1706_v15 = vld [vmem:[%s2410_s0 + $0x15c] ss:$28 sps:$4 sm:$0xff]  }
  0x1b   :  { %1391 = vmatpush3.bf16.msra.mxu0 %v1643_v25  ;;  %v1699_v11 = vld [vmem:[%s2410_s0 + $0x120] ss:$28 sps:$4 sm:$0xff]   ;;  %v1715_v13 = vld [vmem:[%s2409_s1 + $0x190] sm:$0xff]   ;;  %v1711_v18 = vld [vmem:[%s2410_s0 + $0x18c] ss:$28 sps:$4 sm:$0xff]  }
  0x1c   :  { %1392 = vmatprep.subr.bf16.mxu0 %v1646_v28  ;;  %v1718_v14 = vld [vmem:[%s2409_s1 + $0x100] sm:$0xff]   ;;  %v1703_v17 = vld [vmem:[%s2410_s0 + $0x150] ss:$28 sps:$4 sm:$0xff]   ;;  %v1709_v20 = vld [vmem:[%s2410_s0 + $0x158] ss:$28 sps:$4 sm:$0xff]  }
  0x1d   :  { %1455 = vmatpush3.bf16.msra.mxu1 %v1645_v27  ;;  %v1724_v19 = vld [vmem:[%s2409_s1 + $0x180] sm:$0xff]   ;;  %v1716_v21 = vld [vmem:[%s2410_s0 + $0x194] ss:$28 sps:$4 sm:$0xff]   ;;  %v1727_v27 = vld [vmem:[%s2410_s0 + $0x4c] ss:$28 sps:$4 sm:$0xff]  }
  0x1e   :  { %1456 = vmatprep.subr.bf16.mxu1 %v1648_v30  ;;  %v1713_v22 = vld [vmem:[%s2410_s0 + $0x188] ss:$28 sps:$4 sm:$0xff]   ;;  %v1723_v23 = vld [vmem:[%s2410_s0 + $0x14] ss:$28 sps:$4 sm:$0xff]   ;;  %v1734_v32 = vld [vmem:[%s2410_s0 + $0xc0] ss:$28 sps:$4 sm:$0xff]  }
  0x1f   :  { %1393 = vmatpush3.bf16.msra.mxu0 %v1647_v29  ;;  %v1719_v24 = vld [vmem:[%s2410_s0 + $0x190] ss:$28 sps:$4 sm:$0xff]   ;;  %v1725_v25 = vld [vmem:[%s2410_s0 + $0x18] ss:$28 sps:$4 sm:$0xff]   ;;  %v1733_v29 = vld [vmem:[%s2410_s0 + $0x88] ss:$28 sps:$4 sm:$0xff]  }
  0x20   :  { %1506 = vmatprep.subr.bf16.mxu0 %v1653_v34  ;;  %v1721_v26 = vld [vmem:[%s2410_s0 + $0x10] ss:$28 sps:$4 sm:$0xff]   ;;  %v1729_v30 = vld [vmem:[%s2410_s0 + $0x48] ss:$28 sps:$4 sm:$0xff]   ;;  %v1732_v34 = vld [vmem:[%s2410_s0 + $0x80] ss:$28 sps:$4 sm:$0xff]  }
  0x21   :  { %1457 = vmatpush3.bf16.msra.mxu1 %v1652_v33  ;;  %v1726_v28 = vld [vmem:[%s2410_s0 + $0x50] ss:$28 sps:$4 sm:$0xff]   ;;  %v1741_v33 = vld [vmem:[%s2410_s0 + $0xf8] ss:$28 sps:$4 sm:$0xff]  }
  0x22   :  { %858 = vmatmul.mubr.bf16.vlgmr.msra.gmra.mxu0 %v1649_v31  ;;  %1586 = vmatprep.subr.bf16.mxu1 %v1690_v58  ;;  %v1730_v31 = vld [vmem:[%s2410_s0 + $0x84] ss:$28 sps:$4 sm:$0xff]   ;;  %v1742_v36 = vld [vmem:[%s2410_s0 + $0x130] ss:$28 sps:$4 sm:$0xff]  }
  0x23   :  { %1507 = vmatpush3.bf16.msra.mxu0 %v1657_v37  ;;  %865 = vmatprep.mubr.bf16.mxu0 %v1658_v38  ;;  %v1749_v37 = vld [vmem:[%s2410_s0 + $0x168] ss:$28 sps:$4 sm:$0xff]   ;;  %v1737_v38 = vld [vmem:[%s2410_s0 + $0xb8] ss:$28 sps:$4 sm:$0xff]  }
  0x24   :  { %955 = vmatmul.mubr.bf16.vlgmr.msra.gmra.mxu1 %v1654_v35  ;;  %1508 = vmatprep.subr.bf16.mxu0 %v1661_v40  ;;  %v1735_v35 = vld [vmem:[%s2410_s0 + $0xbc] ss:$28 sps:$4 sm:$0xff]  }
  0x25   :  { %962 = vmatprep.mubr.bf16.mxu1 %v1662_v41  ;;  %1587 = vmatpush3.bf16.msra.mxu1 %v1690_v58  ;;  %v1750_v40 = vld [vmem:[%s2410_s0 + $0x1a0] ss:$28 sps:$4 sm:$0xff]   ;;  %v1740_v41 = vld [vmem:[%s2410_s0 + $0xf0] ss:$28 sps:$4 sm:$0xff]  }
  0x26   :  { %1588 = vmatprep.subr.bf16.mxu1 %v1695_v62 }
  0x27   :  { %1509 = vmatpush3.bf16.msra.mxu0 %v1664_v42  ;;  %v1743_v42 = vld [vmem:[%s2410_s0 + $0x12c] ss:$28 sps:$4 sm:$0xff]  }
  0x28   :  { %1510 = vmatprep.subr.bf16.mxu0 %v1669_v45  ;;  %v1748_v45 = vld [vmem:[%s2410_s0 + $0x160] ss:$28 sps:$4 sm:$0xff]  }
  0x29   :  { %1589 = vmatpush3.bf16.msra.mxu1 %v1695_v62 }
  0x2a   :  { %866 = vmatmul.mubr.bf16.gmra.mxu0 %v1660_v39  ;;  %1590 = vmatprep.subr.bf16.mxu1 %v1700_v0  ;;  %v1738_v39 = vld [vmem:[%s2410_s0 + $0xf4] ss:$28 sps:$4 sm:$0xff]  }
  0x2b   :  { %873 = vmatprep.mubr.bf16.mxu0 %v1666_v44  ;;  %1511 = vmatpush3.bf16.msra.mxu0 %v1672_v47  ;;  %v1746_v44 = vld [vmem:[%s2410_s0 + $0x164] ss:$28 sps:$4 sm:$0xff]   ;;  %v1753_v47 = vld [vmem:[%s2410_s0 + $0x198] ss:$28 sps:$4 sm:$0xff]  }
  0x2c   :  { %963 = vmatmul.mubr.bf16.gmra.mxu1 %v1665_v43  ;;  %1512 = vmatprep.subr.bf16.mxu0 %v1677_v50  ;;  %v1745_v43 = vld [vmem:[%s2410_s0 + $0x128] ss:$28 sps:$4 sm:$0xff]  }
  0x2d   :  { %970 = vmatprep.mubr.bf16.mxu1 %v1670_v46  ;;  %1591 = vmatpush3.bf16.msra.mxu1 %v1700_v0  ;;  %v1751_v46 = vld [vmem:[%s2410_s0 + $0x19c] ss:$28 sps:$4 sm:$0xff]  }
  0x2e   :  { %1592 = vmatprep.subr.bf16.mxu1 %v1705_v5 }
  0x2f   :  { %1513 = vmatpush3.bf16.msra.mxu0 %v1680_v52 }
  0x30   :  { %1514 = vmatprep.subr.bf16.mxu0 %v1685_v54 }
  0x31   :  { %1593 = vmatpush3.bf16.msra.mxu1 %v1705_v5 }
  0x32   :  { %874 = vmatmul.mubr.bf16.gmra.mxu0 %v1668_v48  ;;  %1594 = vmatprep.subr.bf16.mxu1 %v1710_v8 }
  0x33   :  { %881 = vmatprep.mubr.bf16.mxu0 %v1674_v49  ;;  %1515 = vmatpush3.bf16.msra.mxu0 %v1688_v56 }
  0x34   :  { %971 = vmatmul.mubr.bf16.gmra.mxu1 %v1673_v51  ;;  %1516 = vmatprep.subr.bf16.mxu0 %v1694_v61 }
  0x35   :  { %978 = vmatprep.mubr.bf16.mxu1 %v1678_v53  ;;  %1595 = vmatpush3.bf16.msra.mxu1 %v1710_v8 }
  0x36   :  { %1596 = vmatprep.subr.bf16.mxu1 %v1715_v13 }
  0x37   :  { %1517 = vmatpush3.bf16.msra.mxu0 %v1698_v63 }
  0x38   :  { %1518 = vmatprep.subr.bf16.mxu0 %v1704_v4 }
  0x39   :  { %1597 = vmatpush3.bf16.msra.mxu1 %v1715_v13 }
  0x3a   :  { %882 = vmatmul.mubr.bf16.gmra.mxu0 %v1676_v55  ;;  %1598 = vmatprep.subr.bf16.mxu1 %v1720_v16 }
  0x3b   :  { %889 = vmatprep.mubr.bf16.mxu0 %v1682_v57  ;;  %1519 = vmatpush3.bf16.msra.mxu0 %v1708_v7 }
  0x3c   :  { %979 = vmatmul.mubr.bf16.gmra.mxu1 %v1681_v59  ;;  %1520 = vmatprep.subr.bf16.mxu0 %v1714_v10 }
  0x3d   :  { %986 = vmatprep.mubr.bf16.mxu1 %v1686_v60  ;;  %1599 = vmatpush3.bf16.msra.mxu1 %v1720_v16 }
  0x3e   :  { %1600 = vmatprep.subr.bf16.mxu1 %v1724_v19 }
  0x3f   :  { %1521 = vmatpush3.bf16.msra.mxu0 %v1718_v14 }
  0x41   :  { %1601 = vmatpush3.bf16.msra.mxu1 %v1724_v19 }
  0x42   :  { %890 = vmatmul.mubr.bf16.gmra.mxu0 %v1684_v1 }
  0x43   :  { %897 = vmatprep.mubr.bf16.mxu0 %v1691_v3 }
  0x44   :  { %987 = vmatmul.mubr.bf16.gmra.mxu1 %v1689_v2 }
  0x45   :  { %994 = vmatprep.mubr.bf16.mxu1 %v1696_v6 }
  0x4a   :  { %898 = vmatmul.mubr.bf16.gmra.mxu0 %v1693_v9 }
  0x4b   :  { %905 = vmatprep.mubr.bf16.mxu0 %v1701_v12 }
  0x4c   :  { %995 = vmatmul.mubr.bf16.gmra.mxu1 %v1699_v11 }
  0x4d   :  { %1002 = vmatprep.mubr.bf16.mxu1 %v1706_v15 }
  0x52   :  { %906 = vmatmul.mubr.bf16.gmra.mxu0 %v1703_v17 }
  0x53   :  { %913 = vmatprep.mubr.bf16.mxu0 %v1711_v18 }
  0x54   :  { %1003 = vmatmul.mubr.bf16.gmra.mxu1 %v1709_v20 }
  0x55   :  { %1010 = vmatprep.mubr.bf16.mxu1 %v1716_v21 }
  0x5a   :  { %914 = vmatmul.mubr.bf16.gmra.mxu0 %v1713_v22 }
  0x5b   :  { %1051 = vmatprep.mubr.bf16.mxu0 %v1723_v23 }
  0x5c   :  { %1011 = vmatmul.mubr.bf16.gmra.mxu1 %v1719_v24 }
  0x5d   :  { %1602 = vmatprep.mubr.bf16.mxu1 %v1725_v25 }
  0x62   :  { %1052 = vmatmul.mubr.bf16.vlgmr.msra.gmra.mxu0 %v1721_v26 }
  0x63   :  { %1059 = vmatprep.mubr.bf16.mxu0 %v1727_v27 }
  0x64   :  { %1603 = vmatmul.mubr.bf16.vlgmr.msra.gmra.mxu1 %v1726_v28 }
  0x65   :  { %1606 = vmatprep.mubr.bf16.mxu1 %v1733_v29 }
  0x6a   :  { %1060 = vmatmul.mubr.bf16.gmra.mxu0 %v1729_v30 }
  0x6b   :  { %1067 = vmatprep.mubr.bf16.mxu0 %v1730_v31 }
  0x6c   :  { %1607 = vmatmul.mubr.bf16.gmra.mxu1 %v1734_v32 }
  0x6d   :  { %1610 = vmatprep.mubr.bf16.mxu1 %v1741_v33 }
  0x72   :  { %1068 = vmatmul.mubr.bf16.gmra.mxu0 %v1732_v34 }
  0x73   :  { %1075 = vmatprep.mubr.bf16.mxu0 %v1735_v35 }
  0x74   :  { %1611 = vmatmul.mubr.bf16.gmra.mxu1 %v1742_v36 }
  0x75   :  { %1614 = vmatprep.mubr.bf16.mxu1 %v1749_v37 }
  0x7a   :  { %1076 = vmatmul.mubr.bf16.gmra.mxu0 %v1737_v38 }
  0x7b   :  { %1083 = vmatprep.mubr.bf16.mxu0 %v1738_v39 }
  0x7c   :  { %1615 = vmatmul.mubr.bf16.gmra.mxu1 %v1750_v40 }
  0x82   :  { %1084 = vmatmul.mubr.bf16.gmra.mxu0 %v1740_v41 }
  0x83   :  { %1091 = vmatprep.mubr.bf16.mxu0 %v1743_v42 }
  0x8a   :  { %1092 = vmatmul.mubr.bf16.gmra.mxu0 %v1745_v43 }
  0x8b   :  { %1099 = vmatprep.mubr.bf16.mxu0 %v1746_v44  ;;  %v2226_v44 = vld [vmem:[%s2411_s2] ss:$0 sm:$0xff] }
  0x92   :  { %1100 = vmatmul.mubr.bf16.gmra.mxu0 %v1748_v45 }
  0x93   :  { %1107 = vmatprep.mubr.bf16.mxu0 %v1751_v46 }
  0x9a   :  { %1108 = vmatmul.mubr.bf16.gmra.mxu0 %v1753_v47 }
  0xe2   :  { %v1394_v48 = vpop.f32.mrf.mxu0 }
  0xe4   :  { %v1395_v49 = vpop.f32.mrf.mxu0  ;;  %v2115_v50 = vpop.f32.mrf.mxu1 }
  0xe5   :  { %v1396_v42 = vadd.f32 %v1395_v49, %v1394_v48 }
  0xe6   :  { %v2117_v51 = vpop.f32.mrf.mxu0  ;;  %v1459_v52 = vpop.f32.mrf.mxu1 }
  0xe8   :  { %v1398_v53 = vpop.f32.mrf.mxu0  ;;  %v2119_v54 = vpop.f32.mrf.mxu1 }
  0xea   :  { %v2121_v55 = vpop.f32.mrf.mxu0  ;;  %v2123_v56 = vpop.f32.mrf.mxu1 }
  0xec   :  { %v1401_v57 = vpop.f32.mrf.mxu0  ;;  %v2125_v58 = vpop.f32.mrf.mxu1 }
  0xee   :  { %v2127_v59 = vpop.f32.mrf.mxu0  ;;  %v2129_v60 = vpop.f32.mrf.mxu1 }
  0xf0   :  { %v2131_v61 = vpop.f32.mrf.mxu0  ;;  %v2133_v62 = vpop.f32.mrf.mxu1 }
  0xf2   :  { %v2135_v63 = vpop.f32.mrf.mxu0  ;;  %v2137_v0 = vpop.f32.mrf.mxu1 }
  0xf4   :  { %v2139_v1 = vpop.f32.mrf.mxu0  ;;  %v2141_v2 = vpop.f32.mrf.mxu1 }
  0xf6   :  { %v2143_v3 = vpop.f32.mrf.mxu0  ;;  %v2145_v4 = vpop.f32.mrf.mxu1 }
  0xf8   :  { %v2147_v5 = vpop.f32.mrf.mxu0  ;;  %v2149_v6 = vpop.f32.mrf.mxu1 }
  0xfa   :  { %v2151_v7 = vpop.f32.mrf.mxu0  ;;  %v2153_v8 = vpop.f32.mrf.mxu1 }
  0xfc   :  { %v2155_v9 = vpop.f32.mrf.mxu0  ;;  %v2157_v10 = vpop.f32.mrf.mxu1 }
  0xfe   :  { %v2159_v11 = vpop.f32.mrf.mxu0  ;;  %v2161_v12 = vpop.f32.mrf.mxu1 }
 0x100   :  { %v2163_v13 = vpop.f32.mrf.mxu0  ;;  %v2165_v14 = vpop.f32.mrf.mxu1 }
 0x102   :  { %v2167_v15 = vpop.f32.mrf.mxu0  ;;  %v2169_v16 = vpop.f32.mrf.mxu1 }
 0x104   :  { %v2171_v17 = vpop.f32.mrf.mxu0  ;;  %v2173_v18 = vpop.f32.mrf.mxu1 }
 0x106   :  { %v2175_v19 = vpop.f32.mrf.mxu0  ;;  %v2177_v20 = vpop.f32.mrf.mxu1 }
 0x108   :  { %v2179_v21 = vpop.f32.mrf.mxu0  ;;  %v2181_v22 = vpop.f32.mrf.mxu1 }
 0x10a   :  { %v2183_v23 = vpop.f32.mrf.mxu0  ;;  %v2185_v24 = vpop.f32.mrf.mxu1 }
 0x10c   :  { %v2187_v25 = vpop.f32.mrf.mxu0  ;;  %v2189_v26 = vpop.f32.mrf.mxu1 }
 0x10e   :  { %v2191_v27 = vpop.f32.mrf.mxu0  ;;  %v2193_v28 = vpop.f32.mrf.mxu1 }
 0x110   :  { %v2195_v29 = vpop.f32.mrf.mxu0  ;;  %v2197_v30 = vpop.f32.mrf.mxu1 }
 0x112   :  { %v2199_v31 = vpop.f32.mrf.mxu0  ;;  %v2201_v32 = vpop.f32.mrf.mxu1 }
 0x114   :  { %v2203_v33 = vpop.f32.mrf.mxu0  ;;  %v2205_v34 = vpop.f32.mrf.mxu1 }
 0x116   :  { %v2207_v35 = vpop.f32.mrf.mxu0  ;;  %v2209_v36 = vpop.f32.mrf.mxu1 }
 0x117   :  { %2414 = vst [vmem:[#allocation2_spill] sm:$0xff] %v2207_v35  ;;  %2415 = vst [vmem:[#allocation3_spill] sm:$0xff] %v2209_v36 }
 0x118   :  { %v2211_v37 = vpop.f32.mrf.mxu0  ;;  %v2213_v38 = vpop.f32.mrf.mxu1 }
 0x119   :  { %2416 = vst [vmem:[#allocation4_spill] sm:$0xff] %v2211_v37  ;;  %2417 = vst [vmem:[#allocation5_spill] sm:$0xff] %v2213_v38  ;;  %v860_v38 = vadd.f32 %v1396_v42, %v2226_v44 }
 0x11a   :  { %v2215_v39 = vpop.f32.mrf.mxu0  ;;  %v2217_v40 = vpop.f32.mrf.mxu1 }
 0x11b   :  { %2418 = vst [vmem:[#allocation6_spill] sm:$0xff] %v2215_v39  ;;  %2419 = vst [vmem:[#allocation7_spill] sm:$0xff] %v2217_v40  ;;  %v1460_v40 = vadd.f32 %v1459_v52, %v2115_v50  ;;  %v1402_v39 = vadd.f32 %v1401_v57, %v2121_v55  ;;  %v1213_v55 = vld [vmem:[%s2412_s3] sm:$0xff] }
 0x11c   :  { %v2219_v41 = vpop.f32.mrf.mxu0  ;;  %v2221_v43 = vpop.f32.mrf.mxu1 }
 0x11d   :  { %2420 = vst [vmem:[#allocation8_spill] sm:$0xff] %v2219_v41  ;;  %2421 = vst [vmem:[#allocation9_spill] sm:$0xff] %v2221_v43  ;;  %v1399_v41 = vadd.f32 %v1398_v53, %v2117_v51  ;;  %v957_v35 = vadd.f32 %v1460_v40, %v860_v38  ;;  %v868_v51 = vadd.f32 %v1402_v39, %v2226_v44 }
 0x11e   :  { %v2228_v45 = vpop.f32.mrf.mxu0  ;;  %v2230_v46 = vpop.f32.mrf.mxu1  ;;  %v1466_v53 = vadd.f32 %v2129_v60, %v2125_v58  ;;  %v1405_v38 = vadd.f32 %v2131_v61, %v2127_v59  ;;  %v1408_v58 = vadd.f32 %v2139_v1, %v2135_v63  ;;  %v1469_v59 = vadd.f32 %v2137_v0, %v2133_v62 }
 0x11f   :  { %2422 = vst [vmem:[#allocation10_spill] sm:$0xff] %v2228_v45  ;;  %2423 = vst [vmem:[#allocation11_spill] sm:$0xff] %v2230_v46  ;;  %v863_v45 = vadd.f32 %v1399_v41, %v2226_v44 }
 0x120   :  { %v2232_v47 = vpop.f32.mrf.mxu0  ;;  %v2237_v48 = vpop.f32.mrf.mxu1  ;;  %v965_v39 = vadd.f32 %v1466_v53, %v868_v51  ;;  %v876_v1 = vadd.f32 %v1408_v58, %v2226_v44  ;;  %v1215_v51 = vld [vmem:[%s2412_s3 + $0x10] sm:$0xff]  ;;  %v1411_v53 = vadd.f32 %v2147_v5, %v2143_v3  ;;  %v1475_v5 = vadd.f32 %v2153_v8, %v2149_v6  ;;  %v1217_v6 = vld [vmem:[%s2412_s3 + $0x20] sm:$0xff] }
 0x121   :  { %2424 = vst [vmem:[#allocation12_spill] sm:$0xff] %v2232_v47  ;;  %v1463_v47 = vadd.f32 %v2123_v56, %v2119_v54 }
 0x122   :  { %v1522_v49 = vpop.f32.mrf.mxu0  ;;  %v2239_v43 = vpop.f32.mrf.mxu1  ;;  %v879_v3 = vadd.f32 %v1411_v53, %v2226_v44 }
 0x123   :  { %2425 = vst [vmem:[#allocation13_spill] sm:$0xff] %v2239_v43  ;;  %v960_v57 = vadd.f32 %v1463_v47, %v863_v45  ;;  %v871_v45 = vadd.f32 %v1405_v38, %v2226_v44 }
 0x124   :  { %v1523_v37 = vpop.f32.mrf.mxu0  ;;  %v1604_v42 = vpop.f32.mrf.mxu1  ;;  %v976_v8 = vadd.f32 %v1475_v5, %v879_v3  ;;  %v1220_v3 = vld [vmem:[%s2412_s3 + $0x38] sm:$0xff] }
 0x125   :  { %v1524_v46 = vadd.f32 %v1523_v37, %v1522_v49  ;;  %v1214_v49 = vld [vmem:[%s2412_s3 + $0x8] sm:$0xff]  ;;  %v968_v0 = vadd.f32 %v1469_v59, %v871_v45  ;;  %v1417_v59 = vadd.f32 %v2163_v13, %v2159_v11  ;;  %v1481_v13 = vadd.f32 %v2169_v16, %v2165_v14 }
 0x126   :  { %v1525_v36 = vpop.f32.mrf.mxu0  ;;  %v1150_v52 = vpop.f32.mrf.mxu1 }
 0x127   :  { %v1054_v50 = vadd.f32 %v1524_v46, %v957_v35  ;;  %v887_v11 = vadd.f32 %v1417_v59, %v2226_v44 }
 0x128   :  { %v1526_v43 = vpop.f32.mrf.mxu0  ;;  %v1605_v37 = vpop.f32.mrf.mxu1 }
 0x129   :  { %v1527_v54 = vadd.f32 %v1526_v43, %v1525_v36  ;;  %v1151_v56 = vadd.f32 %v1150_v52, %v1054_v50  ;;  %v1472_v52 = vadd.f32 %v2145_v4, %v2141_v2  ;;  %v1414_v4 = vadd.f32 %v2155_v9, %v2151_v7 }
 0x12a   :  { %v1528_v40 = vpop.f32.mrf.mxu0  ;;  %v1153_v46 = vpop.f32.mrf.mxu1  ;;  %v984_v16 = vadd.f32 %v1481_v13, %v887_v11  ;;  %v1223_v11 = vld [vmem:[%s2412_s3 + $0x50] sm:$0xff]  ;;  %v2427_v13 = vld [vmem:[#allocation2_spill] sm:$0xff] }
 0x12b   :  { %v1229_v35 = vadd.f32 %v1213_v55, %v1151_v56  ;;  %v1057_v41 = vadd.f32 %v1527_v54, %v960_v57  ;;  %v973_v2 = vadd.f32 %v1472_v52, %v876_v1  ;;  %v884_v9 = vadd.f32 %v1414_v4, %v2226_v44  ;;  %v1218_v52 = vld [vmem:[%s2412_s3 + $0x28] sm:$0xff] }
 0x12c   :  { %v1529_v60 = vpop.f32.mrf.mxu0  ;;  %v1608_v47 = vpop.f32.mrf.mxu1 }
 0x12d   :  { %1245 = vst [vmem:[%s2413_s4] sm:$0xff] %v1229_v35  ;;  %v1530_v61 = vadd.f32 %v1529_v60, %v1528_v40  ;;  %v1154_v36 = vadd.f32 %v1153_v46, %v1057_v41  ;;  %v1216_v35 = vld [vmem:[%s2412_s3 + $0x18] sm:$0xff] }
 0x12e   :  { %v1531_v43 = vpop.f32.mrf.mxu0  ;;  %v1166_v54 = vpop.f32.mrf.mxu1 }
 0x12f   :  { %v1062_v50 = vadd.f32 %v1530_v61, %v965_v39  ;;  %v1230_v63 = vadd.f32 %v1214_v49, %v1154_v36  ;;  %v1478_v49 = vadd.f32 %v2161_v12, %v2157_v10  ;;  %v1420_v12 = vadd.f32 %v2171_v17, %v2167_v15 }
 0x130   :  { %v1532_v62 = vpop.f32.mrf.mxu0  ;;  %v1609_v58 = vpop.f32.mrf.mxu1 }
 0x131   :  { %v1159_v55 = vadd.f32 %v1604_v42, %v1062_v50  ;;  %1246 = vst [vmem:[%s2413_s4 + $0x8] sm:$0xff] %v1230_v63  ;;  %v1533_v57 = vadd.f32 %v1532_v62, %v1531_v43  ;;  %v981_v10 = vadd.f32 %v1478_v49, %v884_v9  ;;  %v892_v17 = vadd.f32 %v1420_v12, %v2226_v44 }
 0x132   :  { %v1534_v38 = vpop.f32.mrf.mxu0  ;;  %v1169_v43 = vpop.f32.mrf.mxu1  ;;  %v1429_v49 = vadd.f32 %v2195_v29, %v2191_v27  ;;  %v1493_v29 = vadd.f32 %v2201_v32, %v2197_v30 }
 0x133   :  { %v1231_v56 = vadd.f32 %v1215_v51, %v1159_v55  ;;  %v1065_v40 = vadd.f32 %v1533_v57, %v968_v0  ;;  %v1484_v57 = vadd.f32 %v2177_v20, %v2173_v18  ;;  %v1426_v20 = vadd.f32 %v2187_v25, %v2183_v23 }
 0x134   :  { %v1535_v41 = vpop.f32.mrf.mxu0  ;;  %v1612_v53 = vpop.f32.mrf.mxu1  ;;  %v903_v27 = vadd.f32 %v1429_v49, %v2226_v44 }
 0x135   :  { %1247 = vst [vmem:[%s2413_s4 + $0x10] sm:$0xff] %v1231_v56  ;;  %v1162_v42 = vadd.f32 %v1605_v37, %v1065_v40  ;;  %v1536_v46 = vadd.f32 %v1535_v41, %v1534_v38  ;;  %v1219_v38 = vld [vmem:[%s2412_s3 + $0x30] sm:$0xff]  ;;  %v989_v18 = vadd.f32 %v1484_v57, %v892_v17  ;;  %v900_v25 = vadd.f32 %v1426_v20, %v2226_v44 }
 0x136   :  { %v1537_v39 = vpop.f32.mrf.mxu0  ;;  %v1182_v4 = vpop.f32.mrf.mxu1  ;;  %v1000_v32 = vadd.f32 %v1493_v29, %v903_v27 }
 0x137   :  { %v1232_v60 = vadd.f32 %v1216_v35, %v1162_v42  ;;  %v1070_v7 = vadd.f32 %v1536_v46, %v973_v2 }
 0x138   :  { %v1538_v45 = vpop.f32.mrf.mxu0 }
 0x139   :  { %1248 = vst [vmem:[%s2413_s4 + $0x18] sm:$0xff] %v1232_v60  ;;  %v1539_v37 = vadd.f32 %v1538_v45, %v1537_v39  ;;  %v1167_v61 = vadd.f32 %v1166_v54, %v1070_v7  ;;  %v1423_v54 = vadd.f32 %v2179_v21, %v2175_v19  ;;  %v1487_v21 = vadd.f32 %v2185_v24, %v2181_v22  ;;  %v1613_v39 = vpop.f32.mrf.mxu1  ;;  %v1221_v22 = vld [vmem:[%s2412_s3 + $0x40] sm:$0xff] }
 0x13a   :  { %v1540_v36 = vpop.f32.mrf.mxu0  ;;  %v1490_v7 = vadd.f32 %v2193_v28, %v2189_v26  ;;  %v1432_v28 = vadd.f32 %v2203_v33, %v2199_v31 }
 0x13b   :  { %v1233_v50 = vadd.f32 %v1217_v6, %v1167_v61  ;;  %v1073_v63 = vadd.f32 %v1539_v37, %v976_v8  ;;  %v895_v19 = vadd.f32 %v1423_v54, %v2226_v44  ;;  %v1185_v8 = vpop.f32.mrf.mxu1 }
 0x13c   :  { %v1541_v1 = vpop.f32.mrf.mxu0  ;;  %v997_v26 = vadd.f32 %v1490_v7, %v900_v25  ;;  %v908_v33 = vadd.f32 %v1432_v28, %v2226_v44  ;;  %v2435_v7 = vld [vmem:[#allocation10_spill] sm:$0xff]  ;;  %v2437_v28 = vld [vmem:[#allocation13_spill] sm:$0xff] }
 0x13d   :  { %1249 = vst [vmem:[%s2413_s4 + $0x20] sm:$0xff] %v1233_v50  ;;  %v1542_v51 = vadd.f32 %v1541_v1, %v1540_v36  ;;  %v1170_v62 = vadd.f32 %v1169_v43, %v1073_v63  ;;  %v992_v24 = vadd.f32 %v1487_v21, %v895_v19  ;;  %v1222_v36 = vld [vmem:[%s2412_s3 + $0x48] sm:$0xff] }
 0x13e   :  { %v1543_v0 = vpop.f32.mrf.mxu0  ;;  %v2426_v1 = vld [vmem:[#allocation3_spill] sm:$0xff] }
 0x13f   :  { %v1078_v55 = vadd.f32 %v1542_v51, %v981_v10  ;;  %v1234_v15 = vadd.f32 %v1218_v52, %v1170_v62  ;;  %v1616_v10 = vpop.f32.mrf.mxu1  ;;  %v1496_v52 = vadd.f32 %v2426_v1, %v2205_v34  ;;  %v2428_v51 = vld [vmem:[#allocation4_spill] sm:$0xff] }
 0x140   :  { %v1544_v14 = vpop.f32.mrf.mxu0  ;;  %v1435_v62 = vadd.f32 %v2428_v51, %v2427_v13 }
 0x141   :  { %v1175_v56 = vadd.f32 %v1608_v47, %v1078_v55  ;;  %1250 = vst [vmem:[%s2413_s4 + $0x28] sm:$0xff] %v1234_v15  ;;  %v1545_v40 = vadd.f32 %v1544_v14, %v1543_v0  ;;  %v1198_v17 = vpop.f32.mrf.mxu1  ;;  %v1005_v34 = vadd.f32 %v1496_v52, %v908_v33  ;;  %v2429_v14 = vld [vmem:[#allocation6_spill] sm:$0xff]  ;;  %v1228_v52 = vld [vmem:[%s2412_s3 + $0x78] sm:$0xff] }
 0x142   :  { %v1546_v2 = vpop.f32.mrf.mxu0 }
 0x143   :  { %v1235_v35 = vadd.f32 %v1219_v38, %v1175_v56  ;;  %v1081_v41 = vadd.f32 %v1545_v40, %v984_v16  ;;  %v2430_v16 = vld [vmem:[#allocation8_spill] sm:$0xff]  ;;  %v1224_v56 = vld [vmem:[%s2412_s3 + $0x58] sm:$0xff] }
 0x144   :  { %v1547_v5 = vpop.f32.mrf.mxu0  ;;  %v1438_v54 = vadd.f32 %v2430_v16, %v2429_v14 }
 0x145   :  { %1251 = vst [vmem:[%s2413_s4 + $0x30] sm:$0xff] %v1235_v35  ;;  %v1178_v47 = vadd.f32 %v1609_v58, %v1081_v41  ;;  %v1548_v42 = vadd.f32 %v1547_v5, %v1546_v2  ;;  %v2431_v2 = vld [vmem:[#allocation5_spill] sm:$0xff] }
 0x146   :  { %v1549_v46 = vpop.f32.mrf.mxu0  ;;  %v916_v21 = vadd.f32 %v1438_v54, %v2226_v44 }
 0x147   :  { %v1236_v60 = vadd.f32 %v1220_v3, %v1178_v47  ;;  %v1086_v23 = vadd.f32 %v1548_v42, %v989_v18  ;;  %v1617_v3 = vpop.f32.mrf.mxu1  ;;  %v2433_v47 = vld [vmem:[#allocation9_spill] sm:$0xff]  ;;  %v2434_v42 = vld [vmem:[#allocation11_spill] sm:$0xff] }
 0x148   :  { %v1550_v9 = vpop.f32.mrf.mxu0 }
 0x149   :  { %1252 = vst [vmem:[%s2413_s4 + $0x38] sm:$0xff] %v1236_v60  ;;  %v1551_v58 = vadd.f32 %v1550_v9, %v1549_v46  ;;  %v1183_v45 = vadd.f32 %v1182_v4, %v1086_v23  ;;  %v2432_v4 = vld [vmem:[#allocation7_spill] sm:$0xff]  ;;  %v1502_v46 = vadd.f32 %v2434_v42, %v2433_v47  ;;  %v1225_v23 = vld [vmem:[%s2412_s3 + $0x60] sm:$0xff]  ;;  %v2436_v9 = vld [vmem:[#allocation12_spill] sm:$0xff] }
 0x14a   :  { %v1552_v6 = vpop.f32.mrf.mxu0  ;;  %v1499_v35 = vadd.f32 %v2432_v4, %v2431_v2 }
 0x14b   :  { %v1237_v59 = vadd.f32 %v1221_v22, %v1183_v45  ;;  %v1089_v37 = vadd.f32 %v1551_v58, %v992_v24  ;;  %v1441_v22 = vadd.f32 %v2436_v9, %v2435_v7  ;;  %v1201_v58 = vpop.f32.mrf.mxu1 }
 0x14c   :  { %v1553_v61 = vpop.f32.mrf.mxu0 }
 0x14d   :  { %1253 = vst [vmem:[%s2413_s4 + $0x40] sm:$0xff] %v1237_v59  ;;  %v1554_v43 = vadd.f32 %v1553_v61, %v1552_v6  ;;  %v1186_v50 = vadd.f32 %v1185_v8, %v1089_v37  ;;  %v1013_v8 = vadd.f32 %v1502_v46, %v916_v21  ;;  %v1226_v37 = vld [vmem:[%s2412_s3 + $0x68] sm:$0xff]  ;;  %v1505_v61 = vadd.f32 %v2437_v28, %v2237_v48 }
 0x14e   :  { %v1555_v63 = vpop.f32.mrf.mxu0 }
 0x14f   :  { %v1094_v12 = vadd.f32 %v1554_v43, %v997_v26  ;;  %v1238_v31 = vadd.f32 %v1222_v36, %v1186_v50  ;;  %v919_v26 = vadd.f32 %v1441_v22, %v2226_v44 }
 0x150   :  { %v1556_v30 = vpop.f32.mrf.mxu0 }
 0x151   :  { %v1191_v0 = vadd.f32 %v1612_v53, %v1094_v12  ;;  %1254 = vst [vmem:[%s2413_s4 + $0x48] sm:$0xff] %v1238_v31  ;;  %v1557_v55 = vadd.f32 %v1556_v30, %v1555_v63  ;;  %v911_v53 = vadd.f32 %v1435_v62, %v2226_v44  ;;  %v1227_v63 = vld [vmem:[%s2412_s3 + $0x70] sm:$0xff]  ;;  %v1016_v31 = vadd.f32 %v1505_v61, %v919_v26 }
 0x152   :  { %v1558_v15 = vpop.f32.mrf.mxu0 }
 0x153   :  { %v1239_v57 = vadd.f32 %v1223_v11, %v1191_v0  ;;  %v1097_v38 = vadd.f32 %v1557_v55, %v1000_v32  ;;  %v1008_v25 = vadd.f32 %v1499_v35, %v911_v53 }
 0x154   :  { %v1559_v40 = vpop.f32.mrf.mxu0 }
 0x155   :  { %1255 = vst [vmem:[%s2413_s4 + $0x50] sm:$0xff] %v1239_v57  ;;  %v1194_v41 = vadd.f32 %v1613_v39, %v1097_v38  ;;  %v1560_v18 = vadd.f32 %v1559_v40, %v1558_v15 }
 0x156   :  { %v1561_v20 = vpop.f32.mrf.mxu0 }
 0x157   :  { %v1240_v5 = vadd.f32 %v1224_v56, %v1194_v41  ;;  %v1102_v19 = vadd.f32 %v1560_v18, %v1005_v34 }
 0x158   :  { %v1562_v60 = vpop.f32.mrf.mxu0 }
 0x159   :  { %1256 = vst [vmem:[%s2413_s4 + $0x58] sm:$0xff] %v1240_v5  ;;  %v1563_v39 = vadd.f32 %v1562_v60, %v1561_v20  ;;  %v1199_v24 = vadd.f32 %v1198_v17, %v1102_v19 }
 0x15a   :  { %v1564_v49 = vpop.f32.mrf.mxu0 }
 0x15b   :  { %v1241_v45 = vadd.f32 %v1225_v23, %v1199_v24  ;;  %v1105_v6 = vadd.f32 %v1563_v39, %v1008_v25 }
 0x15c   :  { %v1565_v59 = vpop.f32.mrf.mxu0 }
 0x15d   :  { %1257 = vst [vmem:[%s2413_s4 + $0x60] sm:$0xff] %v1241_v45  ;;  %v1566_v36 = vadd.f32 %v1565_v59, %v1564_v49  ;;  %v1202_v27 = vadd.f32 %v1201_v58, %v1105_v6 }
 0x15e   :  { %v1567_v29 = vpop.f32.mrf.mxu0 }
 0x15f   :  { %v1110_v43 = vadd.f32 %v1566_v36, %v1013_v8  ;;  %v1242_v50 = vadd.f32 %v1226_v37, %v1202_v27 }
 0x160   :  { %v1568_v12 = vpop.f32.mrf.mxu0 }
 0x161   :  { %v1207_v33 = vadd.f32 %v1616_v10, %v1110_v43  ;;  %1258 = vst [vmem:[%s2413_s4 + $0x68] sm:$0xff] %v1242_v50  ;;  %v1569_v44 = vadd.f32 %v1568_v12, %v1567_v29 }
 0x163   :  { %v1243_v48 = vadd.f32 %v1227_v63, %v1207_v33  ;;  %v1113_v1 = vadd.f32 %v1569_v44, %v1016_v31 }
 0x165   :  { %1259 = vst [vmem:[%s2413_s4 + $0x70] sm:$0xff] %v1243_v48  ;;  %v1210_v11 = vadd.f32 %v1617_v3, %v1113_v1 }
 0x167   :  { %v1244_v30 = vadd.f32 %v1228_v52, %v1210_v11 }
 0x169   :  { %1260 = vst [vmem:[%s2413_s4 + $0x78] sm:$0xff] %v1244_v30 }

</bundles_post_ra>
